<compile_context>
chip_gen: v5e
topology: v5e:2x2
jax: 0.10.0
libtpu: 0.0.40
codegen_flags: <defaults>
</compile_context>

<pallas_src>
import jax
import jax.numpy as jnp
from jax import lax
from jax.experimental import pallas as pl
from jax.experimental.pallas import tpu as pltpu

LANE = 128


def _round_up(n, m=LANE):
    return ((n + m - 1) // m) * m


def _embed(small, shape):
    big = jnp.zeros(shape, jnp.float32)
    return big.at[:small.shape[0], :small.shape[1]].set(small)


# ----------------------------------------------------------------------------
# Fused forward kernel factory
# ----------------------------------------------------------------------------
def make_fused_kernel(n_pre, n_conv, n_post, C, C_PAD, N_PAD, node_embedding):
    def kernel(*refs):
        it = iter(refs)
        x_ref = next(it)            # (1, N_PAD, IN_PAD)   f32
        lhs_ref = next(it)          # (1, E_PAD, 2N+D)     bf16  [g_dst|g_src|e]
        sdst_ref = next(it)         # (1, N_PAD, E_PAD)    bf16  scatter-add
        pool_ref = None
        if not node_embedding:
            pool_ref = next(it)     # (1, 1, N_PAD)        f32   mean-pool row
        pre = [(next(it), next(it)) for _ in range(n_pre)]
        convs = [tuple(next(it) for _ in range(5)) for _ in range(n_conv)]
        if not node_embedding:
            post = [(next(it), next(it)) for _ in range(n_post)]
            wout_ref = next(it)
            bout_ref = next(it)
        o_ref = next(it)
        rhs_scr = next(it)          # (2*N_PAD + D_PAD, 2*C_PAD) bf16 scratch

        # ---- pre_fc: Linear (+ folded BN) + ReLU ---------------------------
        out = x_ref[0]
        for w_ref, b_ref in pre:
            out = jnp.dot(out.astype(jnp.bfloat16), w_ref[...],
                          preferred_element_type=jnp.float32)
            out = jnp.maximum(out + b_ref[...], 0.0)

        lhs_e = lhs_ref[0]
        s_dst = sdst_ref[0]
        # zero out padded feature lanes of the messages (hoisted constant)
        lane_mask = (lax.broadcasted_iota(jnp.int32, (1, C_PAD), 1) < C
                     ).astype(jnp.float32)

        # ---- CGConv layers + BN + ReLU (dropout = eval identity) ----------
        for w_node_ref, w_edge_ref, bias_ref, scale_ref, shift_ref in convs:
            # node-level projection [N_PAD, 4*C_PAD]: cols = [Wfi|Wsi | Wfj|Wsj]
            p = jnp.dot(out.astype(jnp.bfloat16), w_node_ref[...],
                        preferred_element_type=jnp.float32)
            # stage per-layer RHS = [p_i ; p_j ; W_edge] (128-aligned slabs)
            rhs_scr[0:N_PAD, :] = p[:, :2 * C_PAD].astype(jnp.bfloat16)
            rhs_scr[N_PAD:2 * N_PAD, :] = p[:, 2 * C_PAD:].astype(jnp.bfloat16)
            rhs_scr[2 * N_PAD:, :] = w_edge_ref[...]
            # single fused edge-level matmul: gather-i + gather-j + edge proj
            z = jnp.dot(lhs_e, rhs_scr[...],
                        preferred_element_type=jnp.float32) + bias_ref[...]
            zf = z[:, :C_PAD]                       # 128-aligned split
            zs = z[:, C_PAD:]
            f = pl.reciprocal(1.0 + jnp.exp(-zf), approx=True)           # sigmoid
            s = jnp.maximum(zs, 0.0) + jnp.log1p(jnp.exp(-jnp.abs(zs)))  # softplus
            msg = (f * s * lane_mask).astype(jnp.bfloat16)               # [E, C_PAD]
            # scatter-add messages to target nodes, CGConv residual
            aggr = jnp.dot(s_dst, msg, preferred_element_type=jnp.float32)
            out = aggr + out
            out = jnp.maximum(out * scale_ref[...] + shift_ref[...], 0.0)  # BN+ReLU

        if node_embedding:
            o_ref[0] = out
            return

        # ---- global mean pool + post_fc + output head ----------------------
        pooled = jnp.dot(pool_ref[0], out, preferred_element_type=jnp.float32)
        for w_ref, b_ref in post:
            pooled = jnp.dot(pooled.astype(jnp.bfloat16), w_ref[...],
                             preferred_element_type=jnp.float32)
            pooled = jnp.maximum(pooled + b_ref[...], 0.0)
        res = jnp.dot(pooled.astype(jnp.bfloat16), wout_ref[...],
                      preferred_element_type=jnp.float32) + bout_ref[...]
        # lane/sublane-dense store of the padded result slab
        o_ref[0] = jnp.broadcast_to(res, (o_ref.shape[1], o_ref.shape[2]))

    return kernel


# ----------------------------------------------------------------------------
# Parameter construction (PyTorch default inits, eval-mode BN folded, padded)
# ----------------------------------------------------------------------------
def init_linear(key, in_dim, out_dim):
    k1, k2 = jax.random.split(key)
    bound = 1.0 / (in_dim ** 0.5)          # PyTorch nn.Linear default init
    w = jax.random.uniform(k1, (in_dim, out_dim), jnp.float32, -bound, bound)
    b = jax.random.uniform(k2, (1, out_dim), jnp.float32, -bound, bound)
    return w, b


def bn_fold(dim, eps=1e-5):
    gamma = jnp.ones((1, dim), jnp.float32)
    beta = jnp.zeros((1, dim), jnp.float32)
    mean = jnp.zeros((1, dim), jnp.float32)
    var = jnp.ones((1, dim), jnp.float32)
    scale = gamma / jnp.sqrt(var + eps)
    shift = beta - mean * scale
    return scale, shift


def build_params(key, in_dim, pre_fc_dim, post_fc_dim, num_layers, edge_dim):
    keys = iter(jax.random.split(key, 64))
    params = {"pre_fc": [], "convs": [], "post_fc": []}

    last, last_pad = in_dim, _round_up(in_dim)
    for d in pre_fc_dim:
        d_pad = _round_up(d)
        w, b = init_linear(next(keys), last, d)
        scale, shift = bn_fold(d)
        w, b = w * scale, b * scale + shift          # fold eval BN into Linear
        params["pre_fc"].append((_embed(w, (last_pad, d_pad)).astype(jnp.bfloat16),
                                 _embed(b, (1, d_pad))))
        last, last_pad = d, d_pad

    C = pre_fc_dim[-1] if pre_fc_dim else in_dim
    C_PAD = _round_up(C)
    D_PAD = _round_up(edge_dim)

    for _ in range(num_layers):
        wf, bf_ = init_linear(next(keys), 2 * C + edge_dim, C)   # lin_f
        ws, bs_ = init_linear(next(keys), 2 * C + edge_dim, C)   # lin_s
        scale, shift = bn_fold(C)
        wfi, wfj, wfe = wf[:C], wf[C:2 * C], wf[2 * C:]
        wsi, wsj, wse = ws[:C], ws[C:2 * C], ws[2 * C:]
        # node projection [C_PAD, 4*C_PAD]: 128-lane slabs [Wfi|Wsi|Wfj|Wsj]
        w_node = jnp.zeros((C_PAD, 4 * C_PAD), jnp.float32)
        w_node = w_node.at[:C, 0:C].set(wfi)
        w_node = w_node.at[:C, C_PAD:C_PAD + C].set(wsi)
        w_node = w_node.at[:C, 2 * C_PAD:2 * C_PAD + C].set(wfj)
        w_node = w_node.at[:C, 3 * C_PAD:3 * C_PAD + C].set(wsj)
        # edge projection [D_PAD, 2*C_PAD]: slabs [Wfe|Wse]
        w_edge = jnp.zeros((D_PAD, 2 * C_PAD), jnp.float32)
        w_edge = w_edge.at[:edge_dim, 0:C].set(wfe)
        w_edge = w_edge.at[:edge_dim, C_PAD:C_PAD + C].set(wse)
        bias = jnp.zeros((1, 2 * C_PAD), jnp.float32)
        bias = bias.at[:, 0:C].set(bf_)
        bias = bias.at[:, C_PAD:C_PAD + C].set(bs_)
        scale_p = jnp.ones((1, C_PAD), jnp.float32).at[:, :C].set(scale)
        shift_p = jnp.zeros((1, C_PAD), jnp.float32).at[:, :C].set(shift)
        params["convs"].append((w_node.astype(jnp.bfloat16),
                                w_edge.astype(jnp.bfloat16),
                                bias, scale_p, shift_p))

    last, last_pad = C, C_PAD
    for d in post_fc_dim:
        d_pad = _round_up(d)
        w, b = init_linear(next(keys), last, d)
        scale, shift = bn_fold(d)
        w, b = w * scale, b * scale + shift
        params["post_fc"].append((_embed(w, (last_pad, d_pad)).astype(jnp.bfloat16),
                                  _embed(b, (1, d_pad))))
        last, last_pad = d, d_pad

    w, b = init_linear(next(keys), last, 1)
    params["out_w"] = _embed(w, (last_pad, LANE)).astype(jnp.bfloat16)
    params["out_b"] = _embed(b, (1, LANE))
    params["dims"] = dict(C=C, C_PAD=C_PAD, D_PAD=D_PAD, OUT_PAD=LANE)
    return params


# ----------------------------------------------------------------------------
# CGCNN forward (eval mode) — single fused pallas_call, one graph per grid step
# ----------------------------------------------------------------------------
def cgcnn_forward(params, x, lhs_edge, s_dst, pool, node_embedding=False):
    G, N_PAD, IN_PAD = x.shape
    E_PAD, K_EDGE = lhs_edge.shape[1], lhs_edge.shape[2]
    dims = params["dims"]
    C, C_PAD, D_PAD, OUT_PAD = dims["C"], dims["C_PAD"], dims["D_PAD"], dims["OUT_PAD"]
    n_pre, n_conv, n_post = (len(params["pre_fc"]), len(params["convs"]),
                             len(params["post_fc"]))

    args = [x, lhs_edge, s_dst]
    in_specs = [
        pl.BlockSpec((1, N_PAD, IN_PAD), lambda g: (g, 0, 0)),
        pl.BlockSpec((1, E_PAD, K_EDGE), lambda g: (g, 0, 0)),
        pl.BlockSpec((1, N_PAD, E_PAD), lambda g: (g, 0, 0)),
    ]
    if not node_embedding:
        args.append(pool)
        in_specs.append(pl.BlockSpec((1, 1, N_PAD), lambda g: (g, 0, 0)))

    def _w_spec(a):
        return pl.BlockSpec(a.shape, lambda g, n=a.ndim: (0,) * n)

    weights = []
    for w, b in params["pre_fc"]:
        weights += [w, b]
    for conv in params["convs"]:
        weights += list(conv)
    if not node_embedding:
        for w, b in params["post_fc"]:
            weights += [w, b]
        weights += [params["out_w"], params["out_b"]]
    args += weights
    in_specs += [_w_spec(a) for a in weights]

    if node_embedding:
        out_shape = (G, N_PAD, C_PAD)
        out_spec = pl.BlockSpec((1, N_PAD, C_PAD), lambda g: (g, 0, 0))
    else:
        out_shape = (G, 8, OUT_PAD)                       # lane/sublane-dense slab
        out_spec = pl.BlockSpec((1, 8, OUT_PAD), lambda g: (g, 0, 0))

    kernel = make_fused_kernel(n_pre, n_conv, n_post, C, C_PAD, N_PAD,
                               node_embedding)
    out = pl.pallas_call(
        kernel,
        out_shape=jax.ShapeDtypeStruct(out_shape, jnp.float32),
        grid=(G,),
        in_specs=in_specs,
        out_specs=out_spec,
        scratch_shapes=[pltpu.VMEM((2 * N_PAD + D_PAD, 2 * C_PAD), jnp.bfloat16)],
        compiler_params=pltpu.CompilerParams(
            dimension_semantics=("parallel",),          # v7x: both TensorCores
            vmem_limit_bytes=32 * 1024 * 1024),         # explicit; safe on v5e-v7x
    )(*args)

    if node_embedding:
        return out[:, :, :C]
    return out[:, 0, :1]


# ----------------------------------------------------------------------------
# Main
# ----------------------------------------------------------------------------
if __name__ == "__main__":
    G = 2                        # graphs (batched, one per grid step)
    N_NODES, N_EDGES = 8, 16     # real nodes / edges per graph
    IN_DIM, EDGE_DIM = 8, 8
    PRE_FC_DIM = [32]            # conv_in_dim = 32
    POST_FC_DIM = [16]
    NUM_LAYERS = 2

    N_PAD = _round_up(N_NODES)
    E_PAD = _round_up(N_EDGES)
    IN_PAD = _round_up(IN_DIM)
    D_PAD = _round_up(EDGE_DIM)

    root = jax.random.PRNGKey(0)
    kp, kg = jax.random.split(root)
    params = build_params(kp, IN_DIM, PRE_FC_DIM, POST_FC_DIM, NUM_LAYERS,
                          EDGE_DIM)

    xs, lhss, sdsts, pools = [], [], [], []
    for gk in jax.random.split(kg, G):
        kx, ks, kd, ke = jax.random.split(gk, 4)
        xg = jax.random.normal(kx, (N_NODES, IN_DIM), jnp.float32)
        esrc = jax.random.randint(ks, (N_EDGES,), 0, N_NODES)   # edge_index[0]=j
        edst = jax.random.randint(kd, (N_EDGES,), 0, N_NODES)   # edge_index[1]=i
        eattr = jax.random.normal(ke, (N_EDGES, EDGE_DIM), jnp.float32)

        g_src = jax.nn.one_hot(esrc, N_NODES, dtype=jnp.float32)   # [E, N]
        g_dst = jax.nn.one_hot(edst, N_NODES, dtype=jnp.float32)   # [E, N]

        x_pad = jnp.zeros((N_PAD, IN_PAD), jnp.float32).at[:N_NODES, :IN_DIM].set(xg)
        gdst_p = jnp.zeros((E_PAD, N_PAD), jnp.float32).at[:N_EDGES, :N_NODES].set(g_dst)
        gsrc_p = jnp.zeros((E_PAD, N_PAD), jnp.float32).at[:N_EDGES, :N_NODES].set(g_src)
        e_pad = jnp.zeros((E_PAD, D_PAD), jnp.float32).at[:N_EDGES, :EDGE_DIM].set(eattr)
        # fused constant LHS for the edge-level matmul: [g_dst | g_src | e_attr]
        lhs = jnp.concatenate([gdst_p, gsrc_p, e_pad], axis=1).astype(jnp.bfloat16)
        sd = gdst_p.T.astype(jnp.bfloat16)                          # [N, E] scatter
        pr = jnp.zeros((1, N_PAD), jnp.float32).at[0, :N_NODES].set(1.0 / N_NODES)

        xs.append(x_pad); lhss.append(lhs); sdsts.append(sd); pools.append(pr)

    x = jnp.stack(xs)            # [G, N_PAD, IN_PAD]
    lhs_edge = jnp.stack(lhss)   # [G, E_PAD, 2*N_PAD + D_PAD]
    s_dst = jnp.stack(sdsts)     # [G, N_PAD, E_PAD]
    pool = jnp.stack(pools)      # [G, 1, N_PAD]  (global_mean_pool rows)

    out = cgcnn_forward(params, x, lhs_edge, s_dst, pool)
    out = jax.block_until_ready(out)
    assert out.shape == (G, 1), out.shape
    assert bool(jnp.all(jnp.isfinite(out)))
    print("KERNEL_OK")
</pallas_src>

<mosaic_0001>
module attributes {stable_mosaic.version = 11 : i64} {
  func.func @kernel(%arg0: i32, %arg1: memref<1x128x128xf32, #tpu.memory_space<vmem>>, %arg2: memref<1x128x384xbf16, #tpu.memory_space<vmem>>, %arg3: memref<1x128x128xbf16, #tpu.memory_space<vmem>>, %arg4: memref<1x1x128xf32, #tpu.memory_space<vmem>>, %arg5: memref<128x128xbf16, #tpu.memory_space<vmem>>, %arg6: memref<1x128xf32, #tpu.memory_space<vmem>>, %arg7: memref<128x512xbf16, #tpu.memory_space<vmem>>, %arg8: memref<128x256xbf16, #tpu.memory_space<vmem>>, %arg9: memref<1x256xf32, #tpu.memory_space<vmem>>, %arg10: memref<1x128xf32, #tpu.memory_space<vmem>>, %arg11: memref<1x128xf32, #tpu.memory_space<vmem>>, %arg12: memref<128x512xbf16, #tpu.memory_space<vmem>>, %arg13: memref<128x256xbf16, #tpu.memory_space<vmem>>, %arg14: memref<1x256xf32, #tpu.memory_space<vmem>>, %arg15: memref<1x128xf32, #tpu.memory_space<vmem>>, %arg16: memref<1x128xf32, #tpu.memory_space<vmem>>, %arg17: memref<128x128xbf16, #tpu.memory_space<vmem>>, %arg18: memref<1x128xf32, #tpu.memory_space<vmem>>, %arg19: memref<128x128xbf16, #tpu.memory_space<vmem>>, %arg20: memref<1x128xf32, #tpu.memory_space<vmem>>, %arg21: memref<1x8x128xf32, #tpu.memory_space<vmem>>, %arg22: memref<384x256xbf16, #tpu.memory_space<vmem>>) attributes {dimension_semantics = [#tpu.dimension_semantics<parallel>], iteration_bounds = array<i64: 2>, scalar_prefetch = 0 : i64, scratch_operands = 1 : i64, tpu.core_type = #tpu.core_type<tc>, window_params = [{transform_indices = @transform_0, window_bounds = array<i64: 1, 128, 128>}, {transform_indices = @transform_1, window_bounds = array<i64: 1, 128, 384>}, {transform_indices = @transform_2, window_bounds = array<i64: 1, 128, 128>}, {transform_indices = @transform_3, window_bounds = array<i64: 1, 1, 128>}, {pipeline_mode = #tpu.pipeline_mode<synchronous>, transform_indices = @transform_4, window_bounds = array<i64: 128, 128>}, {pipeline_mode = #tpu.pipeline_mode<synchronous>, transform_indices = @transform_5, window_bounds = array<i64: 1, 128>}, {pipeline_mode = #tpu.pipeline_mode<synchronous>, transform_indices = @transform_6, window_bounds = array<i64: 128, 512>}, {pipeline_mode = #tpu.pipeline_mode<synchronous>, transform_indices = @transform_7, window_bounds = array<i64: 128, 256>}, {pipeline_mode = #tpu.pipeline_mode<synchronous>, transform_indices = @transform_8, window_bounds = array<i64: 1, 256>}, {pipeline_mode = #tpu.pipeline_mode<synchronous>, transform_indices = @transform_9, window_bounds = array<i64: 1, 128>}, {pipeline_mode = #tpu.pipeline_mode<synchronous>, transform_indices = @transform_10, window_bounds = array<i64: 1, 128>}, {pipeline_mode = #tpu.pipeline_mode<synchronous>, transform_indices = @transform_11, window_bounds = array<i64: 128, 512>}, {pipeline_mode = #tpu.pipeline_mode<synchronous>, transform_indices = @transform_12, window_bounds = array<i64: 128, 256>}, {pipeline_mode = #tpu.pipeline_mode<synchronous>, transform_indices = @transform_13, window_bounds = array<i64: 1, 256>}, {pipeline_mode = #tpu.pipeline_mode<synchronous>, transform_indices = @transform_14, window_bounds = array<i64: 1, 128>}, {pipeline_mode = #tpu.pipeline_mode<synchronous>, transform_indices = @transform_15, window_bounds = array<i64: 1, 128>}, {pipeline_mode = #tpu.pipeline_mode<synchronous>, transform_indices = @transform_16, window_bounds = array<i64: 128, 128>}, {pipeline_mode = #tpu.pipeline_mode<synchronous>, transform_indices = @transform_17, window_bounds = array<i64: 1, 128>}, {pipeline_mode = #tpu.pipeline_mode<synchronous>, transform_indices = @transform_18, window_bounds = array<i64: 128, 128>}, {pipeline_mode = #tpu.pipeline_mode<synchronous>, transform_indices = @transform_19, window_bounds = array<i64: 1, 128>}, {transform_indices = @transform_20, window_bounds = array<i64: 1, 8, 128>}]} {
    %c0 = arith.constant 0 : index
    %c0_0 = arith.constant 0 : index
    %c0_1 = arith.constant 0 : index
    %0 = vector.load %arg1[%c0, %c0_0, %c0_1] : memref<1x128x128xf32, #tpu.memory_space<vmem>>, vector<1x128x128xf32>
    %1 = vector.shape_cast %0 : vector<1x128x128xf32> to vector<128x128xf32>
    %2 = arith.truncf %1 : vector<128x128xf32> to vector<128x128xbf16>
    %c0_2 = arith.constant 0 : index
    %c0_3 = arith.constant 0 : index
    %3 = vector.load %arg5[%c0_2, %c0_3] : memref<128x128xbf16, #tpu.memory_space<vmem>>, vector<128x128xbf16>
    %cst = arith.constant dense<0.000000e+00> : vector<128x128xf32>
    %4 = tpu.matmul %2, %3, %cst {dimension_numbers = #tpu.dot_dimension_numbers<[1], [0], [0], [1], [0, 0, 1, 1], [], []>} : vector<128x128xbf16>, vector<128x128xbf16>, vector<128x128xf32> -> vector<128x128xf32>
    %c0_4 = arith.constant 0 : index
    %c0_5 = arith.constant 0 : index
    %5 = vector.load %arg6[%c0_4, %c0_5] : memref<1x128xf32, #tpu.memory_space<vmem>>, vector<1x128xf32>
    %6 = vector.broadcast %5 : vector<1x128xf32> to vector<128x128xf32>
    %7 = arith.addf %4, %6 : vector<128x128xf32>
    %cst_6 = arith.constant 0.000000e+00 : f32
    %8 = vector.broadcast %cst_6 : f32 to vector<128x128xf32>
    %9 = arith.maximumf %7, %8 : vector<128x128xf32>
    %c0_7 = arith.constant 0 : index
    %c0_8 = arith.constant 0 : index
    %c0_9 = arith.constant 0 : index
    %10 = vector.load %arg2[%c0_7, %c0_8, %c0_9] : memref<1x128x384xbf16, #tpu.memory_space<vmem>>, vector<1x128x384xbf16>
    %11 = vector.shape_cast %10 : vector<1x128x384xbf16> to vector<128x384xbf16>
    %c0_10 = arith.constant 0 : index
    %c0_11 = arith.constant 0 : index
    %c0_12 = arith.constant 0 : index
    %12 = vector.load %arg3[%c0_10, %c0_11, %c0_12] : memref<1x128x128xbf16, #tpu.memory_space<vmem>>, vector<1x128x128xbf16>
    %13 = vector.shape_cast %12 : vector<1x128x128xbf16> to vector<128x128xbf16>
    %14 = tpu.iota {dimensions = array<i32: 1>} : vector<1x128xi32>
    %c32_i32 = arith.constant 32 : i32
    %15 = vector.broadcast %c32_i32 : i32 to vector<1x128xi32>
    %16 = arith.cmpi slt, %14, %15 : vector<1x128xi32>
    %17 = arith.extui %16 : vector<1x128xi1> to vector<1x128xi32>
    %18 = arith.sitofp %17 : vector<1x128xi32> to vector<1x128xf32>
    %19 = arith.truncf %9 : vector<128x128xf32> to vector<128x128xbf16>
    %c0_13 = arith.constant 0 : index
    %c0_14 = arith.constant 0 : index
    %20 = vector.load %arg7[%c0_13, %c0_14] : memref<128x512xbf16, #tpu.memory_space<vmem>>, vector<128x512xbf16>
    %cst_15 = arith.constant dense<0.000000e+00> : vector<128x512xf32>
    %21 = tpu.matmul %19, %20, %cst_15 {dimension_numbers = #tpu.dot_dimension_numbers<[1], [0], [0], [1], [0, 0, 1, 1], [], []>} : vector<128x128xbf16>, vector<128x512xbf16>, vector<128x512xf32> -> vector<128x512xf32>
    %22 = vector.extract_strided_slice %21 {offsets = [0, 0], sizes = [128, 256], strides = [1, 1]} : vector<128x512xf32> to vector<128x256xf32>
    %23 = arith.truncf %22 : vector<128x256xf32> to vector<128x256xbf16>
    %c0_16 = arith.constant 0 : index
    %c0_17 = arith.constant 0 : index
    %24 = vector.load %arg22[%c0_16, %c0_17] : memref<384x256xbf16, #tpu.memory_space<vmem>>, vector<128x256xbf16>
    tpu.vector_store %arg22[%c0_16, %c0_17], %23 {strides = array<i32>} : memref<384x256xbf16, #tpu.memory_space<vmem>>, vector<128x256xbf16>,
    %25 = vector.extract_strided_slice %21 {offsets = [0, 256], sizes = [128, 256], strides = [1, 1]} : vector<128x512xf32> to vector<128x256xf32>
    %26 = arith.truncf %25 : vector<128x256xf32> to vector<128x256xbf16>
    %c128 = arith.constant 128 : index
    %c0_18 = arith.constant 0 : index
    %27 = vector.load %arg22[%c128, %c0_18] : memref<384x256xbf16, #tpu.memory_space<vmem>>, vector<128x256xbf16>
    tpu.vector_store %arg22[%c128, %c0_18], %26 {strides = array<i32>} : memref<384x256xbf16, #tpu.memory_space<vmem>>, vector<128x256xbf16>,
    %c0_19 = arith.constant 0 : index
    %c0_20 = arith.constant 0 : index
    %28 = vector.load %arg8[%c0_19, %c0_20] : memref<128x256xbf16, #tpu.memory_space<vmem>>, vector<128x256xbf16>
    %c256 = arith.constant 256 : index
    %c0_21 = arith.constant 0 : index
    %29 = vector.load %arg22[%c256, %c0_21] : memref<384x256xbf16, #tpu.memory_space<vmem>>, vector<128x256xbf16>
    tpu.vector_store %arg22[%c256, %c0_21], %28 {strides = array<i32>} : memref<384x256xbf16, #tpu.memory_space<vmem>>, vector<128x256xbf16>,
    %c0_22 = arith.constant 0 : index
    %c0_23 = arith.constant 0 : index
    %30 = vector.load %arg22[%c0_22, %c0_23] : memref<384x256xbf16, #tpu.memory_space<vmem>>, vector<384x256xbf16>
    %cst_24 = arith.constant dense<0.000000e+00> : vector<128x256xf32>
    %31 = tpu.matmul %11, %30, %cst_24 {dimension_numbers = #tpu.dot_dimension_numbers<[1], [0], [0], [1], [0, 0, 1, 1], [], []>} : vector<128x384xbf16>, vector<384x256xbf16>, vector<128x256xf32> -> vector<128x256xf32>
    %c0_25 = arith.constant 0 : index
    %c0_26 = arith.constant 0 : index
    %32 = vector.load %arg9[%c0_25, %c0_26] : memref<1x256xf32, #tpu.memory_space<vmem>>, vector<1x256xf32>
    %33 = vector.broadcast %32 : vector<1x256xf32> to vector<128x256xf32>
    %34 = arith.addf %31, %33 : vector<128x256xf32>
    %35 = vector.extract_strided_slice %34 {offsets = [0, 0], sizes = [128, 128], strides = [1, 1]} : vector<128x256xf32> to vector<128x128xf32>
    %36 = vector.extract_strided_slice %34 {offsets = [0, 128], sizes = [128, 128], strides = [1, 1]} : vector<128x256xf32> to vector<128x128xf32>
    %cst_27 = arith.constant 0.000000e+00 : f32
    %37 = vector.broadcast %cst_27 : f32 to vector<128x128xf32>
    %38 = arith.subf %37, %35 : vector<128x128xf32>
    %39 = math.exp %38 : vector<128x128xf32>
    %cst_28 = arith.constant 1.000000e+00 : f32
    %40 = vector.broadcast %cst_28 : f32 to vector<128x128xf32>
    %41 = arith.addf %40, %39 : vector<128x128xf32>
    %42 = tpu.reciprocal %41 {approx = true} : vector<128x128xf32> -> vector<128x128xf32>
    %cst_29 = arith.constant 0.000000e+00 : f32
    %43 = vector.broadcast %cst_29 : f32 to vector<128x128xf32>
    %44 = arith.maximumf %36, %43 : vector<128x128xf32>
    %45 = math.absf %36 : vector<128x128xf32>
    %cst_30 = arith.constant 0.000000e+00 : f32
    %46 = vector.broadcast %cst_30 : f32 to vector<128x128xf32>
    %47 = arith.subf %46, %45 : vector<128x128xf32>
    %48 = math.exp %47 : vector<128x128xf32>
    %49 = math.log1p %48 : vector<128x128xf32>
    %50 = arith.addf %44, %49 : vector<128x128xf32>
    %51 = arith.mulf %42, %50 : vector<128x128xf32>
    %52 = vector.broadcast %18 : vector<1x128xf32> to vector<128x128xf32>
    %53 = arith.mulf %51, %52 : vector<128x128xf32>
    %54 = arith.truncf %53 : vector<128x128xf32> to vector<128x128xbf16>
    %cst_31 = arith.constant dense<0.000000e+00> : vector<128x128xf32>
    %55 = tpu.matmul %13, %54, %cst_31 {dimension_numbers = #tpu.dot_dimension_numbers<[1], [0], [0], [1], [0, 0, 1, 1], [], []>} : vector<128x128xbf16>, vector<128x128xbf16>, vector<128x128xf32> -> vector<128x128xf32>
    %56 = arith.addf %55, %9 : vector<128x128xf32>
    %c0_32 = arith.constant 0 : index
    %c0_33 = arith.constant 0 : index
    %57 = vector.load %arg10[%c0_32, %c0_33] : memref<1x128xf32, #tpu.memory_space<vmem>>, vector<1x128xf32>
    %58 = vector.broadcast %57 : vector<1x128xf32> to vector<128x128xf32>
    %59 = arith.mulf %56, %58 : vector<128x128xf32>
    %c0_34 = arith.constant 0 : index
    %c0_35 = arith.constant 0 : index
    %60 = vector.load %arg11[%c0_34, %c0_35] : memref<1x128xf32, #tpu.memory_space<vmem>>, vector<1x128xf32>
    %61 = vector.broadcast %60 : vector<1x128xf32> to vector<128x128xf32>
    %62 = arith.addf %59, %61 : vector<128x128xf32>
    %cst_36 = arith.constant 0.000000e+00 : f32
    %63 = vector.broadcast %cst_36 : f32 to vector<128x128xf32>
    %64 = arith.maximumf %62, %63 : vector<128x128xf32>
    %65 = arith.truncf %64 : vector<128x128xf32> to vector<128x128xbf16>
    %c0_37 = arith.constant 0 : index
    %c0_38 = arith.constant 0 : index
    %66 = vector.load %arg12[%c0_37, %c0_38] : memref<128x512xbf16, #tpu.memory_space<vmem>>, vector<128x512xbf16>
    %cst_39 = arith.constant dense<0.000000e+00> : vector<128x512xf32>
    %67 = tpu.matmul %65, %66, %cst_39 {dimension_numbers = #tpu.dot_dimension_numbers<[1], [0], [0], [1], [0, 0, 1, 1], [], []>} : vector<128x128xbf16>, vector<128x512xbf16>, vector<128x512xf32> -> vector<128x512xf32>
    %68 = vector.extract_strided_slice %67 {offsets = [0, 0], sizes = [128, 256], strides = [1, 1]} : vector<128x512xf32> to vector<128x256xf32>
    %69 = arith.truncf %68 : vector<128x256xf32> to vector<128x256xbf16>
    %c0_40 = arith.constant 0 : index
    %c0_41 = arith.constant 0 : index
    %70 = vector.load %arg22[%c0_40, %c0_41] : memref<384x256xbf16, #tpu.memory_space<vmem>>, vector<128x256xbf16>
    tpu.vector_store %arg22[%c0_40, %c0_41], %69 {strides = array<i32>} : memref<384x256xbf16, #tpu.memory_space<vmem>>, vector<128x256xbf16>,
    %71 = vector.extract_strided_slice %67 {offsets = [0, 256], sizes = [128, 256], strides = [1, 1]} : vector<128x512xf32> to vector<128x256xf32>
    %72 = arith.truncf %71 : vector<128x256xf32> to vector<128x256xbf16>
    %c128_42 = arith.constant 128 : index
    %c0_43 = arith.constant 0 : index
    %73 = vector.load %arg22[%c128_42, %c0_43] : memref<384x256xbf16, #tpu.memory_space<vmem>>, vector<128x256xbf16>
    tpu.vector_store %arg22[%c128_42, %c0_43], %72 {strides = array<i32>} : memref<384x256xbf16, #tpu.memory_space<vmem>>, vector<128x256xbf16>,
    %c0_44 = arith.constant 0 : index
    %c0_45 = arith.constant 0 : index
    %74 = vector.load %arg13[%c0_44, %c0_45] : memref<128x256xbf16, #tpu.memory_space<vmem>>, vector<128x256xbf16>
    %c256_46 = arith.constant 256 : index
    %c0_47 = arith.constant 0 : index
    %75 = vector.load %arg22[%c256_46, %c0_47] : memref<384x256xbf16, #tpu.memory_space<vmem>>, vector<128x256xbf16>
    tpu.vector_store %arg22[%c256_46, %c0_47], %74 {strides = array<i32>} : memref<384x256xbf16, #tpu.memory_space<vmem>>, vector<128x256xbf16>,
    %c0_48 = arith.constant 0 : index
    %c0_49 = arith.constant 0 : index
    %76 = vector.load %arg22[%c0_48, %c0_49] : memref<384x256xbf16, #tpu.memory_space<vmem>>, vector<384x256xbf16>
    %cst_50 = arith.constant dense<0.000000e+00> : vector<128x256xf32>
    %77 = tpu.matmul %11, %76, %cst_50 {dimension_numbers = #tpu.dot_dimension_numbers<[1], [0], [0], [1], [0, 0, 1, 1], [], []>} : vector<128x384xbf16>, vector<384x256xbf16>, vector<128x256xf32> -> vector<128x256xf32>
    %c0_51 = arith.constant 0 : index
    %c0_52 = arith.constant 0 : index
    %78 = vector.load %arg14[%c0_51, %c0_52] : memref<1x256xf32, #tpu.memory_space<vmem>>, vector<1x256xf32>
    %79 = vector.broadcast %78 : vector<1x256xf32> to vector<128x256xf32>
    %80 = arith.addf %77, %79 : vector<128x256xf32>
    %81 = vector.extract_strided_slice %80 {offsets = [0, 0], sizes = [128, 128], strides = [1, 1]} : vector<128x256xf32> to vector<128x128xf32>
    %82 = vector.extract_strided_slice %80 {offsets = [0, 128], sizes = [128, 128], strides = [1, 1]} : vector<128x256xf32> to vector<128x128xf32>
    %cst_53 = arith.constant 0.000000e+00 : f32
    %83 = vector.broadcast %cst_53 : f32 to vector<128x128xf32>
    %84 = arith.subf %83, %81 : vector<128x128xf32>
    %85 = math.exp %84 : vector<128x128xf32>
    %cst_54 = arith.constant 1.000000e+00 : f32
    %86 = vector.broadcast %cst_54 : f32 to vector<128x128xf32>
    %87 = arith.addf %86, %85 : vector<128x128xf32>
    %88 = tpu.reciprocal %87 {approx = true} : vector<128x128xf32> -> vector<128x128xf32>
    %cst_55 = arith.constant 0.000000e+00 : f32
    %89 = vector.broadcast %cst_55 : f32 to vector<128x128xf32>
    %90 = arith.maximumf %82, %89 : vector<128x128xf32>
    %91 = math.absf %82 : vector<128x128xf32>
    %cst_56 = arith.constant 0.000000e+00 : f32
    %92 = vector.broadcast %cst_56 : f32 to vector<128x128xf32>
    %93 = arith.subf %92, %91 : vector<128x128xf32>
    %94 = math.exp %93 : vector<128x128xf32>
    %95 = math.log1p %94 : vector<128x128xf32>
    %96 = arith.addf %90, %95 : vector<128x128xf32>
    %97 = arith.mulf %88, %96 : vector<128x128xf32>
    %98 = vector.broadcast %18 : vector<1x128xf32> to vector<128x128xf32>
    %99 = arith.mulf %97, %98 : vector<128x128xf32>
    %100 = arith.truncf %99 : vector<128x128xf32> to vector<128x128xbf16>
    %cst_57 = arith.constant dense<0.000000e+00> : vector<128x128xf32>
    %101 = tpu.matmul %13, %100, %cst_57 {dimension_numbers = #tpu.dot_dimension_numbers<[1], [0], [0], [1], [0, 0, 1, 1], [], []>} : vector<128x128xbf16>, vector<128x128xbf16>, vector<128x128xf32> -> vector<128x128xf32>
    %102 = arith.addf %101, %64 : vector<128x128xf32>
    %c0_58 = arith.constant 0 : index
    %c0_59 = arith.constant 0 : index
    %103 = vector.load %arg15[%c0_58, %c0_59] : memref<1x128xf32, #tpu.memory_space<vmem>>, vector<1x128xf32>
    %104 = vector.broadcast %103 : vector<1x128xf32> to vector<128x128xf32>
    %105 = arith.mulf %102, %104 : vector<128x128xf32>
    %c0_60 = arith.constant 0 : index
    %c0_61 = arith.constant 0 : index
    %106 = vector.load %arg16[%c0_60, %c0_61] : memref<1x128xf32, #tpu.memory_space<vmem>>, vector<1x128xf32>
    %107 = vector.broadcast %106 : vector<1x128xf32> to vector<128x128xf32>
    %108 = arith.addf %105, %107 : vector<128x128xf32>
    %cst_62 = arith.constant 0.000000e+00 : f32
    %109 = vector.broadcast %cst_62 : f32 to vector<128x128xf32>
    %110 = arith.maximumf %108, %109 : vector<128x128xf32>
    %c0_63 = arith.constant 0 : index
    %c0_64 = arith.constant 0 : index
    %c0_65 = arith.constant 0 : index
    %111 = vector.load %arg4[%c0_63, %c0_64, %c0_65] : memref<1x1x128xf32, #tpu.memory_space<vmem>>, vector<1x1x128xf32>
    %112 = vector.shape_cast %111 : vector<1x1x128xf32> to vector<1x128xf32>
    %cst_66 = arith.constant dense<0.000000e+00> : vector<1x128xf32>
    %113 = tpu.matmul %112, %110, %cst_66 {dimension_numbers = #tpu.dot_dimension_numbers<[1], [0], [0], [1], [0, 0, 1, 1], [], []>} : vector<1x128xf32>, vector<128x128xf32>, vector<1x128xf32> -> vector<1x128xf32>
    %114 = arith.truncf %113 : vector<1x128xf32> to vector<1x128xbf16>
    %c0_67 = arith.constant 0 : index
    %c0_68 = arith.constant 0 : index
    %115 = vector.load %arg17[%c0_67, %c0_68] : memref<128x128xbf16, #tpu.memory_space<vmem>>, vector<128x128xbf16>
    %cst_69 = arith.constant dense<0.000000e+00> : vector<1x128xf32>
    %116 = tpu.matmul %114, %115, %cst_69 {dimension_numbers = #tpu.dot_dimension_numbers<[1], [0], [0], [1], [0, 0, 1, 1], [], []>} : vector<1x128xbf16>, vector<128x128xbf16>, vector<1x128xf32> -> vector<1x128xf32>
    %c0_70 = arith.constant 0 : index
    %c0_71 = arith.constant 0 : index
    %117 = vector.load %arg18[%c0_70, %c0_71] : memref<1x128xf32, #tpu.memory_space<vmem>>, vector<1x128xf32>
    %118 = arith.addf %116, %117 : vector<1x128xf32>
    %cst_72 = arith.constant 0.000000e+00 : f32
    %119 = vector.broadcast %cst_72 : f32 to vector<1x128xf32>
    %120 = arith.maximumf %118, %119 : vector<1x128xf32>
    %121 = arith.truncf %120 : vector<1x128xf32> to vector<1x128xbf16>
    %c0_73 = arith.constant 0 : index
    %c0_74 = arith.constant 0 : index
    %122 = vector.load %arg19[%c0_73, %c0_74] : memref<128x128xbf16, #tpu.memory_space<vmem>>, vector<128x128xbf16>
    %cst_75 = arith.constant dense<0.000000e+00> : vector<1x128xf32>
    %123 = tpu.matmul %121, %122, %cst_75 {dimension_numbers = #tpu.dot_dimension_numbers<[1], [0], [0], [1], [0, 0, 1, 1], [], []>} : vector<1x128xbf16>, vector<128x128xbf16>, vector<1x128xf32> -> vector<1x128xf32>
    %c0_76 = arith.constant 0 : index
    %c0_77 = arith.constant 0 : index
    %124 = vector.load %arg20[%c0_76, %c0_77] : memref<1x128xf32, #tpu.memory_space<vmem>>, vector<1x128xf32>
    %125 = arith.addf %123, %124 : vector<1x128xf32>
    %126 = vector.shape_cast %125 : vector<1x128xf32> to vector<1x128xf32>
    %127 = vector.broadcast %126 : vector<1x128xf32> to vector<8x128xf32>
    %c0_78 = arith.constant 0 : index
    %c0_79 = arith.constant 0 : index
    %c0_80 = arith.constant 0 : index
    %128 = vector.load %arg21[%c0_78, %c0_79, %c0_80] : memref<1x8x128xf32, #tpu.memory_space<vmem>>, vector<1x8x128xf32>
    %129 = vector.shape_cast %128 : vector<1x8x128xf32> to vector<8x128xf32>
    %130 = vector.shape_cast %127 : vector<8x128xf32> to vector<1x8x128xf32>
    tpu.vector_store %arg21[%c0_78, %c0_79, %c0_80], %130 {strides = array<i32>} : memref<1x8x128xf32, #tpu.memory_space<vmem>>, vector<1x8x128xf32>,
    return
  }
  func.func @transform_0(%arg0: i32) -> (i32, i32, i32) {
    %c0_i32 = arith.constant 0 : i32
    %c0_i32_0 = arith.constant 0 : i32
    %c0_i32_1 = arith.constant 0 : i32
    return %arg0, %c0_i32, %c0_i32_0 : i32, i32, i32
  }
  func.func @transform_1(%arg0: i32) -> (i32, i32, i32) {
    %c0_i32 = arith.constant 0 : i32
    %c0_i32_0 = arith.constant 0 : i32
    %c0_i32_1 = arith.constant 0 : i32
    return %arg0, %c0_i32, %c0_i32_0 : i32, i32, i32
  }
  func.func @transform_2(%arg0: i32) -> (i32, i32, i32) {
    %c0_i32 = arith.constant 0 : i32
    %c0_i32_0 = arith.constant 0 : i32
    %c0_i32_1 = arith.constant 0 : i32
    return %arg0, %c0_i32, %c0_i32_0 : i32, i32, i32
  }
  func.func @transform_3(%arg0: i32) -> (i32, i32, i32) {
    %c0_i32 = arith.constant 0 : i32
    %c0_i32_0 = arith.constant 0 : i32
    %c0_i32_1 = arith.constant 0 : i32
    return %arg0, %c0_i32, %c0_i32_0 : i32, i32, i32
  }
  func.func @transform_4(%arg0: i32) -> (i32, i32) {
    %c0_i32 = arith.constant 0 : i32
    %c0_i32_0 = arith.constant 0 : i32
    %c0_i32_1 = arith.constant 0 : i32
    return %c0_i32, %c0_i32_0 : i32, i32
  }
  func.func @transform_5(%arg0: i32) -> (i32, i32) {
    %c0_i32 = arith.constant 0 : i32
    %c0_i32_0 = arith.constant 0 : i32
    %c0_i32_1 = arith.constant 0 : i32
    return %c0_i32, %c0_i32_0 : i32, i32
  }
  func.func @transform_6(%arg0: i32) -> (i32, i32) {
    %c0_i32 = arith.constant 0 : i32
    %c0_i32_0 = arith.constant 0 : i32
    %c0_i32_1 = arith.constant 0 : i32
    return %c0_i32, %c0_i32_0 : i32, i32
  }
  func.func @transform_7(%arg0: i32) -> (i32, i32) {
    %c0_i32 = arith.constant 0 : i32
    %c0_i32_0 = arith.constant 0 : i32
    %c0_i32_1 = arith.constant 0 : i32
    return %c0_i32, %c0_i32_0 : i32, i32
  }
  func.func @transform_8(%arg0: i32) -> (i32, i32) {
    %c0_i32 = arith.constant 0 : i32
    %c0_i32_0 = arith.constant 0 : i32
    %c0_i32_1 = arith.constant 0 : i32
    return %c0_i32, %c0_i32_0 : i32, i32
  }
  func.func @transform_9(%arg0: i32) -> (i32, i32) {
    %c0_i32 = arith.constant 0 : i32
    %c0_i32_0 = arith.constant 0 : i32
    %c0_i32_1 = arith.constant 0 : i32
    return %c0_i32, %c0_i32_0 : i32, i32
  }
  func.func @transform_10(%arg0: i32) -> (i32, i32) {
    %c0_i32 = arith.constant 0 : i32
    %c0_i32_0 = arith.constant 0 : i32
    %c0_i32_1 = arith.constant 0 : i32
    return %c0_i32, %c0_i32_0 : i32, i32
  }
  func.func @transform_11(%arg0: i32) -> (i32, i32) {
    %c0_i32 = arith.constant 0 : i32
    %c0_i32_0 = arith.constant 0 : i32
    %c0_i32_1 = arith.constant 0 : i32
    return %c0_i32, %c0_i32_0 : i32, i32
  }
  func.func @transform_12(%arg0: i32) -> (i32, i32) {
    %c0_i32 = arith.constant 0 : i32
    %c0_i32_0 = arith.constant 0 : i32
    %c0_i32_1 = arith.constant 0 : i32
    return %c0_i32, %c0_i32_0 : i32, i32
  }
  func.func @transform_13(%arg0: i32) -> (i32, i32) {
    %c0_i32 = arith.constant 0 : i32
    %c0_i32_0 = arith.constant 0 : i32
    %c0_i32_1 = arith.constant 0 : i32
    return %c0_i32, %c0_i32_0 : i32, i32
  }
  func.func @transform_14(%arg0: i32) -> (i32, i32) {
    %c0_i32 = arith.constant 0 : i32
    %c0_i32_0 = arith.constant 0 : i32
    %c0_i32_1 = arith.constant 0 : i32
    return %c0_i32, %c0_i32_0 : i32, i32
  }
  func.func @transform_15(%arg0: i32) -> (i32, i32) {
    %c0_i32 = arith.constant 0 : i32
    %c0_i32_0 = arith.constant 0 : i32
    %c0_i32_1 = arith.constant 0 : i32
    return %c0_i32, %c0_i32_0 : i32, i32
  }
  func.func @transform_16(%arg0: i32) -> (i32, i32) {
    %c0_i32 = arith.constant 0 : i32
    %c0_i32_0 = arith.constant 0 : i32
    %c0_i32_1 = arith.constant 0 : i32
    return %c0_i32, %c0_i32_0 : i32, i32
  }
  func.func @transform_17(%arg0: i32) -> (i32, i32) {
    %c0_i32 = arith.constant 0 : i32
    %c0_i32_0 = arith.constant 0 : i32
    %c0_i32_1 = arith.constant 0 : i32
    return %c0_i32, %c0_i32_0 : i32, i32
  }
  func.func @transform_18(%arg0: i32) -> (i32, i32) {
    %c0_i32 = arith.constant 0 : i32
    %c0_i32_0 = arith.constant 0 : i32
    %c0_i32_1 = arith.constant 0 : i32
    return %c0_i32, %c0_i32_0 : i32, i32
  }
  func.func @transform_19(%arg0: i32) -> (i32, i32) {
    %c0_i32 = arith.constant 0 : i32
    %c0_i32_0 = arith.constant 0 : i32
    %c0_i32_1 = arith.constant 0 : i32
    return %c0_i32, %c0_i32_0 : i32, i32
  }
  func.func @transform_20(%arg0: i32) -> (i32, i32, i32) {
    %c0_i32 = arith.constant 0 : i32
    %c0_i32_0 = arith.constant 0 : i32
    %c0_i32_1 = arith.constant 0 : i32
    return %arg0, %c0_i32, %c0_i32_0 : i32, i32, i32
  }
}

</mosaic_0001>

<bundles_post_ra>
// kernel: tpu_custom_call.1
= control target key start
LH: loop header
LB: loop body
LE: loop exit
PB: predicated region body
PF: predicated region fallthrough
CT: control target
= control target key end

     0   :  { %s8253_s0 = inlined_call_operand.hbm [shape: f32[2,128,128], index: 0, kind: input, shape index: {}]   ;;  %s8254_s1 = inlined_call_operand.hbm [shape: bf16[2,128,384], index: 1, kind: input, shape index: {}]   ;;  %s8255_s2 = inlined_call_operand.hbm [shape: bf16[2,128,128], index: 2, kind: input, shape index: {}]   ;;  %s8256_s3 = inlined_call_operand.vmem [shape: f32[2,1,128], index: 3, kind: input, shape index: {}]   ;;  %s8257_s4 = inlined_call_operand.hbm [shape: bf16[128,128], index: 4, kind: input, shape index: {}]   ;;  %s8258_s5 = inlined_call_operand.hbm [shape: f32[1,128], index: 5, kind: input, shape index: {}]   ;;  %s8259_s6 = inlined_call_operand.hbm [shape: bf16[128,512], index: 6, kind: input, shape index: {}]   ;;  %s8260_s7 = inlined_call_operand.hbm [shape: bf16[128,256], index: 7, kind: input, shape index: {}]   ;;  %s8261_s8 = inlined_call_operand.vmem [shape: f32[1,256], index: 8, kind: input, shape index: {}]   ;;  %s8262_s9 = inlined_call_operand.vmem [shape: f32[1,128], index: 9, kind: input, shape index: {}]   ;;  %s8263_s10 = inlined_call_operand.vmem [shape: f32[1,128], index: 10, kind: input, shape index: {}]   ;;  %s8264_s11 = inlined_call_operand.hbm [shape: bf16[128,512], index: 11, kind: input, shape index: {}]   ;;  %s8265_s12 = inlined_call_operand.hbm [shape: bf16[128,256], index: 12, kind: input, shape index: {}]   ;;  %s8266_s13 = inlined_call_operand.vmem [shape: f32[1,256], index: 13, kind: input, shape index: {}]   ;;  %s8267_s14 = inlined_call_operand.vmem [shape: f32[1,128], index: 14, kind: input, shape index: {}]   ;;  %s8268_s15 = inlined_call_operand.vmem [shape: f32[1,128], index: 15, kind: input, shape index: {}]   ;;  %s8269_s16 = inlined_call_operand.hbm [shape: bf16[128,128], index: 16, kind: input, shape index: {}]   ;;  %s8270_s17 = inlined_call_operand.vmem [shape: f32[1,128], index: 17, kind: input, shape index: {}]   ;;  %s8271_s18 = inlined_call_operand.hbm [shape: bf16[128,128], index: 18, kind: input, shape index: {}]   ;;  %s8272_s19 = inlined_call_operand.vmem [shape: f32[1,128], index: 19, kind: input, shape index: {}]   ;;  %s8273_s20 = inlined_call_operand.hbm [shape: f32[2,8,128], index: 20, kind: output, shape index: {}]  }
   0x1   :  { %8382 = sst [smem:[#allocation69_spill]] %s8253_s0 }
   0x2   :  { %8383 = sst [smem:[#allocation70_spill]] %s8254_s1 }
   0x3   :  { %8384 = sst [smem:[#allocation71_spill]] %s8255_s2 }
   0x4   :  { %8385 = sst [smem:[#allocation72_spill]] %s8256_s3 }
   0x5   :  { %8386 = sst [smem:[#allocation73_spill]] %s8257_s4 }
   0x6   :  { %8387 = sst [smem:[#allocation74_spill]] %s8258_s5 }
   0x7   :  { %8388 = sst [smem:[#allocation75_spill]] %s8259_s6 }
   0x8   :  { %8389 = sst [smem:[#allocation76_spill]] %s8260_s7 }
   0x9   :  { %8390 = sst [smem:[#allocation77_spill]] %s8263_s10 }
   0xa   :  { %8391 = sst [smem:[#allocation78_spill]] %s8264_s11 }
   0xb   :  { %8392 = sst [smem:[#allocation79_spill]] %s8266_s13 }
   0xc   :  { %8393 = sst [smem:[#allocation80_spill]] %s8267_s14 }
   0xd   :  { %8394 = sst [smem:[#allocation81_spill]] %s8268_s15 }
   0xe   :  { %8395 = sst [smem:[#allocation82_spill]] %s8269_s16 }
   0xf   :  { %8396 = sst [smem:[#allocation83_spill]] %s8270_s17 }
  0x10   :  { %8397 = sst [smem:[#allocation84_spill]] %s8272_s19 }
  0x11   :  { %8398 = sst [smem:[#allocation85_spill]] %s8273_s20 }
  0x12   :  { %25 = vsyncpa [#allocation4], 0 }
  0x13   :  { %27 = vsyncpa [#allocation4 + $0x1], 0 }
  0x14   :  { %28 = vsyncpa [#allocation7], 0 }
  0x15   :  { %30 = vsyncpa [#allocation7 + $0x1], 0 }
  0x16   :  { %31 = vsyncpa [#allocation10], 0 }
  0x17   :  { %32 = vsyncpa [#allocation13], 0 }
  0x18   :  { %33 = vsyncpa [#allocation16], 0 }
  0x19   :  { %34 = vsyncpa [#allocation19], 0 }
  0x1a   :  { %35 = vsyncpa [#allocation5], 0 }
  0x1b   :  { %37 = vsyncpa [#allocation5 + $0x1], 0  ;;  %s6822_s1 = smov 0   ;;  %s6824_s22 = smov 0  }
  0x1c   :  { %s6826_s23 = smov 0   ;;  %s6828_s24 = smov 0  }
  0x1d LB: > { %8399 = sst [smem:[#allocation29_spill]] %s6686_s1  ;;  %s6846_s27 = sadd.s32 4294967295, %s6698_s24   ;;  %s6698_s24 = sphi %s6828_s24, %s8559_s24   ;;  %s6694_s23 = sphi %s6826_s23, %s8561_s23   ;;  %s6690_s22 = sphi %s6824_s22, %s8563_s22   ;;  %s6686_s1 = sphi %s6822_s1, %s8562_s1  }
  0x1e   : > { %8400 = sst [smem:[#allocation30_spill]] %s6694_s23  ;;  %p4748_p0 = scmp.ge.s32.totalorder %s6698_s24, 1 }
  0x1f   : > { %s8401_s3 = sld [smem:[#allocation73_spill]]  ;;  %p8289_p1 = scmp.eq.s32.totalorder %s6846_s27, 0 }
  0x20   : > { %p514_p2 = scmp.lt.s32.totalorder %s6698_s24, 3  ;;  %s6700_s4 = smov [#allocation9]  }
  0x21   : > { %s527_s29 = sshll.u32 %s6700_s4, 4  ;;  %s8403_s6 = sld [smem:[#allocation75_spill]]  ;;  %s528_s29 = int_to_ptr.vmem [resolvable:$true] %s527_s29 }
  0x22   : > { %p6851_p3 = pnand %p4748_p0, %p514_p2  ;;  %s6701_s25 = smov [#allocation12]  }
  0x23   : > { %s8278_s4 = smov 64   ;;  %s8280_s19 = smov 4  }
  0x24   : > { %p5907_p4 = pneg %p6851_p3  ;;  %s6704_s30 = smov 256  }
  0x25   : > { %s525_s26 = sshll.u32 %s8401_s3, 4  ;;  %s553_s3 = sshll.u32 %s6701_s25, 4  ;;  %s526_s26 = int_to_ptr.hbm [resolvable:$true] %s525_s26  ;;  %s554_s3 = int_to_ptr.vmem [resolvable:$true] %s553_s3 }
  0x26   : > { %p6863_p6 = pnand %p5907_p4, %p8289_p1  ;;  %s6705_s0 = smov 16  }
  0x27   : > { %s551_s21 = sshll.u32 %s8403_s6, 4  ;;  %s8405_s11 = sld [smem:[#allocation78_spill]]  ;;  %s552_s21 = int_to_ptr.hbm [resolvable:$true] %s551_s21 }
  0x28   : > { %5910 = dma.hbm_to_vmem [thread:$0]  (!%p6863_p6), %s526_s26, 1024, %s528_s29, [#allocation10], %s8278_s4, %s8278_s4, %s8280_s19  }
  0x29   : > { %5916 = dma.hbm_to_vmem [thread:$0]  (!%p6863_p6), %s552_s21, 4096, %s554_s3, [#allocation13], %s6704_s30, %s6704_s30, %s6705_s0  }
  0x2a   : > { %s6706_s17 = smov [#allocation15]   ;;  %s8406_s16 = sld [smem:[#allocation82_spill]] }
  0x2b   : > { %s590_s26 = sshll.u32 %s6706_s17, 4  ;;  %s6707_s6 = smov [#allocation18]   ;;  %s591_s26 = int_to_ptr.vmem [resolvable:$true] %s590_s26 }
  0x2c   : > { %s627_s20 = sshll.u32 %s6707_s6, 4  ;;  %s8407_s21 = smov 4   ;;  %s628_s20 = int_to_ptr.vmem [resolvable:$true] %s627_s20 }
  0x2d   : > { %s588_s25 = sshll.u32 %s8405_s11, 4  ;;  %s8408_s17 = smov 64   ;;  %s589_s25 = int_to_ptr.hbm [resolvable:$true] %s588_s25 }
  0x2e   : > { %5922 = dma.hbm_to_vmem [thread:$0]  (!%p6863_p6), %s589_s25, 4096, %s591_s26, [#allocation16], %s6704_s30, %s6704_s30, %s6705_s0  }
  0x2f   : > { %s4747_s3 = sadd.s32 4294967294, %s6698_s24   ;;  %s6889_s11 = sadd.s32 1, %s6698_s24  }
  0x30   : > { %s625_s19 = sshll.u32 %s8406_s16, 4  ;;  %8409 = sst [smem:[#allocation31_spill]] %s6889_s11  ;;  %s626_s19 = int_to_ptr.hbm [resolvable:$true] %s625_s19 }
  0x31   : > { %5928 = dma.hbm_to_vmem [thread:$0]  (!%p6863_p6), %s626_s19, 1024, %s628_s20, [#allocation19], %s8408_s17, %s8408_s17, %s8407_s21  }
  0x32   : > { %s47_s4 = ssub.s32 %s6698_s24, %s6889_s11  ;;  %s50_s30 = sadd.s32 1, %s6694_s23 }
  0x33   : > { %p48_p7 = scmp.eq.s32.totalorder %s47_s4, 0  ;;  %p57_p8 = scmp.ne.s32.totalorder %s6694_s23, %s6690_s22 }
  0x34   : > { %p58_p9 = scmp.eq.s32.totalorder %s6698_s24, 0  ;;  %p63_p10 = scmp.ne.s32.totalorder %s6690_s22, %s6686_s1 }
  0x35   : > { %s6900_s0 = scalar_select %p48_p7, %s6694_s23, %s50_s30  }
  0x36   : > { %p59_p11 = por %p58_p9, %p57_p8  ;;  %p6904_p12 = por %p8289_p1, %p63_p10 }
  0x37   : > { %8410 = sst [smem:[#allocation32_spill]] %s6900_s0  ;;  %p501_p13 = scmp.eq.s32.totalorder %s6846_s27, 1 }
  0x38   : > { %p507_p0 = scmp.eq.s32.totalorder %s4747_s3, 1  ;;  %p5954_p2 = scmp.lt.s32.totalorder %s6698_s24, 2 }
  0x39   : > { %s6911_s19 = sand.u32 1, %s6694_s23   ;;  %p6913_p4 = por %p501_p13, %p57_p8 }
  0x3a   : > { %p6917_p5 = por %p507_p0, %p63_p10  ;;  %p6921_p7 = pnand %p5954_p2, %p59_p11 }
  0x3b   : > { %s8412_s26 = scalar_select %p6913_p4, 1, 0 }
  0x3c   : > { %s8414_s29 = scalar_select %p6917_p5, 1, 0 }
  0x3d   : > { %8413 = sst [smem:[#allocation33_spill]] %s8412_s26  ;;  %s683_s20 = sand.u32 1, %s6698_s24  }
  0x3e   : > { %8415 = sst [smem:[#allocation34_spill]] %s8414_s29  ;;  %s5864_s3 = smul.u32 192, %s6911_s19 }
  0x3f   : > { %s5865_s4 = smul.u32 192, %s6698_s24  ;;  %s8417_s0 = sld [smem:[#allocation70_spill]] }
  0x40   : > { %s687_s11 = scalar_lea.vmem [#allocation6], %s5864_s3  ;;  %s6931_s15 = scalar_lea.sflag [#allocation7], %s683_s20 }
  0x41   : > { %s695_s1 = sshll.u32 %s687_s11, 4  ;;  %p6406_p9 = pneg %p6921_p7  ;;  %s696_s1 = int_to_ptr.vmem [resolvable:$true] %s695_s1 }
  0x45   : > { %s692_s23 = scalar_lea.hbm %s8417_s0, %s5865_s4  ;;  %s6409_s3 = scalar_lea.hbm %s8417_s0, 384 }
  0x46   : > { %s693_s26 = sshll.u32 %s692_s23, 4  ;;  %s694_s26 = int_to_ptr.hbm [resolvable:$true] %s693_s26 }
  0x47   : > { %s6402_s29 = sshra.s32 %s694_s26, 4  ;;  %s6403_s29 = int_to_ptr.hbm [resolvable:$true] %s6402_s29 }
  0x48   : > { %s6404_s14 = scalar_lea.hbm %s6403_s29, 192  ;;  %p6410_p13 = scmp.lt.s32.totalorder %s6403_s29, %s8417_s0 }
  0x49   : > { %p6405_p8 = scmp.ne.s32.totalorder %s6403_s29, %s6404_s14  ;;  %p6411_p0 = scmp.lt.s32.totalorder %s6409_s3, %s6404_s14 }
  0x4b   : > { %p6407_p10 = pnand %p6406_p9, %p6405_p8  ;;  %p6412_p2 = por %p6411_p0, %p6410_p13 }
  0x4d   : > { %p6408_p11 = pneg %p6407_p10 }
  0x4f   : > { %p6413_p1 = pnand %p6412_p2, %p6408_p11 }
  0x51   : > { %6416 = shalt.err (!%p6413_p1)
}
  0x52   : > { %s6708_s20 = smov 192   ;;  %s6709_s4 = smov 12  }
  0x53   : > { %5938 = dma.hbm_to_vmem [thread:$0]  (!%p6921_p7), %s694_s26, 3072, %s696_s1, %s6931_s15, %s6708_s20, %s6708_s20, %s6709_s4  }
  0x54   : > { %s8418_s5 = sld [smem:[#allocation74_spill]]  ;;  %s6710_s16 = smov [#allocation11]  }
  0x55   : > { %s542_s11 = sshll.u32 %s6710_s16, 4  ;;  %s8419_s7 = sld [smem:[#allocation76_spill]]  ;;  %s543_s11 = int_to_ptr.vmem [resolvable:$true] %s542_s11 }
  0x56   : > { %s6711_s23 = smov [#allocation14]   ;;  %s8291_s1 = smov 128  }
  0x57   : > { %s567_s0 = sshll.u32 %s6711_s23, 4  ;;  %s6713_s10 = smov 8   ;;  %s568_s0 = int_to_ptr.vmem [resolvable:$true] %s567_s0 }
  0x58   : > { %s602_s4 = sshll.u32 %s8265_s12, 4  ;;  %s6714_s30 = smov [#allocation17]   ;;  %s603_s4 = int_to_ptr.hbm [resolvable:$true] %s602_s4 }
  0x59   : > { %s642_s14 = sshll.u32 %s8271_s18, 4  ;;  %s5646_s23 = sshll.u32 %s6698_s24, 7  ;;  %s643_s14 = int_to_ptr.hbm [resolvable:$true] %s642_s14 }
  0x5a   : > { %s540_s13 = sshll.u32 %s8418_s5, 4  ;;  %s541_s13 = int_to_ptr.hbm [resolvable:$true] %s540_s13 }
  0x5b   : > { %s565_s3 = sshll.u32 %s8419_s7, 4  ;;  %s566_s3 = int_to_ptr.hbm [resolvable:$true] %s565_s3 }
  0x5c   : > { %5913 = dma.hbm_to_vmem [thread:$0]  (!%p6863_p6), %s541_s13, 16, %s543_s11, [#allocation10]  }
  0x5d   : > { %5919 = dma.hbm_to_vmem [thread:$0]  (!%p6863_p6), %s566_s3, 2048, %s568_s0, [#allocation13], %s8291_s1, %s8291_s1, %s6713_s10  }
  0x5e   : > { %s604_s13 = sshll.u32 %s6714_s30, 4  ;;  %s6715_s0 = smov [#allocation20]   ;;  %s605_s13 = int_to_ptr.vmem [resolvable:$true] %s604_s13 }
  0x5f   : > { %5925 = dma.hbm_to_vmem [thread:$0]  (!%p6863_p6), %s603_s4, 2048, %s605_s13, [#allocation16], %s8291_s1, %s8291_s1, %s6713_s10  }
  0x60   : > { %s644_s29 = sshll.u32 %s6715_s0, 4  ;;  %s4758_s3 = sshll.u32 %s6911_s19, 7  ;;  %s645_s29 = int_to_ptr.vmem [resolvable:$true] %s644_s29 }
  0x61   : > { %5931 = dma.hbm_to_vmem [thread:$0]  (!%p6863_p6), %s643_s14, 1024, %s645_s29, [#allocation19], %s8408_s17, %s8408_s17, %s8407_s21  }
  0x62   : > { %s8420_s30 = sld [smem:[#allocation69_spill]]  ;;  %s665_s11 = scalar_lea.vmem [#allocation3], %s4758_s3 }
  0x63   : > { %s673_s5 = sshll.u32 %s665_s11, 4  ;;  %s4762_s4 = sshll.u32 %s6911_s19, 6  ;;  %s674_s5 = int_to_ptr.vmem [resolvable:$true] %s673_s5 }
  0x64   : > { %s662_s13 = scalar_lea.sflag [#allocation4], %s6911_s19 }
  0x68   : > { %s670_s16 = scalar_lea.hbm %s8420_s30, %s5646_s23  ;;  %s6559_s29 = scalar_lea.hbm %s8420_s30, 256 }
  0x69   : > { %s671_s7 = sshll.u32 %s670_s16, 4  ;;  %s672_s7 = int_to_ptr.hbm [resolvable:$true] %s671_s7 }
  0x6a   : > { %s6552_s0 = sshra.s32 %s672_s7, 4  ;;  %s6553_s0 = int_to_ptr.hbm [resolvable:$true] %s6552_s0 }
  0x6b   : > { %s6554_s1 = scalar_lea.hbm %s6553_s0, 128  ;;  %p6560_p10 = scmp.lt.s32.totalorder %s6553_s0, %s8420_s30 }
  0x6c   : > { %p6555_p1 = scmp.ne.s32.totalorder %s6553_s0, %s6554_s1  ;;  %p6561_p11 = scmp.lt.s32.totalorder %s6559_s29, %s6554_s1 }
  0x6e   : > { %p6557_p8 = pnand %p6555_p1, %p6406_p9  ;;  %p6562_p13 = por %p6561_p11, %p6560_p10 }
  0x70   : > { %p6558_p6 = pneg %p6557_p8 }
  0x72   : > { %p6563_p0 = pnand %p6562_p13, %p6558_p6 }
  0x74   : > { %6566 = shalt.err (!%p6563_p0)
}
  0x75   : > { %s8421_s19 = smov 128   ;;  %s5647_s26 = sshll.u32 %s6698_s24, 6 }
  0x76   : > { %5935 = dma.hbm_to_vmem [thread:$0]  (!%p6921_p7), %s672_s7, 2048, %s674_s5, %s662_s13, %s8421_s19, %s8421_s19, %s6713_s10  }
  0x77   : > { %s8422_s11 = sld [smem:[#allocation71_spill]]  ;;  %s709_s14 = scalar_lea.vmem [#allocation8], %s4762_s4 }
  0x78   : > { %s717_s23 = sshll.u32 %s709_s14, 4  ;;  %s718_s23 = int_to_ptr.vmem [resolvable:$true] %s717_s23 }
  0x7d   : > { %s714_s2 = scalar_lea.hbm %s8422_s11, %s5647_s26  ;;  %s6589_s7 = scalar_lea.hbm %s8422_s11, 128 }
  0x7e   : > { %s715_s0 = sshll.u32 %s714_s2, 4  ;;  %s716_s0 = int_to_ptr.hbm [resolvable:$true] %s715_s0 }
  0x7f   : > { %s6582_s1 = sshra.s32 %s716_s0, 4  ;;  %s6583_s1 = int_to_ptr.hbm [resolvable:$true] %s6582_s1 }
  0x80   : > { %s6584_s29 = scalar_lea.hbm %s6583_s1, 64  ;;  %p6590_p6 = scmp.lt.s32.totalorder %s6583_s1, %s8422_s11 }
  0x81   : > { %p6585_p2 = scmp.ne.s32.totalorder %s6583_s1, %s6584_s29  ;;  %p6591_p10 = scmp.lt.s32.totalorder %s6589_s7, %s6584_s29 }
  0x83   : > { %p6587_p1 = pnand %p6585_p2, %p6406_p9  ;;  %p6592_p11 = por %p6591_p10, %p6590_p6 }
  0x85   : > { %p6588_p8 = pneg %p6587_p1 }
  0x87   : > { %p6593_p13 = pnand %p6592_p11, %p6588_p8 }
  0x89   : > { %6596 = shalt.err (!%p6593_p13)
}
  0x8a   : > { %5941 = dma.hbm_to_vmem [thread:$0]  (!%p6921_p7), %s716_s0, 1024, %s718_s23, %s6931_s15, %s8408_s17, %s8408_s17, %s8407_s21  }
  0x8b   : > { %735 = sbr.rel (%p6851_p3) target bundleno = 2668 (0xa6c), region = 100 }
  0x90   : > { %s7019_s4 = sand.u32 1, %s6690_s22  }
  0x91   : > { %s4766_s19 = sshll.u32 %s7019_s4, 7  ;;  %s738_s26 = scalar_lea.sflag [#allocation4], %s7019_s4 }
  0x92   : > { %s7023_s20 = scalar_lea.vmem [#allocation3], %s4766_s19 }
  0x93   : > { %6657 = dma.done.wait (%p6904_p12), %s738_s26, 2048  }
  0x94   : > { %6659 = vsyncadd (%p6904_p12), %s738_s26, 4294965248  ;;  %s747_s15 = sand.u32 1, %s6846_s27   ;;  %s5866_s28 = smul.u32 192, %s7019_s4 }
  0x95   : > { %s748_s21 = scalar_lea.sflag [#allocation7], %s747_s15 }
  0x96   : > { %s7031_s17 = scalar_lea.vmem [#allocation6], %s5866_s28 }
  0x97   : > { %6661 = dma.done.wait (%p6904_p12), %s748_s21, 4096  }
  0x98   : > { %6663 = vsyncadd (%p6904_p12), %s748_s21, 4294963200  ;;  %s4767_s6 = sshll.u32 %s7019_s4, 6  ;;  %p8423_p3 = scmp.eq.s32.totalorder %s6846_s27, 0 }
  0x99   : > { %s7038_s16 = scalar_lea.vmem [#allocation8], %s4767_s6 }
  0x9a   : > { %6665 = dma.done.wait (%p8423_p3), [#allocation10], 1040   ;;  %p8424_p7 = pmov %p8423_p3 }
  0x9b   : > { %p8425_p9 = pmov %p8423_p3 }
  0x9c   : > { %6667 = vsyncadd (%p8424_p7), [#allocation10], 4294966256 }
  0x9d   : > { %6669 = dma.done.wait (%p8425_p9), [#allocation13], 6144   ;;  %p8426_p0 = pmov %p8423_p3 }
  0x9f   : > { %6671 = vsyncadd (%p8426_p0), [#allocation13], 4294961152  ;;  %p8427_p2 = pmov %p8426_p0 }
  0xa0   : > { %p8428_p12 = pmov %p8426_p0 }
  0xa1   : > { %6673 = dma.done.wait (%p8427_p2), [#allocation16], 6144  }
  0xa2   : > { %6675 = vsyncadd (%p8428_p12), [#allocation16], 4294961152  ;;  %p8429_p1 = pmov %p8426_p0 }
  0xa3   : > { %p8430_p8 = pmov %p8426_p0 }
  0xa4   : > { %6677 = dma.done.wait (%p8429_p1), [#allocation19], 2048  }
  0xa5   : > { %6679 = vsyncadd (%p8430_p8), [#allocation19], 4294965248  ;;  %v5655_v0 = vld [vmem:[#allocation9 + $0x38] sm:$0xff]  ;;  %v5654_v1 = vld [vmem:[#allocation9 + $0x30] sm:$0xff]  ;;  %s8479_s29 = sld [smem:[#allocation77_spill]]  ;;  %p872_p6 = scmp.lt.s32.totalorder %s6846_s27, 1 }
  0xa6   : > { %967 = vmatpush.bf16.msra.mxu0 %v5655_v0  ;;  %v5653_v2 = vld [vmem:[#allocation9 + $0x28] sm:$0xff]  ;;  %v5652_v3 = vld [vmem:[#allocation9 + $0x20] sm:$0xff]  ;;  %v5651_v4 = vld [vmem:[#allocation9 + $0x18] sm:$0xff]  ;;  %s8529_s7 = sld [smem:[#allocation79_spill]]  ;;  %s4776_s23 = sshll.u32 %s7019_s4, 3 }
  0xa7   : > { %v5650_v5 = vld [vmem:[#allocation9 + $0x10] sm:$0xff]  ;;  %v5649_v6 = vld [vmem:[#allocation9 + $0x8] sm:$0xff]  ;;  %v5648_v7 = vld [vmem:[#allocation9] sm:$0xff]  ;;  %s8534_s19 = sld [smem:[#allocation80_spill]]  ;;  %s5643_s0 = sshll.u32 %s6846_s27, 3 }
  0xa8   : > { %v875_v8 = vld [vmem:[%s7023_s20] sm:$0xff]  ;;  %v876_v9 = vld [vmem:[%s7023_s20 + $0x8] sm:$0xff]  ;;  %v877_v11 = vld [vmem:[%s7023_s20 + $0x10] sm:$0xff]  ;;  %s8539_s15 = sld [smem:[#allocation81_spill]]  ;;  %s871_s26 = scalar_lea.vmem [#allocation21], %s4776_s23 }
  0xa9   : > { %v891_v10 = vpack.c.bf16 %v876_v9, %v875_v8  ;;  %v878_v12 = vld [vmem:[%s7023_s20 + $0x18] sm:$0xff]  ;;  %v879_v14 = vld [vmem:[%s7023_s20 + $0x20] sm:$0xff]  ;;  %v880_v15 = vld [vmem:[%s7023_s20 + $0x28] sm:$0xff]  ;;  %s873_s28 = scalar_select %p872_p6, %s6846_s27, 1 }
  0xaa   : > { %968 = vmatpush.bf16.msra.mxu0 %v5654_v1  ;;  %v892_v13 = vpack.c.bf16 %v878_v12, %v877_v11  ;;  %v893_v16 = vpack.c.bf16 %v880_v15, %v879_v14  ;;  %v881_v17 = vld [vmem:[%s7023_s20 + $0x30] sm:$0xff]  ;;  %v882_v18 = vld [vmem:[%s7023_s20 + $0x38] sm:$0xff]  ;;  %v883_v20 = vld [vmem:[%s7023_s20 + $0x40] sm:$0xff]  ;;  %s8551_s6 = sld [smem:[#allocation72_spill]] }
  0xab   : > { %v894_v19 = vpack.c.bf16 %v882_v18, %v881_v17  ;;  %v884_v21 = vld [vmem:[%s7023_s20 + $0x48] sm:$0xff]  ;;  %v4924_v23 = vld [vmem:[#allocation12 + $0xe0] sm:$0xf]  ;;  %v5718_v24 = vld [vmem:[#allocation12 + $0xec] sm:$0xf0]  ;;  %s8552_s14 = sld [smem:[#allocation83_spill]] }
  0xac   : > { %v895_v22 = vpack.c.bf16 %v884_v21, %v883_v20  ;;  %v5716_v25 = vld [vmem:[#allocation12 + $0xe4] sm:$0xf]  ;;  %v4925_v26 = vor.u32 %v5718_v24, %v4924_v23  ;;  %v4926_v27 = vld [vmem:[#allocation12 + $0xf0] sm:$0xf0]  ;;  %v4932_v28 = vld [vmem:[#allocation12 + $0xe8] sm:$0xf] }
  0xad   : > { %v5719_v29 = vld [vmem:[#allocation12 + $0xf4] sm:$0xf0]  ;;  %v4929_v30 = vor.u32 %v5716_v25, %v4926_v27  ;;  %v5717_v32 = vld [vmem:[#allocation12 + $0xec] sm:$0xf]  ;;  %v4934_v33 = vld [vmem:[#allocation12 + $0xf8] sm:$0xf0] }
  0xae   : > { %969 = vmatpush.bf16.msra.mxu0 %v5653_v2  ;;  %v4933_v31 = vor.u32 %v5719_v29, %v4932_v28  ;;  %1285 = vmatpush.bf16.msra.mxu1 %v4925_v26  ;;  %v4937_v34 = vor.u32 %v5717_v32, %v4934_v33  ;;  %v885_v35 = vld [vmem:[%s7023_s20 + $0x50] sm:$0xff]  ;;  %v886_v36 = vld [vmem:[%s7023_s20 + $0x58] sm:$0xff]  ;;  %v4908_v38 = vld [vmem:[#allocation12 + $0xc0] sm:$0xf]  ;;  %s8553_s3 = sld [smem:[#allocation85_spill]] }
  0xaf   : > { %1334 = vmatpush.bf16.msra.mxu2 %v4929_v30  ;;  %v896_v37 = vpack.c.bf16 %v886_v36, %v885_v35  ;;  %v5714_v39 = vld [vmem:[#allocation12 + $0xcc] sm:$0xf0]  ;;  %v5712_v40 = vld [vmem:[#allocation12 + $0xc4] sm:$0xf]  ;;  %v4910_v42 = vld [vmem:[#allocation12 + $0xd0] sm:$0xf0] }
  0xb0   : > { %1383 = vmatpush.bf16.msra.mxu3 %v4933_v31  ;;  %v4909_v41 = vor.u32 %v5714_v39, %v4908_v38  ;;  %v4916_v43 = vld [vmem:[#allocation12 + $0xc8] sm:$0xf]  ;;  %v5715_v44 = vld [vmem:[#allocation12 + $0xd4] sm:$0xf0]  ;;  %v4913_v45 = vor.u32 %v5712_v40, %v4910_v42  ;;  %v5713_v47 = vld [vmem:[#allocation12 + $0xcc] sm:$0xf] }
  0xb1   : > { %v4917_v46 = vor.u32 %v5715_v44, %v4916_v43  ;;  %v4918_v48 = vld [vmem:[#allocation12 + $0xd8] sm:$0xf0]  ;;  %v4892_v49 = vld [vmem:[#allocation12 + $0xa0] sm:$0xf]  ;;  %v5710_v51 = vld [vmem:[#allocation12 + $0xac] sm:$0xf0] }
  0xb2   : > { %970 = vmatpush.bf16.msra.mxu0 %v5652_v3  ;;  %1286 = vmatpush.bf16.msra.mxu1 %v4909_v41  ;;  %v4921_v50 = vor.u32 %v5713_v47, %v4918_v48  ;;  %v5708_v52 = vld [vmem:[#allocation12 + $0xa4] sm:$0xf]  ;;  %v4894_v53 = vld [vmem:[#allocation12 + $0xb0] sm:$0xf0]  ;;  %v4893_v54 = vor.u32 %v5710_v51, %v4892_v49  ;;  %v4900_v56 = vld [vmem:[#allocation12 + $0xa8] sm:$0xf] }
  0xb3   : > { %1335 = vmatpush.bf16.msra.mxu2 %v4913_v45  ;;  %v4897_v55 = vor.u32 %v5708_v52, %v4894_v53  ;;  %v5711_v57 = vld [vmem:[#allocation12 + $0xb4] sm:$0xf0]  ;;  %v5709_v58 = vld [vmem:[#allocation12 + $0xac] sm:$0xf]  ;;  %v4902_v60 = vld [vmem:[#allocation12 + $0xb8] sm:$0xf0] }
  0xb4   : > { %1384 = vmatpush.bf16.msra.mxu3 %v4917_v46  ;;  %v4901_v59 = vor.u32 %v5711_v57, %v4900_v56  ;;  %v4876_v61 = vld [vmem:[#allocation12 + $0x80] sm:$0xf]  ;;  %v5706_v62 = vld [vmem:[#allocation12 + $0x8c] sm:$0xf0]  ;;  %v4905_v63 = vor.u32 %v5709_v58, %v4902_v60  ;;  %v5704_v0 = vld [vmem:[#allocation12 + $0x84] sm:$0xf]  ;;  %s4544_s5 = scalar_lea.hbm %s8553_s3, %s5643_s0 }
  0xb5   : > { %v4878_v1 = vld [vmem:[#allocation12 + $0x90] sm:$0xf0]  ;;  %v4884_v2 = vld [vmem:[#allocation12 + $0x88] sm:$0xf]  ;;  %v4877_v3 = vor.u32 %v5706_v62, %v4876_v61  ;;  %v4860_v12 = vld [vmem:[#allocation12 + $0x60] sm:$0xf] }
  0xb6   : > { %971 = vmatpush.bf16.msra.mxu0 %v5651_v4  ;;  %1287 = vmatpush.bf16.msra.mxu1 %v4893_v54  ;;  %v5707_v4 = vld [vmem:[#allocation12 + $0x94] sm:$0xf0]  ;;  %v888_v11 = vld [vmem:[%s7023_s20 + $0x68] sm:$0xff]  ;;  %v4870_v23 = vld [vmem:[#allocation12 + $0x78] sm:$0xf0]  ;;  %s8554_s13 = sld [smem:[#allocation84_spill]] }
  0xb7   : > { %1336 = vmatpush.bf16.msra.mxu2 %v4897_v55  ;;  %v4885_v8 = vor.u32 %v5707_v4, %v4884_v2  ;;  %v5700_v14 = vld [vmem:[#allocation12 + $0x64] sm:$0xf]  ;;  %v4868_v17 = vld [vmem:[#allocation12 + $0x68] sm:$0xf]  ;;  %v5703_v18 = vld [vmem:[#allocation12 + $0x74] sm:$0xf0] }
  0xb8   : > { %1385 = vmatpush.bf16.msra.mxu3 %v4901_v59  ;;  %v4869_v21 = vor.u32 %v5703_v18, %v4868_v17  ;;  %v4844_v25 = vld [vmem:[#allocation12 + $0x40] sm:$0xf]  ;;  %v5698_v26 = vld [vmem:[#allocation12 + $0x4c] sm:$0xf0]  ;;  %v5696_v27 = vld [vmem:[#allocation12 + $0x44] sm:$0xf] }
  0xb9   : > { %v4845_v28 = vor.u32 %v5698_v26, %v4844_v25  ;;  %v4846_v29 = vld [vmem:[#allocation12 + $0x50] sm:$0xf0]  ;;  %v4852_v30 = vld [vmem:[#allocation12 + $0x48] sm:$0xf]  ;;  %v5699_v31 = vld [vmem:[#allocation12 + $0x54] sm:$0xf0] }
  0xba   : > { %972 = vmatpush.bf16.msra.mxu0 %v5650_v5  ;;  %v5705_v5 = vld [vmem:[#allocation12 + $0x8c] sm:$0xf]  ;;  %1288 = vmatpush.bf16.msra.mxu1 %v4877_v3  ;;  %v4849_v32 = vor.u32 %v5696_v27, %v4846_v29  ;;  %v4853_v33 = vor.u32 %v5699_v31, %v4852_v30  ;;  %v4854_v35 = vld [vmem:[#allocation12 + $0x58] sm:$0xf0]  ;;  %v5694_v38 = vld [vmem:[#allocation12 + $0x2c] sm:$0xf0] }
  0xbb   : > { %v5692_v39 = vld [vmem:[#allocation12 + $0x24] sm:$0xf]  ;;  %v4830_v41 = vld [vmem:[#allocation12 + $0x30] sm:$0xf0]  ;;  %v4836_v42 = vld [vmem:[#allocation12 + $0x28] sm:$0xf] }
  0xbc   : > { %1386 = vmatpush.bf16.msra.mxu3 %v4885_v8  ;;  %v5695_v43 = vld [vmem:[#allocation12 + $0x34] sm:$0xf0]  ;;  %v4833_v44 = vor.u32 %v5692_v39, %v4830_v41  ;;  %v5693_v46 = vld [vmem:[#allocation12 + $0x2c] sm:$0xf]  ;;  %v4838_v47 = vld [vmem:[#allocation12 + $0x38] sm:$0xf0] }
  0xbd   : > { %v4837_v45 = vor.u32 %v5695_v43, %v4836_v42  ;;  %v4841_v48 = vor.u32 %v5693_v46, %v4838_v47  ;;  %v4812_v49 = vld [vmem:[#allocation12] sm:$0xf]  ;;  %v5688_v51 = vld [vmem:[#allocation12 + $0x4] sm:$0xf]  ;;  %v4814_v53 = vld [vmem:[#allocation12 + $0x10] sm:$0xf0] }
  0xbe   : > { %973 = vmatpush.bf16.msra.mxu0 %v5649_v6  ;;  %v4886_v6 = vld [vmem:[#allocation12 + $0x98] sm:$0xf0]  ;;  %v4820_v54 = vld [vmem:[#allocation12 + $0x8] sm:$0xf]  ;;  %v5691_v55 = vld [vmem:[#allocation12 + $0x14] sm:$0xf0]  ;;  %v4817_v56 = vor.u32 %v5688_v51, %v4814_v53 }
  0xbf   : > { %v4889_v9 = vor.u32 %v5705_v5, %v4886_v6  ;;  %v4821_v57 = vor.u32 %v5691_v55, %v4820_v54  ;;  %v5689_v58 = vld [vmem:[#allocation12 + $0xc] sm:$0xf]  ;;  %v4822_v59 = vld [vmem:[#allocation12 + $0x18] sm:$0xf0] }
  0xc0   : > { %1387 = vmatpush.bf16.msra.mxu3 %v4869_v21  ;;  %v889_v60 = vld [vmem:[%s7023_s20 + $0x70] sm:$0xff]  ;;  %v890_v61 = vld [vmem:[%s7023_s20 + $0x78] sm:$0xff]  ;;  %v4825_v62 = vor.u32 %v5689_v58, %v4822_v59 }
  0xc2   : > { %974 = vmatpush.bf16.msra.mxu0 %v5648_v7  ;;  %v4881_v7 = vor.u32 %v5704_v0, %v4878_v1  ;;  %v7072_v1 = vld [vmem:[#allocation11] ss:$0 sm:$0xff] }
  0xc4   : > { %1337 = vmatpush.bf16.msra.mxu2 %v4881_v7  ;;  %1388 = vmatpush.bf16.msra.mxu3 %v4853_v33 }
  0xc5   : > { %975 = vmatmul.bf16.vlgmr.msra.gmra.mxu0 %v891_v10  ;;  %v887_v10 = vld [vmem:[%s7023_s20 + $0x60] sm:$0xff]  ;;  %s4546_s20 = sshll.u32 %s871_s26, 4  ;;  %s4547_s20 = int_to_ptr.vmem [resolvable:$true] %s4546_s20 }
  0xc6   : > { %1432 = vmatpush.bf16.msrb.mxu0 %v4937_v34  ;;  %v5697_v34 = vld [vmem:[#allocation12 + $0x4c] sm:$0xf] }
  0xc7   : > { %v4857_v36 = vor.u32 %v5697_v34, %v4854_v35 }
  0xc8   : > { %1389 = vmatpush.bf16.msra.mxu3 %v4837_v45 }
  0xca   : > { %1433 = vmatpush.bf16.msrb.mxu0 %v4921_v50  ;;  %v5690_v50 = vld [vmem:[#allocation12 + $0xc] sm:$0xf0] }
  0xcb   : > { %v4813_v52 = vor.u32 %v5690_v50, %v4812_v49 }
  0xcc   : > { %1390 = vmatpush.bf16.msra.mxu3 %v4821_v57 }
  0xce   : > { %1434 = vmatpush.bf16.msrb.mxu0 %v4905_v63  ;;  %v898_v63 = vpack.c.bf16 %v890_v61, %v889_v60 }
  0xd2   : > { %1435 = vmatpush.bf16.msrb.mxu0 %v4889_v9 }
  0xd5   : > { %980 = vmatmul.bf16.gmra.mxu0 %v892_v13  ;;  %v5702_v13 = vld [vmem:[#allocation12 + $0x6c] sm:$0xf0] }
  0xd6   : > { %v4861_v15 = vor.u32 %v5702_v13, %v4860_v12 }
  0xd8   : > { %1289 = vmatpush.bf16.msra.mxu1 %v4861_v15 }
  0xdc   : > { %1290 = vmatpush.bf16.msra.mxu1 %v4845_v28 }
  0xe5   : > { %985 = vmatmul.bf16.gmra.mxu0 %v893_v16  ;;  %v4862_v16 = vld [vmem:[#allocation12 + $0x70] sm:$0xf0] }
  0xe6   : > { %v4865_v20 = vor.u32 %v5700_v14, %v4862_v16 }
  0xe8   : > { %1338 = vmatpush.bf16.msra.mxu2 %v4865_v20 }
  0xec   : > { %1339 = vmatpush.bf16.msra.mxu2 %v4849_v32 }
  0xf0   : > { %1340 = vmatpush.bf16.msra.mxu2 %v4833_v44 }
  0xf4   : > { %1341 = vmatpush.bf16.msra.mxu2 %v4817_v56 }
  0xf5   : > { %990 = vmatmul.bf16.gmra.mxu0 %v894_v19  ;;  %v897_v19 = vpack.c.bf16 %v888_v11, %v887_v10 }
 0x105   : > { %995 = vmatmul.bf16.gmra.mxu0 %v895_v22  ;;  %v5701_v22 = vld [vmem:[#allocation12 + $0x6c] sm:$0xf] }
 0x106   : > { %v4873_v24 = vor.u32 %v5701_v22, %v4870_v23 }
 0x108   : > { %1436 = vmatpush.bf16.msrb.mxu0 %v4873_v24 }
 0x10c   : > { %1437 = vmatpush.bf16.msrb.mxu0 %v4857_v36 }
 0x110   : > { %1438 = vmatpush.bf16.msrb.mxu0 %v4841_v48 }
 0x114   : > { %1439 = vmatpush.bf16.msrb.mxu0 %v4825_v62 }
 0x115   : > { %1000 = vmatmul.bf16.gmra.mxu0 %v896_v37  ;;  %v4828_v37 = vld [vmem:[#allocation12 + $0x20] sm:$0xf] }
 0x116   : > { %v4829_v40 = vor.u32 %v5694_v38, %v4828_v37 }
 0x118   : > { %1291 = vmatpush.bf16.msra.mxu1 %v4829_v40 }
 0x11c   : > { %1292 = vmatpush.bf16.msra.mxu1 %v4813_v52 }
 0x125   : > { %1005 = vmatmul.bf16.gmra.mxu0 %v897_v19 }
 0x135   : > { %1010 = vmatmul.bf16.gmra.mxu0 %v898_v63 }
 0x142   : > { %v976_v0 = vpop.f32.mrf.mxu0 }
 0x143   : > { %v7075_v2 = vadd.f32 %v7072_v1, %v976_v0 }
 0x145   : > { %v8307_v5 = vmax.f32 %v7075_v2, 0.0 }
 0x14a   : > { %v978_v3 = vpop.f32.mrf.mxu0 }
 0x14b   : > { %v7078_v4 = vadd.f32 %v7072_v1, %v978_v3 }
 0x14d   : > { %v8306_v6 = vmax.f32 %v7078_v4, 0.0 }
 0x14f   : > { %v1085_v7 = vpack.c.bf16 %v8306_v6, %v8307_v5 }
 0x151   : > { %1293 = vmatmul.bf16.vlgmr.msra.gmra.mxu1 %v1085_v7  ;;  %1342 = vmatmul.bf16.vlgmr.msra.gmra.mxu2 %v1085_v7 }
 0x152   : > { %1391 = vmatmul.bf16.vlgmr.msra.gmra.mxu3 %v1085_v7  ;;  %1440 = vmatmul.bf16.vlgmr.msrb.gmra.mxu0 %v1085_v7  ;;  %v981_v8 = vpop.f32.mrf.mxu0 }
 0x153   : > { %v7087_v9 = vadd.f32 %v7072_v1, %v981_v8 }
 0x155   : > { %v8305_v12 = vmax.f32 %v7087_v9, 0.0 }
 0x15a   : > { %v983_v10 = vpop.f32.mrf.mxu0 }
 0x15b   : > { %v7090_v11 = vadd.f32 %v7072_v1, %v983_v10 }
 0x15d   : > { %v8304_v13 = vmax.f32 %v7090_v11, 0.0 }
 0x15f   : > { %v1086_v14 = vpack.c.bf16 %v8304_v13, %v8305_v12 }
 0x161   : > { %1298 = vmatmul.bf16.gmra.mxu1 %v1086_v14  ;;  %1347 = vmatmul.bf16.gmra.mxu2 %v1086_v14 }
 0x162   : > { %1396 = vmatmul.bf16.gmra.mxu3 %v1086_v14  ;;  %1445 = vmatmul.bf16.gmra.mxu0 %v1086_v14  ;;  %v986_v15 = vpop.f32.mrf.mxu0 }
 0x163   : > { %v7099_v16 = vadd.f32 %v7072_v1, %v986_v15 }
 0x165   : > { %v8303_v19 = vmax.f32 %v7099_v16, 0.0 }
 0x16a   : > { %v988_v17 = vpop.f32.mrf.mxu0 }
 0x16b   : > { %v7102_v18 = vadd.f32 %v7072_v1, %v988_v17 }
 0x16d   : > { %v8302_v20 = vmax.f32 %v7102_v18, 0.0 }
 0x16f   : > { %v1087_v21 = vpack.c.bf16 %v8302_v20, %v8303_v19 }
 0x171   : > { %1303 = vmatmul.bf16.gmra.mxu1 %v1087_v21  ;;  %1352 = vmatmul.bf16.gmra.mxu2 %v1087_v21 }
 0x172   : > { %1401 = vmatmul.bf16.gmra.mxu3 %v1087_v21  ;;  %1450 = vmatmul.bf16.gmra.mxu0 %v1087_v21  ;;  %v991_v22 = vpop.f32.mrf.mxu0 }
 0x173   : > { %v7111_v23 = vadd.f32 %v7072_v1, %v991_v22 }
 0x175   : > { %8431 = vst [vmem:[#allocation35_spill] sm:$0xff] %v7111_v23  ;;  %v8301_v26 = vmax.f32 %v7111_v23, 0.0 }
 0x17a   : > { %v993_v24 = vpop.f32.mrf.mxu0 }
 0x17b   : > { %v7114_v25 = vadd.f32 %v7072_v1, %v993_v24 }
 0x17d   : > { %8432 = vst [vmem:[#allocation36_spill] sm:$0xff] %v7114_v25  ;;  %v8300_v27 = vmax.f32 %v7114_v25, 0.0 }
 0x17f   : > { %v1088_v28 = vpack.c.bf16 %v8300_v27, %v8301_v26 }
 0x181   : > { %1308 = vmatmul.bf16.gmra.mxu1 %v1088_v28  ;;  %1357 = vmatmul.bf16.gmra.mxu2 %v1088_v28 }
 0x182   : > { %1406 = vmatmul.bf16.gmra.mxu3 %v1088_v28  ;;  %1455 = vmatmul.bf16.gmra.mxu0 %v1088_v28  ;;  %v996_v29 = vpop.f32.mrf.mxu0 }
 0x183   : > { %v7123_v30 = vadd.f32 %v7072_v1, %v996_v29 }
 0x185   : > { %8433 = vst [vmem:[#allocation37_spill] sm:$0xff] %v7123_v30  ;;  %v8299_v33 = vmax.f32 %v7123_v30, 0.0 }
 0x18a   : > { %v998_v31 = vpop.f32.mrf.mxu0 }
 0x18b   : > { %v7126_v32 = vadd.f32 %v7072_v1, %v998_v31 }
 0x18d   : > { %8434 = vst [vmem:[#allocation38_spill] sm:$0xff] %v7126_v32  ;;  %v8298_v34 = vmax.f32 %v7126_v32, 0.0 }
 0x18f   : > { %v1089_v35 = vpack.c.bf16 %v8298_v34, %v8299_v33 }
 0x191   : > { %1313 = vmatmul.bf16.gmra.mxu1 %v1089_v35  ;;  %1362 = vmatmul.bf16.gmra.mxu2 %v1089_v35 }
 0x192   : > { %1411 = vmatmul.bf16.gmra.mxu3 %v1089_v35  ;;  %1460 = vmatmul.bf16.gmra.mxu0 %v1089_v35  ;;  %v1001_v36 = vpop.f32.mrf.mxu0 }
 0x193   : > { %v7135_v37 = vadd.f32 %v7072_v1, %v1001_v36 }
 0x195   : > { %8435 = vst [vmem:[#allocation39_spill] sm:$0xff] %v7135_v37  ;;  %v8297_v40 = vmax.f32 %v7135_v37, 0.0 }
 0x19a   : > { %v1003_v38 = vpop.f32.mrf.mxu0 }
 0x19b   : > { %v7138_v39 = vadd.f32 %v7072_v1, %v1003_v38 }
 0x19d   : > { %8436 = vst [vmem:[#allocation40_spill] sm:$0xff] %v7138_v39  ;;  %v8296_v41 = vmax.f32 %v7138_v39, 0.0 }
 0x19f   : > { %v1090_v42 = vpack.c.bf16 %v8296_v41, %v8297_v40 }
 0x1a1   : > { %1318 = vmatmul.bf16.gmra.mxu1 %v1090_v42  ;;  %1367 = vmatmul.bf16.gmra.mxu2 %v1090_v42 }
 0x1a2   : > { %1416 = vmatmul.bf16.gmra.mxu3 %v1090_v42  ;;  %1465 = vmatmul.bf16.gmra.mxu0 %v1090_v42  ;;  %v1006_v43 = vpop.f32.mrf.mxu0 }
 0x1a3   : > { %v7147_v44 = vadd.f32 %v7072_v1, %v1006_v43 }
 0x1a5   : > { %8437 = vst [vmem:[#allocation41_spill] sm:$0xff] %v7147_v44  ;;  %v8295_v47 = vmax.f32 %v7147_v44, 0.0 }
 0x1aa   : > { %v1008_v45 = vpop.f32.mrf.mxu0 }
 0x1ab   : > { %v7150_v46 = vadd.f32 %v7072_v1, %v1008_v45 }
 0x1ad   : > { %8438 = vst [vmem:[#allocation42_spill] sm:$0xff] %v7150_v46  ;;  %v8294_v48 = vmax.f32 %v7150_v46, 0.0 }
 0x1af   : > { %v1091_v49 = vpack.c.bf16 %v8294_v48, %v8295_v47  ;;  %v5014_v48 = vld [vmem:[%s7031_s17 + $0x9c] sm:$0xf0] }
 0x1b1   : > { %1323 = vmatmul.bf16.gmra.mxu1 %v1091_v49  ;;  %1372 = vmatmul.bf16.gmra.mxu2 %v1091_v49 }
 0x1b2   : > { %1421 = vmatmul.bf16.gmra.mxu3 %v1091_v49  ;;  %1470 = vmatmul.bf16.gmra.mxu0 %v1091_v49  ;;  %v1011_v50 = vpop.f32.mrf.mxu0 }
 0x1b3   : > { %v7159_v51 = vadd.f32 %v7072_v1, %v1011_v50 }
 0x1b5   : > { %8439 = vst [vmem:[#allocation43_spill] sm:$0xff] %v7159_v51  ;;  %v8293_v54 = vmax.f32 %v7159_v51, 0.0 }
 0x1ba   : > { %v1013_v52 = vpop.f32.mrf.mxu0 }
 0x1bb   : > { %v7162_v53 = vadd.f32 %v7072_v1, %v1013_v52 }
 0x1bd   : > { %8440 = vst [vmem:[#allocation44_spill] sm:$0xff] %v7162_v53  ;;  %v8292_v55 = vmax.f32 %v7162_v53, 0.0 }
 0x1bf   : > { %v1092_v56 = vpack.c.bf16 %v8292_v55, %v8293_v54 }
 0x1c1   : > { %1328 = vmatmul.bf16.gmra.mxu1 %v1092_v56  ;;  %1377 = vmatmul.bf16.gmra.mxu2 %v1092_v56 }
 0x1c2   : > { %1426 = vmatmul.bf16.gmra.mxu3 %v1092_v56  ;;  %1475 = vmatmul.bf16.gmra.mxu0 %v1092_v56 }
 0x1ce   : > { %v1294_v57 = vpop.f32.mrf.mxu1 }
 0x1cf   : > { %v1441_v58 = vpop.f32.mrf.mxu0 }
 0x1d4   : > { %v1343_v59 = vpop.f32.mrf.mxu2 }
 0x1d5   : > { %v1481_v60 = vpack.c.bf16 %v1343_v59, %v1294_v57  ;;  %v1392_v61 = vpop.f32.mrf.mxu3 }
 0x1d6   : > { %v1513_v62 = vpack.c.bf16 %v1441_v58, %v1392_v61  ;;  %v1296_v63 = vpop.f32.mrf.mxu1 }
 0x1d7   : > { %1497 = vst [vmem:[#allocation2] sm:$0xff] %v1481_v60  ;;  %v1443_v0 = vpop.f32.mrf.mxu0 }
 0x1d8   : > { %1529 = vst [vmem:[#allocation2 + $0x80] sm:$0xff] %v1513_v62 }
 0x1dc   : > { %v1345_v1 = vpop.f32.mrf.mxu2 }
 0x1dd   : > { %v1482_v3 = vpack.c.bf16 %v1345_v1, %v1296_v63  ;;  %v1394_v7 = vpop.f32.mrf.mxu3 }
 0x1de   : > { %v1514_v8 = vpack.c.bf16 %v1443_v0, %v1394_v7  ;;  %v1299_v10 = vpop.f32.mrf.mxu1 }
 0x1df   : > { %1498 = vst [vmem:[#allocation2 + $0x8] sm:$0xff] %v1482_v3  ;;  %v1446_v14 = vpop.f32.mrf.mxu0 }
 0x1e0   : > { %1530 = vst [vmem:[#allocation2 + $0x88] sm:$0xff] %v1514_v8 }
 0x1e4   : > { %v1348_v15 = vpop.f32.mrf.mxu2 }
 0x1e5   : > { %v1483_v17 = vpack.c.bf16 %v1348_v15, %v1299_v10  ;;  %v1397_v21 = vpop.f32.mrf.mxu3 }
 0x1e6   : > { %v1515_v22 = vpack.c.bf16 %v1446_v14, %v1397_v21  ;;  %v1301_v24 = vpop.f32.mrf.mxu1 }
 0x1e7   : > { %1499 = vst [vmem:[#allocation2 + $0x10] sm:$0xff] %v1483_v17  ;;  %v1448_v28 = vpop.f32.mrf.mxu0 }
 0x1e8   : > { %1531 = vst [vmem:[#allocation2 + $0x90] sm:$0xff] %v1515_v22 }
 0x1ec   : > { %v1350_v29 = vpop.f32.mrf.mxu2 }
 0x1ed   : > { %v1484_v31 = vpack.c.bf16 %v1350_v29, %v1301_v24  ;;  %v1399_v35 = vpop.f32.mrf.mxu3 }
 0x1ee   : > { %v1516_v36 = vpack.c.bf16 %v1448_v28, %v1399_v35  ;;  %v1304_v38 = vpop.f32.mrf.mxu1 }
 0x1ef   : > { %1500 = vst [vmem:[#allocation2 + $0x18] sm:$0xff] %v1484_v31  ;;  %v1451_v42 = vpop.f32.mrf.mxu0 }
 0x1f0   : > { %1532 = vst [vmem:[#allocation2 + $0x98] sm:$0xff] %v1516_v36 }
 0x1f4   : > { %v1353_v43 = vpop.f32.mrf.mxu2 }
 0x1f5   : > { %v1485_v45 = vpack.c.bf16 %v1353_v43, %v1304_v38  ;;  %v1402_v49 = vpop.f32.mrf.mxu3 }
 0x1f6   : > { %v1517_v50 = vpack.c.bf16 %v1451_v42, %v1402_v49  ;;  %v1306_v52 = vpop.f32.mrf.mxu1 }
 0x1f7   : > { %1501 = vst [vmem:[#allocation2 + $0x20] sm:$0xff] %v1485_v45  ;;  %v1453_v56 = vpop.f32.mrf.mxu0 }
 0x1f8   : > { %1533 = vst [vmem:[#allocation2 + $0xa0] sm:$0xff] %v1517_v50 }
 0x1fc   : > { %v1355_v57 = vpop.f32.mrf.mxu2 }
 0x1fd   : > { %v1486_v58 = vpack.c.bf16 %v1355_v57, %v1306_v52  ;;  %v1404_v59 = vpop.f32.mrf.mxu3 }
 0x1fe   : > { %v1518_v60 = vpack.c.bf16 %v1453_v56, %v1404_v59  ;;  %v1309_v61 = vpop.f32.mrf.mxu1 }
 0x1ff   : > { %1502 = vst [vmem:[#allocation2 + $0x28] sm:$0xff] %v1486_v58  ;;  %v1456_v62 = vpop.f32.mrf.mxu0 }
 0x200   : > { %1534 = vst [vmem:[#allocation2 + $0xa8] sm:$0xff] %v1518_v60 }
 0x204   : > { %v1358_v63 = vpop.f32.mrf.mxu2 }
 0x205   : > { %v1487_v0 = vpack.c.bf16 %v1358_v63, %v1309_v61  ;;  %v1407_v1 = vpop.f32.mrf.mxu3 }
 0x206   : > { %v1519_v3 = vpack.c.bf16 %v1456_v62, %v1407_v1  ;;  %v1311_v7 = vpop.f32.mrf.mxu1 }
 0x207   : > { %1503 = vst [vmem:[#allocation2 + $0x30] sm:$0xff] %v1487_v0  ;;  %v1458_v8 = vpop.f32.mrf.mxu0 }
 0x208   : > { %1535 = vst [vmem:[#allocation2 + $0xb0] sm:$0xff] %v1519_v3 }
 0x20c   : > { %v1360_v10 = vpop.f32.mrf.mxu2 }
 0x20d   : > { %v1488_v14 = vpack.c.bf16 %v1360_v10, %v1311_v7  ;;  %v1409_v15 = vpop.f32.mrf.mxu3  ;;  %v1559_v7 = vld [vmem:[#allocation14 + $0x70] sm:$0xff] }
 0x20e   : > { %v1520_v17 = vpack.c.bf16 %v1458_v8, %v1409_v15  ;;  %v1314_v21 = vpop.f32.mrf.mxu1  ;;  %v1560_v8 = vld [vmem:[#allocation14 + $0x78] sm:$0xff]  ;;  %1575 = vst [vmem:[#allocation2 + $0x170] sm:$0xff] %v1559_v7 }
 0x20f   : > { %1504 = vst [vmem:[#allocation2 + $0x38] sm:$0xff] %v1488_v14  ;;  %v1461_v22 = vpop.f32.mrf.mxu0 }
 0x210   : > { %1536 = vst [vmem:[#allocation2 + $0xb8] sm:$0xff] %v1520_v17  ;;  %v1557_v17 = vld [vmem:[#allocation14 + $0x60] sm:$0xff] }
 0x211   : > { %1576 = vst [vmem:[#allocation2 + $0x178] sm:$0xff] %v1560_v8 }
 0x212   : > { %1573 = vst [vmem:[#allocation2 + $0x160] sm:$0xff] %v1557_v17  ;;  %v1550_v17 = vld [vmem:[#allocation14 + $0x28] sm:$0xff] }
 0x213   : > { %1566 = vst [vmem:[#allocation2 + $0x128] sm:$0xff] %v1550_v17 }
 0x214   : > { %v1363_v24 = vpop.f32.mrf.mxu2 }
 0x215   : > { %v1489_v28 = vpack.c.bf16 %v1363_v24, %v1314_v21  ;;  %v1412_v29 = vpop.f32.mrf.mxu3 }
 0x216   : > { %v1521_v31 = vpack.c.bf16 %v1461_v22, %v1412_v29  ;;  %v1316_v35 = vpop.f32.mrf.mxu1  ;;  %v1558_v22 = vld [vmem:[#allocation14 + $0x68] sm:$0xff] }
 0x217   : > { %1505 = vst [vmem:[#allocation2 + $0x40] sm:$0xff] %v1489_v28  ;;  %v1463_v36 = vpop.f32.mrf.mxu0  ;;  %v5220_v29 = vld [vmem:[#allocation2 + $0x170] sm:$0xf] }
 0x218   : > { %1537 = vst [vmem:[#allocation2 + $0xc0] sm:$0xff] %v1521_v31  ;;  %v1555_v31 = vld [vmem:[#allocation14 + $0x50] sm:$0xff] }
 0x219   : > { %1574 = vst [vmem:[#allocation2 + $0x168] sm:$0xff] %v1558_v22 }
 0x21a   : > { %1571 = vst [vmem:[#allocation2 + $0x150] sm:$0xff] %v1555_v31 }
 0x21c   : > { %v1365_v38 = vpop.f32.mrf.mxu2 }
 0x21d   : > { %v1490_v42 = vpack.c.bf16 %v1365_v38, %v1316_v35  ;;  %v1414_v43 = vpop.f32.mrf.mxu3  ;;  %v1556_v35 = vld [vmem:[#allocation14 + $0x58] sm:$0xff] }
 0x21e   : > { %v1522_v45 = vpack.c.bf16 %v1463_v36, %v1414_v43  ;;  %v1319_v49 = vpop.f32.mrf.mxu1  ;;  %v5767_v36 = vld [vmem:[#allocation2 + $0x174] sm:$0xf0]  ;;  %1572 = vst [vmem:[#allocation2 + $0x158] sm:$0xff] %v1556_v35 }
 0x21f   : > { %1506 = vst [vmem:[#allocation2 + $0x48] sm:$0xff] %v1490_v42  ;;  %v1466_v50 = vpop.f32.mrf.mxu0  ;;  %v5221_v38 = vor.u32 %v5767_v36, %v5220_v29  ;;  %v1548_v29 = vld [vmem:[#allocation14 + $0x18] sm:$0xff] }
 0x220   : > { %1538 = vst [vmem:[#allocation2 + $0xc8] sm:$0xff] %v1522_v45 }
 0x221   : > { %2097 = vmatpush.bf16.msrb.mxu3 %v5221_v38  ;;  %1564 = vst [vmem:[#allocation2 + $0x118] sm:$0xff] %v1548_v29  ;;  %v4948_v29 = vld [vmem:[%s7031_s17 + $0x8] sm:$0xf] }
 0x224   : > { %v1368_v52 = vpop.f32.mrf.mxu2 }
 0x225   : > { %v1491_v56 = vpack.c.bf16 %v1368_v52, %v1319_v49  ;;  %v1417_v57 = vpop.f32.mrf.mxu3  ;;  %v1553_v49 = vld [vmem:[#allocation14 + $0x40] sm:$0xff] }
 0x226   : > { %v1523_v58 = vpack.c.bf16 %v1466_v50, %v1417_v57  ;;  %v1321_v59 = vpop.f32.mrf.mxu1  ;;  %v5212_v52 = vld [vmem:[#allocation2 + $0x160] sm:$0xf]  ;;  %1569 = vst [vmem:[#allocation2 + $0x140] sm:$0xff] %v1553_v49  ;;  %v5765_v57 = vld [vmem:[#allocation2 + $0x164] sm:$0xf0] }
 0x227   : > { %1507 = vst [vmem:[#allocation2 + $0x50] sm:$0xff] %v1491_v56  ;;  %v1468_v60 = vpop.f32.mrf.mxu0  ;;  %v1554_v56 = vld [vmem:[#allocation14 + $0x48] sm:$0xff]  ;;  %v1545_v49 = vld [vmem:[#allocation14] sm:$0xff] }
 0x228   : > { %1539 = vst [vmem:[#allocation2 + $0xd0] sm:$0xff] %v1523_v58  ;;  %v5213_v58 = vor.u32 %v5765_v57, %v5212_v52  ;;  %v5757_v57 = vld [vmem:[#allocation2 + $0x124] sm:$0xf0] }
 0x229   : > { %1570 = vst [vmem:[#allocation2 + $0x148] sm:$0xff] %v1554_v56  ;;  %v1546_v56 = vld [vmem:[#allocation14 + $0x8] sm:$0xff] }
 0x22a   : > { %2098 = vmatpush.bf16.msrb.mxu3 %v5213_v58  ;;  %1561 = vst [vmem:[#allocation2 + $0x100] sm:$0xff] %v1545_v49 }
 0x22b   : > { %1562 = vst [vmem:[#allocation2 + $0x108] sm:$0xff] %v1546_v56 }
 0x22c   : > { %v1370_v61 = vpop.f32.mrf.mxu2 }
 0x22d   : > { %v1492_v62 = vpack.c.bf16 %v1370_v61, %v1321_v59  ;;  %v1419_v63 = vpop.f32.mrf.mxu3  ;;  %v5204_v59 = vld [vmem:[#allocation2 + $0x150] sm:$0xf]  ;;  %v1552_v61 = vld [vmem:[#allocation14 + $0x38] sm:$0xff] }
 0x22e   : > { %v1524_v0 = vpack.c.bf16 %v1468_v60, %v1419_v63  ;;  %v1324_v1 = vpop.f32.mrf.mxu1  ;;  %v1551_v60 = vld [vmem:[#allocation14 + $0x30] sm:$0xff]  ;;  %1568 = vst [vmem:[#allocation2 + $0x138] sm:$0xff] %v1552_v61 }
 0x22f   : > { %1508 = vst [vmem:[#allocation2 + $0x58] sm:$0xff] %v1492_v62  ;;  %v1471_v3 = vpop.f32.mrf.mxu0  ;;  %v5763_v63 = vld [vmem:[#allocation2 + $0x154] sm:$0xf0] }
 0x230   : > { %1540 = vst [vmem:[#allocation2 + $0xd8] sm:$0xff] %v1524_v0 }
 0x231   : > { %1567 = vst [vmem:[#allocation2 + $0x130] sm:$0xff] %v1551_v60  ;;  %v5755_v60 = vld [vmem:[#allocation2 + $0x114] sm:$0xf0] }
 0x234   : > { %v1373_v10 = vpop.f32.mrf.mxu2 }
 0x235   : > { %v1493_v14 = vpack.c.bf16 %v1373_v10, %v1324_v1  ;;  %v1422_v15 = vpop.f32.mrf.mxu3  ;;  %v5205_v1 = vor.u32 %v5763_v63, %v5204_v59  ;;  %v1549_v10 = vld [vmem:[#allocation14 + $0x20] sm:$0xff]  ;;  %v5759_v31 = vld [vmem:[#allocation2 + $0x134] sm:$0xf0] }
 0x236   : > { %v1525_v21 = vpack.c.bf16 %v1471_v3, %v1422_v15  ;;  %v1326_v24 = vpop.f32.mrf.mxu1  ;;  %v5196_v15 = vld [vmem:[#allocation2 + $0x140] sm:$0xf]  ;;  %1565 = vst [vmem:[#allocation2 + $0x120] sm:$0xff] %v1549_v10 }
 0x237   : > { %1509 = vst [vmem:[#allocation2 + $0x60] sm:$0xff] %v1493_v14  ;;  %v1473_v28 = vpop.f32.mrf.mxu0  ;;  %2099 = vmatpush.bf16.msrb.mxu3 %v5205_v1  ;;  %v5747_v56 = vld [vmem:[#allocation2 + $0xd4] sm:$0xf0] }
 0x238   : > { %1541 = vst [vmem:[#allocation2 + $0xe0] sm:$0xff] %v1525_v21  ;;  %v5761_v21 = vld [vmem:[#allocation2 + $0x144] sm:$0xf0] }
 0x239   : > { %v5197_v22 = vor.u32 %v5761_v21, %v5196_v15 }
 0x23b   : > { %2100 = vmatpush.bf16.msrb.mxu3 %v5197_v22  ;;  %v5753_v22 = vld [vmem:[#allocation2 + $0x104] sm:$0xf0] }
 0x23c   : > { %v1375_v42 = vpop.f32.mrf.mxu2 }
 0x23d   : > { %v1494_v43 = vpack.c.bf16 %v1375_v42, %v1326_v24  ;;  %v1424_v45 = vpop.f32.mrf.mxu3  ;;  %v5188_v24 = vld [vmem:[#allocation2 + $0x130] sm:$0xf]  ;;  %v5180_v52 = vld [vmem:[#allocation2 + $0x120] sm:$0xf] }
 0x23e   : > { %v1526_v50 = vpack.c.bf16 %v1473_v28, %v1424_v45  ;;  %v1329_v62 = vpop.f32.mrf.mxu1  ;;  %v1547_v28 = vld [vmem:[#allocation14 + $0x10] sm:$0xff]  ;;  %v5189_v35 = vor.u32 %v5759_v31, %v5188_v24  ;;  %v5181_v58 = vor.u32 %v5757_v57, %v5180_v52  ;;  %v5078_v52 = vld [vmem:[#allocation2 + $0x58] sm:$0xf0] }
 0x23f   : > { %1510 = vst [vmem:[#allocation2 + $0x68] sm:$0xff] %v1494_v43  ;;  %v1476_v0 = vpop.f32.mrf.mxu0  ;;  %v5658_v31 = vld [vmem:[%s7031_s17 + $0x10] sm:$0xf0]  ;;  %v5076_v57 = vld [vmem:[#allocation2 + $0x50] sm:$0xf] }
 0x240   : > { %1542 = vst [vmem:[#allocation2 + $0xe8] sm:$0xff] %v1526_v50  ;;  %2101 = vmatpush.bf16.msrb.mxu3 %v5189_v35  ;;  %v5084_v35 = vld [vmem:[#allocation2 + $0x60] sm:$0xf] }
 0x241   : > { %1563 = vst [vmem:[#allocation2 + $0x110] sm:$0xff] %v1547_v28 }
 0x244   : > { %v1378_v3 = vpop.f32.mrf.mxu2  ;;  %2102 = vmatpush.bf16.msrb.mxu3 %v5181_v58  ;;  %v5730_v58 = vld [vmem:[#allocation2 + $0x54] sm:$0xf] }
 0x245   : > { %v1495_v7 = vpack.c.bf16 %v1378_v3, %v1329_v62  ;;  %v1427_v8 = vpop.f32.mrf.mxu3  ;;  %v5164_v3 = vld [vmem:[#allocation2 + $0x100] sm:$0xf] }
 0x246   : > { %v1527_v14 = vpack.c.bf16 %v1476_v0, %v1427_v8  ;;  %v1331_v36 = vpop.f32.mrf.mxu1  ;;  %v5733_v17 = vld [vmem:[#allocation2 + $0x64] sm:$0xf0]  ;;  %v5086_v21 = vld [vmem:[#allocation2 + $0x68] sm:$0xf0]  ;;  %v5165_v28 = vor.u32 %v5753_v22, %v5164_v3  ;;  %v5068_v3 = vld [vmem:[#allocation2 + $0x40] sm:$0xf] }
 0x247   : > { %1511 = vst [vmem:[#allocation2 + $0x70] sm:$0xff] %v1495_v7  ;;  %v1478_v42 = vpop.f32.mrf.mxu0  ;;  %v5749_v24 = vld [vmem:[#allocation2 + $0xe4] sm:$0xf0]  ;;  %v5743_v22 = vld [vmem:[#allocation2 + $0xb4] sm:$0xf0] }
 0x248   : > { %1543 = vst [vmem:[#allocation2 + $0xf0] sm:$0xff] %v1527_v14  ;;  %v5172_v59 = vld [vmem:[#allocation2 + $0x110] sm:$0xf] }
 0x249   : > { %v5173_v61 = vor.u32 %v5755_v60, %v5172_v59  ;;  %v5140_v60 = vld [vmem:[#allocation2 + $0xd0] sm:$0xf] }
 0x24b   : > { %2103 = vmatpush.bf16.msrb.mxu3 %v5173_v61  ;;  %v5081_v61 = vor.u32 %v5730_v58, %v5078_v52  ;;  %v5052_v52 = vld [vmem:[#allocation2 + $0x20] sm:$0xf] }
 0x24c   : > { %v1380_v38 = vpop.f32.mrf.mxu2 }
 0x24d   : > { %v1496_v43 = vpack.c.bf16 %v1380_v38, %v1331_v36  ;;  %v1429_v45 = vpop.f32.mrf.mxu3  ;;  %v5732_v36 = vld [vmem:[#allocation2 + $0x64] sm:$0xf]  ;;  %v7172_v38 = vor.u32 %v5658_v31, %v4948_v29  ;;  %v5124_v31 = vld [vmem:[#allocation2 + $0xb0] sm:$0xf] }
 0x24e   : > { %v1528_v50 = vpack.c.bf16 %v1478_v42, %v1429_v45  ;;  %v5092_v62 = vld [vmem:[#allocation2 + $0x70] sm:$0xf]  ;;  %v5734_v63 = vld [vmem:[#allocation2 + $0x74] sm:$0xf]  ;;  %v5085_v42 = vor.u32 %v5733_v17, %v5084_v35  ;;  %v5089_v45 = vor.u32 %v5732_v36, %v5086_v21  ;;  %v5727_v17 = vld [vmem:[#allocation2 + $0x34] sm:$0xf0] }
 0x24f   : > { %1512 = vst [vmem:[#allocation2 + $0x78] sm:$0xff] %v1496_v43  ;;  %v5156_v8 = vld [vmem:[#allocation2 + $0xf0] sm:$0xf]  ;;  %v5148_v43 = vld [vmem:[#allocation2 + $0xe0] sm:$0xf]  ;;  %2104 = vmatpush.bf16.msrb.mxu3 %v5165_v28 }
 0x250   : > { %1544 = vst [vmem:[#allocation2 + $0xf8] sm:$0xff] %v1528_v50  ;;  %v5149_v49 = vor.u32 %v5749_v24, %v5148_v43  ;;  %v5731_v50 = vld [vmem:[#allocation2 + $0x54] sm:$0xf0]  ;;  %v5062_v21 = vld [vmem:[#allocation2 + $0x38] sm:$0xf0] }
 0x251   : > { %8441 = vst [vmem:[#allocation45_spill] sm:$0xff] %v7172_v38  ;;  %v5077_v59 = vor.u32 %v5731_v50, %v5076_v57  ;;  %v5060_v24 = vld [vmem:[#allocation2 + $0x30] sm:$0xf]  ;;  %v5726_v28 = vld [vmem:[#allocation2 + $0x34] sm:$0xf] }
 0x252   : > { %2105 = vmatmul.bf16.vlgmr.msrb.gmra.mxu3 %v7172_v38  ;;  %v5061_v29 = vor.u32 %v5727_v17, %v5060_v24  ;;  %v5065_v35 = vor.u32 %v5726_v28, %v5062_v21  ;;  %v5725_v36 = vld [vmem:[#allocation2 + $0x24] sm:$0xf0]  ;;  %v5054_v43 = vld [vmem:[#allocation2 + $0x28] sm:$0xf0]  ;;  %v4940_v28 = vld [vmem:[%s7031_s17] sm:$0xf] }
 0x253   : > { %v5741_v50 = vld [vmem:[#allocation2 + $0xa4] sm:$0xf0]  ;;  %v5053_v58 = vor.u32 %v5725_v36, %v5052_v52  ;;  %v4942_v36 = vld [vmem:[%s7031_s17 + $0xc] sm:$0xf0] }
 0x254   : > { %v5721_v17 = vld [vmem:[#allocation2 + $0x4] sm:$0xf0] }
 0x255   : > { %v5737_v21 = vld [vmem:[#allocation2 + $0x84] sm:$0xf0] }
 0x256   : > { %v5735_v0 = vld [vmem:[#allocation2 + $0x74] sm:$0xf0]  ;;  %v5094_v1 = vld [vmem:[#allocation2 + $0x78] sm:$0xf0] }
 0x257   : > { %v5093_v7 = vor.u32 %v5735_v0, %v5092_v62  ;;  %v5751_v10 = vld [vmem:[#allocation2 + $0xf4] sm:$0xf0]  ;;  %v5097_v14 = vor.u32 %v5734_v63, %v5094_v1  ;;  %v5141_v62 = vor.u32 %v5747_v56, %v5140_v60  ;;  %v5729_v63 = vld [vmem:[#allocation2 + $0x44] sm:$0xf0]  ;;  %v5070_v0 = vld [vmem:[#allocation2 + $0x48] sm:$0xf0] }
 0x258   : > { %v5157_v15 = vor.u32 %v5751_v10, %v5156_v8  ;;  %v5745_v1 = vld [vmem:[#allocation2 + $0xc4] sm:$0xf0]  ;;  %v5069_v8 = vor.u32 %v5729_v63, %v5068_v3  ;;  %v5132_v10 = vld [vmem:[#allocation2 + $0xc0] sm:$0xf]  ;;  %v5724_v56 = vld [vmem:[#allocation2 + $0x24] sm:$0xf] }
 0x259   : > { %1999 = vmatpush.bf16.msrb.mxu1 %v5093_v7  ;;  %2146 = vmatpush.bf16.msra.mxu0 %v5097_v14  ;;  %v5728_v7 = vld [vmem:[#allocation2 + $0x44] sm:$0xf]  ;;  %v5057_v60 = vor.u32 %v5724_v56, %v5054_v43  ;;  %v5046_v63 = vld [vmem:[#allocation2 + $0x18] sm:$0xf0]  ;;  %v5722_v3 = vld [vmem:[#allocation2 + $0x14] sm:$0xf] }
 0x25a   : > { %2048 = vmatpush.bf16.msrb.mxu2 %v5157_v15  ;;  %v5073_v14 = vor.u32 %v5728_v7, %v5070_v0  ;;  %v5133_v15 = vor.u32 %v5745_v1, %v5132_v10  ;;  %v5739_v0 = vld [vmem:[#allocation2 + $0x94] sm:$0xf0]  ;;  %v5044_v1 = vld [vmem:[#allocation2 + $0x10] sm:$0xf]  ;;  %v5049_v10 = vor.u32 %v5722_v3, %v5046_v63  ;;  %v5158_v24 = vld [vmem:[#allocation2 + $0xf8] sm:$0xf0] }
 0x25b   : > { %v5100_v43 = vld [vmem:[#allocation2 + $0x80] sm:$0xf]  ;;  %v5664_v63 = vld [vmem:[%s7031_s17 + $0x40] sm:$0xf0]  ;;  %v5746_v3 = vld [vmem:[#allocation2 + $0xd4] sm:$0xf] }
 0x25d   : > { %2000 = vmatpush.bf16.msrb.mxu1 %v5085_v42  ;;  %2147 = vmatpush.bf16.msra.mxu0 %v5089_v45  ;;  %v5125_v42 = vor.u32 %v5743_v22, %v5124_v31  ;;  %v4960_v45 = vld [vmem:[%s7031_s17 + $0x20] sm:$0xf]  ;;  %v5038_v22 = vld [vmem:[#allocation2 + $0x8] sm:$0xf0]  ;;  %v5720_v31 = vld [vmem:[#allocation2 + $0x4] sm:$0xf] }
 0x25e   : > { %2049 = vmatpush.bf16.msrb.mxu2 %v5149_v49  ;;  %v5661_v49 = vld [vmem:[%s7031_s17 + $0x28] sm:$0xf0] }
 0x25f   : > { %v7177_v57 = vor.u32 %v5661_v49, %v4960_v45  ;;  %v5041_v45 = vor.u32 %v5720_v31, %v5038_v22  ;;  %v5750_v49 = vld [vmem:[#allocation2 + $0xf4] sm:$0xf]  ;;  %v5659_v22 = vld [vmem:[%s7031_s17 + $0x1c] sm:$0xf] }
 0x260   : > { %v5161_v52 = vor.u32 %v5750_v49, %v5158_v24  ;;  %v4954_v24 = vld [vmem:[%s7031_s17 + $0x24] sm:$0xf0]  ;;  %v5667_v49 = vld [vmem:[%s7031_s17 + $0x58] sm:$0xf0] }
 0x261   : > { %2001 = vmatpush.bf16.msrb.mxu1 %v5077_v59  ;;  %2148 = vmatpush.bf16.msra.mxu0 %v5081_v61  ;;  %8442 = vst [vmem:[#allocation46_spill] sm:$0xff] %v7177_v57  ;;  %v5116_v59 = vld [vmem:[#allocation2 + $0xa0] sm:$0xf] }
 0x262   : > { %2050 = vmatpush.bf16.msrb.mxu2 %v5141_v62  ;;  %v5117_v61 = vor.u32 %v5741_v50, %v5116_v59  ;;  %v5723_v62 = vld [vmem:[#allocation2 + $0x14] sm:$0xf0]  ;;  %2110 = vmatmul.bf16.gmra.mxu3 %v7177_v57  ;;  %v5101_v50 = vor.u32 %v5737_v21, %v5100_v43  ;;  %v5150_v59 = vld [vmem:[#allocation2 + $0xe8] sm:$0xf0]  ;;  %v5660_v21 = vld [vmem:[%s7031_s17 + $0x20] sm:$0xf0] }
 0x263   : > { %v5045_v7 = vor.u32 %v5723_v62, %v5044_v1  ;;  %v4972_v62 = vld [vmem:[%s7031_s17 + $0x38] sm:$0xf] }
 0x264   : > { %v7193_v1 = vor.u32 %v5664_v63, %v4972_v62  ;;  %v5736_v62 = vld [vmem:[#allocation2 + $0x84] sm:$0xf] }
 0x265   : > { %2002 = vmatpush.bf16.msrb.mxu1 %v5069_v8  ;;  %2149 = vmatpush.bf16.msra.mxu0 %v5073_v14  ;;  %v5108_v8 = vld [vmem:[#allocation2 + $0x90] sm:$0xf] }
 0x266   : > { %2051 = vmatpush.bf16.msrb.mxu2 %v5133_v15  ;;  %v5109_v14 = vor.u32 %v5739_v0, %v5108_v8  ;;  %v5036_v15 = vld [vmem:[#allocation2] sm:$0xf]  ;;  %v5142_v0 = vld [vmem:[#allocation2 + $0xd8] sm:$0xf0]  ;;  %8445 = vst [vmem:[#allocation49_spill] sm:$0xff] %v7193_v1 }
 0x267   : > { %v5134_v8 = vld [vmem:[#allocation2 + $0xc8] sm:$0xf0] }
 0x269   : > { %2003 = vmatpush.bf16.msrb.mxu1 %v5061_v29  ;;  %2150 = vmatpush.bf16.msra.mxu0 %v5065_v35  ;;  %v5657_v29 = vld [vmem:[%s7031_s17 + $0x8] sm:$0xf0]  ;;  %v5656_v35 = vld [vmem:[%s7031_s17 + $0x4] sm:$0xf] }
 0x26a   : > { %2052 = vmatpush.bf16.msrb.mxu2 %v5125_v42  ;;  %v5037_v42 = vor.u32 %v5721_v17, %v5036_v15  ;;  %v7184_v56 = vor.u32 %v5657_v29, %v4940_v28  ;;  %v5126_v15 = vld [vmem:[#allocation2 + $0xb8] sm:$0xf0]  ;;  %v4952_v17 = vld [vmem:[%s7031_s17 + $0x18] sm:$0xf]  ;;  %v5742_v28 = vld [vmem:[#allocation2 + $0xb4] sm:$0xf] }
 0x26b   : > { %v5129_v29 = vor.u32 %v5742_v28, %v5126_v15  ;;  %v7200_v31 = vor.u32 %v5660_v21, %v4952_v17  ;;  %v4996_v15 = vld [vmem:[%s7031_s17 + $0x68] sm:$0xf]  ;;  %v5670_v17 = vld [vmem:[%s7031_s17 + $0x70] sm:$0xf0]  ;;  %v5665_v28 = vld [vmem:[%s7031_s17 + $0x4c] sm:$0xf] }
 0x26c   : > { %8443 = vst [vmem:[#allocation47_spill] sm:$0xff] %v7184_v56  ;;  %v7225_v21 = vor.u32 %v5670_v17, %v4996_v15  ;;  %v5676_v15 = vld [vmem:[%s7031_s17 + $0xa0] sm:$0xf0]  ;;  %v3280_v17 = vld [vmem:[#allocation17 + $0x70] sm:$0xff] }
 0x26d   : > { %2004 = vmatpush.bf16.msrb.mxu1 %v5053_v58  ;;  %2151 = vmatpush.bf16.msra.mxu0 %v5057_v60  ;;  %v7186_v58 = vor.u32 %v5656_v35, %v4942_v36  ;;  %v5748_v60 = vld [vmem:[#allocation2 + $0xe4] sm:$0xf]  ;;  %8446 = vst [vmem:[#allocation50_spill] sm:$0xff] %v7200_v31  ;;  %v7202_v35 = vor.u32 %v5659_v22, %v4954_v24  ;;  %v5118_v36 = vld [vmem:[#allocation2 + $0xa8] sm:$0xf0] }
 0x26e   : > { %2053 = vmatpush.bf16.msrb.mxu2 %v5117_v61  ;;  %v5153_v61 = vor.u32 %v5748_v60, %v5150_v59  ;;  %v5738_v59 = vld [vmem:[#allocation2 + $0x94] sm:$0xf]  ;;  %8451 = vst [vmem:[#allocation55_spill] sm:$0xff] %v7225_v21  ;;  %v4976_v22 = vld [vmem:[%s7031_s17 + $0x48] sm:$0xf] }
 0x26f   : > { %8444 = vst [vmem:[#allocation48_spill] sm:$0xff] %v7186_v58  ;;  %v5666_v24 = vld [vmem:[%s7031_s17 + $0x50] sm:$0xf0] }
 0x270   : > { %8447 = vst [vmem:[#allocation51_spill] sm:$0xff] %v7202_v35 }
 0x271   : > { %2005 = vmatpush.bf16.msrb.mxu1 %v5045_v7  ;;  %2152 = vmatpush.bf16.msra.mxu0 %v5049_v10  ;;  %v5145_v7 = vor.u32 %v5746_v3, %v5142_v0  ;;  %v5744_v10 = vld [vmem:[#allocation2 + $0xc4] sm:$0xf]  ;;  %v4964_v0 = vld [vmem:[%s7031_s17 + $0x30] sm:$0xf]  ;;  %v5663_v3 = vld [vmem:[%s7031_s17 + $0x38] sm:$0xf0] }
 0x272   : > { %2054 = vmatpush.bf16.msrb.mxu2 %v5109_v14  ;;  %2115 = vmatmul.bf16.gmra.mxu3 %v7193_v1  ;;  %v5137_v14 = vor.u32 %v5744_v10, %v5134_v8  ;;  %v4966_v8 = vld [vmem:[%s7031_s17 + $0x3c] sm:$0xf0]  ;;  %v7216_v10 = vor.u32 %v5663_v3, %v4964_v0  ;;  %v5766_v0 = vld [vmem:[#allocation2 + $0x174] sm:$0xf]  ;;  %v5222_v3 = vld [vmem:[#allocation2 + $0x178] sm:$0xf0] }
 0x273   : > { %3296 = vst [vmem:[#allocation2 + $0x170] sm:$0xff] %v3280_v17  ;;  %v5198_v17 = vld [vmem:[#allocation2 + $0x148] sm:$0xf0] }
 0x274   : > { %8449 = vst [vmem:[#allocation53_spill] sm:$0xff] %v7216_v10 }
 0x275   : > { %2006 = vmatpush.bf16.msrb.mxu1 %v5037_v42  ;;  %2153 = vmatpush.bf16.msra.mxu0 %v5041_v45  ;;  %v5740_v42 = vld [vmem:[#allocation2 + $0xa4] sm:$0xf]  ;;  %v4984_v45 = vld [vmem:[%s7031_s17 + $0x50] sm:$0xf] }
 0x276   : > { %2055 = vmatpush.bf16.msrb.mxu2 %v5101_v50  ;;  %v5121_v43 = vor.u32 %v5740_v42, %v5118_v36  ;;  %v5110_v50 = vld [vmem:[#allocation2 + $0x98] sm:$0xf0]  ;;  %v7232_v36 = vor.u32 %v5666_v24, %v4976_v22  ;;  %v5764_v24 = vld [vmem:[#allocation2 + $0x164] sm:$0xf] }
 0x277   : > { %v5113_v60 = vor.u32 %v5738_v59, %v5110_v50  ;;  %v4988_v50 = vld [vmem:[%s7031_s17 + $0x60] sm:$0xf]  ;;  %v5669_v59 = vld [vmem:[%s7031_s17 + $0x68] sm:$0xf0] }
 0x278   : > { %2007 = vmatmul.bf16.vlgmr.msrb.gmra.mxu1 %v7184_v56  ;;  %2154 = vmatmul.bf16.vlgmr.msra.gmra.mxu0 %v7184_v56  ;;  %8452 = vst [vmem:[#allocation56_spill] sm:$0xff] %v7232_v36  ;;  %v3281_v22 = vld [vmem:[#allocation17 + $0x78] sm:$0xff] }
 0x279   : > { %2195 = vmatpush.bf16.msra.mxu1 %v5161_v52  ;;  %2056 = vmatmul.bf16.vlgmr.msrb.gmra.mxu2 %v7186_v58  ;;  %v7209_v52 = vor.u32 %v5667_v49, %v4984_v45  ;;  %v5673_v45 = vld [vmem:[%s7031_s17 + $0x88] sm:$0xf0]  ;;  %3297 = vst [vmem:[#allocation2 + $0x178] sm:$0xff] %v3281_v22  ;;  %v5000_v22 = vld [vmem:[%s7031_s17 + $0x78] sm:$0xf] }
 0x27b   : > { %8448 = vst [vmem:[#allocation52_spill] sm:$0xff] %v7209_v52 }
 0x27d   : > { %2196 = vmatpush.bf16.msra.mxu1 %v5153_v61  ;;  %v5102_v61 = vld [vmem:[#allocation2 + $0x88] sm:$0xf0] }
 0x27e   : > { %v5105_v63 = vor.u32 %v5736_v62, %v5102_v61  ;;  %v4990_v61 = vld [vmem:[%s7031_s17 + $0x6c] sm:$0xf0]  ;;  %v7248_v62 = vor.u32 %v5669_v59, %v4988_v50  ;;  %v5762_v59 = vld [vmem:[#allocation2 + $0x154] sm:$0xf] }
 0x280   : > { %8455 = vst [vmem:[#allocation59_spill] sm:$0xff] %v7248_v62 }
 0x281   : > { %2197 = vmatpush.bf16.msra.mxu1 %v5145_v7  ;;  %v5662_v7 = vld [vmem:[%s7031_s17 + $0x34] sm:$0xf] }
 0x282   : > { %2120 = vmatmul.bf16.gmra.mxu3 %v7209_v52 }
 0x285   : > { %2198 = vmatpush.bf16.msra.mxu1 %v5137_v14  ;;  %v7218_v14 = vor.u32 %v5662_v7, %v4966_v8  ;;  %v5225_v7 = vor.u32 %v5766_v0, %v5222_v3  ;;  %v5020_v8 = vld [vmem:[%s7031_s17 + $0x98] sm:$0xf]  ;;  %v3274_v3 = vld [vmem:[#allocation17 + $0x40] sm:$0xff] }
 0x286   : > { %v3277_v0 = vld [vmem:[#allocation17 + $0x58] sm:$0xff] }
 0x287   : > { %8450 = vst [vmem:[#allocation54_spill] sm:$0xff] %v7218_v14  ;;  %2244 = vmatpush.bf16.msra.mxu2 %v5225_v7 }
 0x288   : > { %2012 = vmatmul.bf16.gmra.mxu1 %v7200_v31  ;;  %2159 = vmatmul.bf16.gmra.mxu0 %v7200_v31 }
 0x289   : > { %2199 = vmatpush.bf16.msra.mxu1 %v5129_v29  ;;  %2061 = vmatmul.bf16.gmra.mxu2 %v7202_v35  ;;  %v4978_v29 = vld [vmem:[%s7031_s17 + $0x54] sm:$0xf0] }
 0x28a   : > { %v7234_v42 = vor.u32 %v5665_v28, %v4978_v29  ;;  %v7257_v28 = vor.u32 %v5676_v15, %v5020_v8  ;;  %v5214_v29 = vld [vmem:[#allocation2 + $0x168] sm:$0xf0]  ;;  %v5760_v15 = vld [vmem:[#allocation2 + $0x144] sm:$0xf] }
 0x28b   : > { %v5217_v50 = vor.u32 %v5764_v24, %v5214_v29  ;;  %v3275_v8 = vld [vmem:[#allocation17 + $0x48] sm:$0xff]  ;;  %3290 = vst [vmem:[#allocation2 + $0x140] sm:$0xff] %v3274_v3  ;;  %v5672_v24 = vld [vmem:[%s7031_s17 + $0x80] sm:$0xf0]  ;;  %v5671_v29 = vld [vmem:[%s7031_s17 + $0x7c] sm:$0xf] }
 0x28c   : > { %8453 = vst [vmem:[#allocation57_spill] sm:$0xff] %v7234_v42  ;;  %v7264_v55 = vor.u32 %v5672_v24, %v5000_v22  ;;  %v3272_v3 = vld [vmem:[#allocation17 + $0x30] sm:$0xff]  ;;  %v3270_v22 = vld [vmem:[#allocation17 + $0x20] sm:$0xff]  ;;  %v3271_v24 = vld [vmem:[#allocation17 + $0x28] sm:$0xff] }
 0x28d   : > { %2200 = vmatpush.bf16.msra.mxu1 %v5121_v43  ;;  %v5008_v43 = vld [vmem:[%s7031_s17 + $0x80] sm:$0xf]  ;;  %8457 = vst [vmem:[#allocation61_spill] sm:$0xff] %v7257_v28  ;;  %2245 = vmatpush.bf16.msra.mxu2 %v5217_v50  ;;  %v5758_v50 = vld [vmem:[#allocation2 + $0x134] sm:$0xf] }
 0x28e   : > { %v7241_v49 = vor.u32 %v5673_v45, %v5008_v43  ;;  %v3278_v43 = vld [vmem:[#allocation17 + $0x60] sm:$0xff]  ;;  %v3279_v45 = vld [vmem:[#allocation17 + $0x68] sm:$0xff]  ;;  %3291 = vst [vmem:[#allocation2 + $0x148] sm:$0xff] %v3275_v8  ;;  %v3273_v8 = vld [vmem:[#allocation17 + $0x38] sm:$0xff] }
 0x28f   : > { %3294 = vst [vmem:[#allocation2 + $0x160] sm:$0xff] %v3278_v43  ;;  %v5002_v43 = vld [vmem:[%s7031_s17 + $0x84] sm:$0xf0] }
 0x290   : > { %8454 = vst [vmem:[#allocation58_spill] sm:$0xff] %v7241_v49  ;;  %v7266_v54 = vor.u32 %v5671_v29, %v5002_v43  ;;  %v5754_v43 = vld [vmem:[#allocation2 + $0x114] sm:$0xf] }
 0x291   : > { %2201 = vmatpush.bf16.msra.mxu1 %v5113_v60  ;;  %v5668_v60 = vld [vmem:[%s7031_s17 + $0x64] sm:$0xf]  ;;  %3295 = vst [vmem:[#allocation2 + $0x168] sm:$0xff] %v3279_v45  ;;  %v5201_v45 = vor.u32 %v5760_v15, %v5198_v17  ;;  %v5182_v17 = vld [vmem:[#allocation2 + $0x128] sm:$0xf0] }
 0x292   : > { %2125 = vmatmul.bf16.gmra.mxu3 %v7225_v21  ;;  %8458 = vst [vmem:[#allocation62_spill] sm:$0xff] %v7264_v55 }
 0x293   : > { %8459 = vst [vmem:[#allocation63_spill] sm:$0xff] %v7266_v54 }
 0x294   : > { %3288 = vst [vmem:[#allocation2 + $0x130] sm:$0xff] %v3272_v3  ;;  %v5674_v3 = vld [vmem:[%s7031_s17 + $0x94] sm:$0xf] }
 0x295   : > { %2202 = vmatpush.bf16.msra.mxu1 %v5105_v63  ;;  %v7250_v63 = vor.u32 %v5668_v60, %v4990_v61  ;;  %v5206_v60 = vld [vmem:[#allocation2 + $0x158] sm:$0xf0]  ;;  %v3276_v61 = vld [vmem:[#allocation17 + $0x50] sm:$0xff]  ;;  %3287 = vst [vmem:[#allocation2 + $0x128] sm:$0xff] %v3271_v24  ;;  %v7282_v24 = vor.u32 %v5674_v3, %v5014_v48  ;;  %v7301_v3 = vld [vmem:[%s8261_s8] sm:$0x3] }
 0x296   : > { %v5209_v7 = vor.u32 %v5762_v59, %v5206_v60  ;;  %3292 = vst [vmem:[#allocation2 + $0x150] sm:$0xff] %v3276_v61  ;;  %v5190_v59 = vld [vmem:[#allocation2 + $0x138] sm:$0xf0]  ;;  %v5032_v61 = vld [vmem:[%s7031_s17 + $0xb0] sm:$0xf] }
 0x297   : > { %8456 = vst [vmem:[#allocation60_spill] sm:$0xff] %v7250_v63  ;;  %v5193_v60 = vor.u32 %v5758_v50, %v5190_v59  ;;  %v3268_v50 = vld [vmem:[#allocation17 + $0x10] sm:$0xff]  ;;  %v3269_v59 = vld [vmem:[#allocation17 + $0x18] sm:$0xff] }
 0x298   : > { %2017 = vmatmul.bf16.gmra.mxu1 %v7216_v10  ;;  %2164 = vmatmul.bf16.gmra.mxu0 %v7216_v10  ;;  %3293 = vst [vmem:[#allocation2 + $0x158] sm:$0xff] %v3277_v0  ;;  %v5679_v0 = vld [vmem:[%s7031_s17 + $0xb8] sm:$0xf0] }
 0x299   : > { %2066 = vmatmul.bf16.gmra.mxu2 %v7218_v14  ;;  %v7273_v15 = vor.u32 %v5679_v0, %v5032_v61  ;;  %3289 = vst [vmem:[#allocation2 + $0x138] sm:$0xff] %v3273_v8  ;;  %v5012_v61 = vld [vmem:[%s7031_s17 + $0x90] sm:$0xf]  ;;  %v5675_v0 = vld [vmem:[%s7031_s17 + $0x98] sm:$0xf0] }
 0x29a   : > { %2246 = vmatpush.bf16.msra.mxu2 %v5209_v7  ;;  %v5756_v7 = vld [vmem:[#allocation2 + $0x124] sm:$0xf]  ;;  %3284 = vst [vmem:[#allocation2 + $0x110] sm:$0xff] %v3268_v50  ;;  %v5678_v50 = vld [vmem:[%s7031_s17 + $0xb0] sm:$0xf0] }
 0x29b   : > { %8460 = vst [vmem:[#allocation64_spill] sm:$0xff] %v7273_v15  ;;  %v5185_v29 = vor.u32 %v5756_v7, %v5182_v17  ;;  %v5752_v8 = vld [vmem:[#allocation2 + $0x104] sm:$0xf]  ;;  %v5166_v7 = vld [vmem:[#allocation2 + $0x108] sm:$0xf0]  ;;  %v7280_v17 = vor.u32 %v5675_v0, %v5012_v61 }
 0x29c   : > { %3286 = vst [vmem:[#allocation2 + $0x120] sm:$0xff] %v3270_v22  ;;  %v5169_v22 = vor.u32 %v5752_v8, %v5166_v7  ;;  %v7304_v8 = vperm.slane %v7301_v3, 0 }
 0x29d   : > { %8461 = vst [vmem:[#allocation65_spill] sm:$0xff] %v7280_v17 }
 0x29e   : > { %2247 = vmatpush.bf16.msra.mxu2 %v5201_v45  ;;  %v5174_v45 = vld [vmem:[#allocation2 + $0x118] sm:$0xf0]  ;;  %8462 = vst [vmem:[#allocation66_spill] sm:$0xff] %v7282_v24 }
 0x29f   : > { %3285 = vst [vmem:[#allocation2 + $0x118] sm:$0xff] %v3269_v59  ;;  %v5677_v59 = vld [vmem:[%s7031_s17 + $0xac] sm:$0xf] }
 0x2a2   : > { %2130 = vmatmul.bf16.gmra.mxu3 %v7241_v49  ;;  %2248 = vmatpush.bf16.msra.mxu2 %v5193_v60  ;;  %v5177_v60 = vor.u32 %v5754_v43, %v5174_v45  ;;  %v3267_v43 = vld [vmem:[#allocation17 + $0x8] sm:$0xff] }
 0x2a3   : > { %3283 = vst [vmem:[#allocation2 + $0x108] sm:$0xff] %v3267_v43  ;;  %v5024_v45 = vld [vmem:[%s7031_s17 + $0xa8] sm:$0xf] }
 0x2a4   : > { %v7291_v61 = vor.u32 %v5678_v50, %v5024_v45 }
 0x2a6   : > { %2249 = vmatpush.bf16.msra.mxu2 %v5185_v29  ;;  %v3266_v29 = vld [vmem:[#allocation17] sm:$0xff]  ;;  %8463 = vst [vmem:[#allocation67_spill] sm:$0xff] %v7291_v61 }
 0x2a7   : > { %3282 = vst [vmem:[#allocation2 + $0x100] sm:$0xff] %v3266_v29 }
 0x2a8   : > { %2022 = vmatmul.bf16.gmra.mxu1 %v7232_v36  ;;  %2169 = vmatmul.bf16.gmra.mxu0 %v7232_v36 }
 0x2a9   : > { %2071 = vmatmul.bf16.gmra.mxu2 %v7234_v42 }
 0x2aa   : > { %2250 = vmatpush.bf16.msra.mxu2 %v5177_v60  ;;  %v5026_v60 = vld [vmem:[%s7031_s17 + $0xb4] sm:$0xf0] }
 0x2ab   : > { %v7293_v0 = vor.u32 %v5677_v59, %v5026_v60 }
 0x2ad   : > { %8464 = vst [vmem:[#allocation68_spill] sm:$0xff] %v7293_v0 }
 0x2ae   : > { %2251 = vmatpush.bf16.msra.mxu2 %v5169_v22 }
 0x2b2   : > { %2135 = vmatmul.bf16.gmra.mxu3 %v7257_v28 }
 0x2b8   : > { %2027 = vmatmul.bf16.gmra.mxu1 %v7248_v62  ;;  %2174 = vmatmul.bf16.gmra.mxu0 %v7248_v62 }
 0x2b9   : > { %2076 = vmatmul.bf16.gmra.mxu2 %v7250_v63 }
 0x2c2   : > { %2140 = vmatmul.bf16.gmra.mxu3 %v7273_v15 }
 0x2c8   : > { %2032 = vmatmul.bf16.gmra.mxu1 %v7264_v55  ;;  %2179 = vmatmul.bf16.gmra.mxu0 %v7264_v55 }
 0x2c9   : > { %2081 = vmatmul.bf16.gmra.mxu2 %v7266_v54 }
 0x2d5   : > { %v2106_v48 = vpop.f32.mrf.mxu3 }
 0x2d8   : > { %2037 = vmatmul.bf16.gmra.mxu1 %v7280_v17  ;;  %2184 = vmatmul.bf16.gmra.mxu0 %v7280_v17 }
 0x2d9   : > { %2086 = vmatmul.bf16.gmra.mxu2 %v7282_v24 }
 0x2dd   : > { %v7306_v22 = vpop.f32.mrf.mxu3 }
 0x2e5   : > { %v2111_v60 = vpop.f32.mrf.mxu3 }
 0x2e8   : > { %2042 = vmatmul.bf16.gmra.mxu1 %v7291_v61  ;;  %2189 = vmatmul.bf16.gmra.mxu0 %v7291_v61 }
 0x2e9   : > { %2091 = vmatmul.bf16.gmra.mxu2 %v7293_v0 }
 0x2f5   : > { %v2008_v7 = vpop.f32.mrf.mxu1 }
 0x2f6   : > { %v2009_v29 = vadd.f32 %v2008_v7, %v7304_v8  ;;  %v7319_v7 = vpop.f32.mrf.mxu3 }
 0x2f8   : > { %2203 = vmatmul.bf16.vlgmr.msra.gmra.mxu1 %v7186_v58 }
 0x2f9   : > { %2252 = vmatmul.bf16.vlgmr.msra.gmra.mxu2 %v7172_v38 }
 0x2fc   : > { %v2057_v43 = vpop.f32.mrf.mxu2 }
 0x2fd   : > { %v2058_v45 = vadd.f32 %v2057_v43, %v2009_v29  ;;  %v2010_v50 = vpop.f32.mrf.mxu1 }
 0x2fe   : > { %v2011_v47 = vadd.f32 %v2010_v50, %v7304_v8  ;;  %v2116_v26 = vpop.f32.mrf.mxu3 }
 0x2ff   : > { %v7311_v59 = vadd.f32 %v2106_v48, %v2058_v45 }
 0x301   : > { %v2293_v10 = vsub.f32 0.0, %v7311_v59 }
 0x304   : > { %v2059_v41 = vpop.f32.mrf.mxu2 }
 0x305   : > { %v7314_v40 = vadd.f32 %v2059_v41, %v2011_v47  ;;  %v2013_v34 = vpop.f32.mrf.mxu1 }
 0x306   : > { %v2014_v33 = vadd.f32 %v2013_v34, %v7304_v8 }
 0x308   : > { %2208 = vmatmul.bf16.gmra.mxu1 %v7202_v35 }
 0x309   : > { %2257 = vmatmul.bf16.gmra.mxu2 %v7177_v57 }
 0x30c   : > { %v2062_v27 = vpop.f32.mrf.mxu2 }
 0x30d   : > { %v2063_v29 = vadd.f32 %v2062_v27, %v2014_v33  ;;  %v2015_v43 = vpop.f32.mrf.mxu1  ;;  %v7329_v27 = vpop.f32.mrf.mxu3 }
 0x30e   : > { %v2016_v45 = vadd.f32 %v2015_v43, %v7304_v8 }
 0x30f   : > { %v7321_v48 = vadd.f32 %v2111_v60, %v2063_v29 }
 0x314   : > { %v2064_v50 = vpop.f32.mrf.mxu2 }
 0x315   : > { %v7324_v41 = vadd.f32 %v2064_v50, %v2016_v45  ;;  %v2018_v47 = vpop.f32.mrf.mxu1  ;;  %v2121_v50 = vpop.f32.mrf.mxu3 }
 0x316   : > { %v2019_v34 = vadd.f32 %v2018_v47, %v7304_v8 }
 0x318   : > { %2213 = vmatmul.bf16.gmra.mxu1 %v7218_v14 }
 0x319   : > { %2262 = vmatmul.bf16.gmra.mxu2 %v7193_v1 }
 0x31c   : > { %v2067_v20 = vpop.f32.mrf.mxu2 }
 0x31d   : > { %v2068_v19 = vadd.f32 %v2067_v20, %v2019_v34  ;;  %v2020_v13 = vpop.f32.mrf.mxu1 }
 0x31e   : > { %v2021_v60 = vadd.f32 %v2020_v13, %v7304_v8 }
 0x31f   : > { %v7331_v33 = vadd.f32 %v2116_v26, %v2068_v19  ;;  %v7341_v19 = vpop.f32.mrf.mxu3 }
 0x324   : > { %v2069_v29 = vpop.f32.mrf.mxu2 }
 0x325   : > { %v7334_v43 = vadd.f32 %v2069_v29, %v2021_v60  ;;  %v2023_v45 = vpop.f32.mrf.mxu1 }
 0x326   : > { %v2024_v47 = vadd.f32 %v2023_v45, %v7304_v8 }
 0x327   : > { %v2126_v61 = vpop.f32.mrf.mxu3 }
 0x328   : > { %2218 = vmatmul.bf16.gmra.mxu1 %v7234_v42 }
 0x329   : > { %2267 = vmatmul.bf16.gmra.mxu2 %v7209_v52  ;;  %v2309_v52 = vmul.f32 1.442695, %v2293_v10 }
 0x32c   : > { %v2072_v12 = vpop.f32.mrf.mxu2 }
 0x32d   : > { %v2073_v20 = vadd.f32 %v2072_v12, %v2024_v47  ;;  %v2025_v34 = vpop.f32.mrf.mxu1 }
 0x32e   : > { %v2026_v13 = vadd.f32 %v2025_v34, %v7304_v8 }
 0x32f   : > { %v7339_v6 = vadd.f32 %v2121_v50, %v2073_v20 }
 0x334   : > { %v2074_v26 = vpop.f32.mrf.mxu2 }
 0x335   : > { %v7344_v60 = vadd.f32 %v2074_v26, %v2026_v13  ;;  %v2028_v29 = vpop.f32.mrf.mxu1 }
 0x336   : > { %v2029_v5 = vadd.f32 %v2028_v29, %v7304_v8 }
 0x338   : > { %2223 = vmatmul.bf16.gmra.mxu1 %v7250_v63 }
 0x339   : > { %2272 = vmatmul.bf16.gmra.mxu2 %v7225_v21 }
 0x33c   : > { %v2077_v45 = vpop.f32.mrf.mxu2 }
 0x33d   : > { %v2078_v12 = vadd.f32 %v2077_v45, %v2029_v5  ;;  %v7349_v47 = vpop.f32.mrf.mxu1 }
 0x33f   : > { %v7351_v50 = vadd.f32 %v2126_v61, %v2078_v12  ;;  %v2155_v61 = vpop.f32.mrf.mxu0 }
 0x344   : > { %v7353_v20 = vpop.f32.mrf.mxu2 }
 0x345   : > { %v2033_v34 = vpop.f32.mrf.mxu1 }
 0x346   : > { %v2034_v13 = vadd.f32 %v2033_v34, %v7304_v8 }
 0x347   : > { %v2157_v63 = vpop.f32.mrf.mxu0 }
 0x348   : > { %2228 = vmatmul.bf16.gmra.mxu1 %v7266_v54 }
 0x349   : > { %2277 = vmatmul.bf16.gmra.mxu2 %v7241_v49 }
 0x34c   : > { %v2082_v26 = vpop.f32.mrf.mxu2 }
 0x34d   : > { %v7358_v29 = vadd.f32 %v2082_v26, %v2034_v13  ;;  %v7360_v17 = vpop.f32.mrf.mxu1 }
 0x34f   : > { %v2160_v42 = vpop.f32.mrf.mxu0 }
 0x354   : > { %v7362_v55 = vpop.f32.mrf.mxu2 }
 0x355   : > { %v2038_v5 = vpop.f32.mrf.mxu1 }
 0x356   : > { %v2039_v45 = vadd.f32 %v2038_v5, %v7304_v8 }
 0x358   : > { %2233 = vmatmul.bf16.gmra.mxu1 %v7282_v24 }
 0x359   : > { %2282 = vmatmul.bf16.gmra.mxu2 %v7257_v28 }
 0x35c   : > { %v2087_v12 = vpop.f32.mrf.mxu2 }
 0x35d   : > { %v7367_v54 = vadd.f32 %v2087_v12, %v2039_v45  ;;  %v7369_v34 = vpop.f32.mrf.mxu1  ;;  %v7381_v45 = vperm.slane %v7301_v3, 1 }
 0x35f   : > { %v2156_v12 = vadd.f32 %v2155_v61, %v7381_v45  ;;  %v2158_v35 = vadd.f32 %v2157_v63, %v7381_v45  ;;  %v2161_v31 = vadd.f32 %v2160_v42, %v7381_v45  ;;  %v2295_v63 = vsub.f32 0.0, %v7321_v48 }
 0x364   : > { %v7371_v13 = vpop.f32.mrf.mxu2 }
 0x365   : > { %v2043_v26 = vpop.f32.mrf.mxu1 }
 0x366   : > { %v2044_v62 = vadd.f32 %v2043_v26, %v7304_v8 }
 0x368   : > { %2238 = vmatmul.bf16.gmra.mxu1 %v7293_v0  ;;  %v2162_v0 = vpop.f32.mrf.mxu0 }
 0x369   : > { %2287 = vmatmul.bf16.gmra.mxu2 %v7273_v15 }
 0x36c   : > { %v2092_v24 = vpop.f32.mrf.mxu2 }
 0x36d   : > { %v7376_v5 = vadd.f32 %v2092_v24, %v2044_v62  ;;  %v7378_v28 = vpop.f32.mrf.mxu1  ;;  %v2109_v24 = vadd.f32 %v7306_v22, %v7314_v40 }
 0x36f   : > { %v2294_v58 = vsub.f32 0.0, %v2109_v24 }
 0x370   : > { %v2165_v3 = vpop.f32.mrf.mxu0 }
 0x371   : > { %v2311_v40 = vmul.f32 1.442695, %v2294_v58  ;;  %v2114_v58 = vadd.f32 %v7319_v7, %v7324_v41  ;;  %v1080_v7 = vlaneseq }
 0x373   : > { %v1081_v39 = vand.u32 127, %v1080_v7 }
 0x374   : > { %v7384_v49 = vpop.f32.mrf.mxu2 }
 0x375   : > { %v2204_v36 = vpop.f32.mrf.mxu1  ;;  %vm1082_vm1 = vcmp.lt.s32.totalorder %v1081_v39, 32 }
 0x376   : > { %v2205_v14 = vadd.f32 %v2204_v36, %v2156_v12 }
 0x37c   : > { %v2253_v21 = vpop.f32.mrf.mxu2 }
 0x37d   : > { %v7386_v26 = vadd.f32 %v2253_v21, %v2205_v14  ;;  %v2206_v15 = vpop.f32.mrf.mxu1 }
 0x37e   : > { %v2207_v12 = vadd.f32 %v2206_v15, %v2158_v35 }
 0x37f   : > { %v2389_v62 = vand.u32 2147483647, %v7386_v26 }
 0x381   : > { %v2405_v61 = vsub.f32 0.0, %v2389_v62  ;;  %v7398_v62 = vpop.f32.mrf.mxu0 }
 0x383   : > { %v2421_v36 = vmul.f32 1.442695, %v2405_v61 }
 0x384   : > { %v2255_v14 = vpop.f32.mrf.mxu2 }
 0x385   : > { %6018 = vpow2.f32 %v2421_v36  ;;  %v7394_v21 = vadd.f32 %v2255_v14, %v2207_v12  ;;  %v2209_v59 = vpop.f32.mrf.mxu1  ;;  %v2163_v14 = vadd.f32 %v2162_v0, %v7381_v45 }
 0x386   : > { %6020 = vpow2.f32 %v2309_v52  ;;  %v2210_v1 = vadd.f32 %v2209_v59, %v2161_v31  ;;  %v2313_v31 = vmul.f32 1.442695, %v2295_v63 }
 0x387   : > { %v2390_v56 = vand.u32 2147483647, %v7394_v21  ;;  %6022 = vpow2.f32 %v2311_v40 }
 0x389   : > { %v2406_v22 = vsub.f32 0.0, %v2390_v56  ;;  %v2170_v51 = vpop.f32.mrf.mxu0 }
 0x38b   : > { %v6019_v10 = vpop.eup %6018  ;;  %v2423_v42 = vmul.f32 1.442695, %v2406_v22 }
 0x38c   : > { %v6021_v61 = vpop.eup %6020  ;;  %v2453_v35 = vadd.f32 1.0, %v6019_v10  ;;  %v2258_v15 = vpop.f32.mrf.mxu2  ;;  %v2456_v24 = vmul.f32 -0.5, %v6019_v10  ;;  %v2459_v22 = vand.u32 2147483647, %v6019_v10 }
 0x38d   : > { %6024 = vpow2.f32 %v2423_v42  ;;  %v7400_v36 = vadd.f32 %v2258_v15, %v2210_v1  ;;  %v2211_v52 = vpop.f32.mrf.mxu1  ;;  %v2341_v12 = vadd.f32 1.0, %v6021_v61  ;;  %v6023_v40 = vpop.eup %6022  ;;  %v2166_v42 = vadd.f32 %v2165_v3, %v7381_v45 }
 0x38e   : > { %6026 = vlog2.f32 %v2453_v35  ;;  %v2457_v48 = vadd.f32 1.0, %v2456_v24  ;;  %v2212_v63 = vadd.f32 %v2211_v52, %v2163_v14  ;;  %v2296_v61 = vsub.f32 0.0, %v2114_v58 }
 0x38f   : > { %v2391_v56 = vand.u32 2147483647, %v7400_v36  ;;  %6028 = vpow2.f32 %v2313_v31  ;;  %vm2460_vm0 = vcmp.lt.f32.partialorder %v2459_v22, 0.0004427343 }
 0x390   : > { %6030 = vrcp.f32 %v2341_v12  ;;  %v2458_v24 = vmul.f32 %v6019_v10, %v2457_v48  ;;  %v2342_v12 = vadd.f32 1.0, %v6023_v40 }
 0x391   : > { %v2407_v59 = vsub.f32 0.0, %v2391_v56  ;;  %v2373_v56 = vmax.f32 %v7386_v26, 0.0  ;;  %v2297_v26 = vsub.f32 0.0, %v7331_v33 }
 0x393   : > { %v6025_v1 = vpop.eup %6024  ;;  %v2425_v15 = vmul.f32 1.442695, %v2407_v59  ;;  %v2315_v59 = vmul.f32 1.442695, %v2296_v61  ;;  %v2317_v33 = vmul.f32 1.442695, %v2297_v26 }
 0x394   : > { %v6027_v35 = vpop.eup %6026  ;;  %v2462_v57 = vadd.f32 1.0, %v6025_v1  ;;  %v2465_v38 = vmul.f32 -0.5, %v6025_v1  ;;  %v2260_v53 = vpop.f32.mrf.mxu2 }
 0x395   : > { %v2455_v41 = vmul.f32 0.6931472, %v6027_v35  ;;  %6032 = vpow2.f32 %v2425_v15  ;;  %v7407_v0 = vadd.f32 %v2260_v53, %v2212_v63  ;;  %v2214_v31 = vpop.f32.mrf.mxu1  ;;  %v6029_v14 = vpop.eup %6028  ;;  %v2468_v53 = vand.u32 2147483647, %v6025_v1 }
 0x396   : > { %6034 = vlog2.f32 %v2462_v57  ;;  %v2215_v3 = vadd.f32 %v2214_v31, %v2166_v42  ;;  %v2466_v44 = vadd.f32 1.0, %v2465_v38  ;;  %v6031_v35 = vpop.eup %6030  ;;  %v2343_v63 = vadd.f32 1.0, %v6029_v14  ;;  %v7415_v31 = vpop.f32.mrf.mxu0 }
 0x397   : > { %v2461_v52 = vsel %vm2460_vm0, %v2458_v24, %v2455_v41  ;;  %v2392_v58 = vand.u32 2147483647, %v7407_v0  ;;  %6036 = vrcp.f32 %v2342_v12  ;;  %vm2469_vm2 = vcmp.lt.f32.partialorder %v2468_v53, 0.0004427343 }
 0x398   : > { %v2597_v46 = vadd.f32 %v2461_v52, %v2373_v56  ;;  %6038 = vpow2.f32 %v2315_v59  ;;  %v2467_v40 = vmul.f32 %v6025_v1, %v2466_v44  ;;  %v2119_v56 = vadd.f32 %v7329_v27, %v7334_v43 }
 0x399   : > { %v2408_v10 = vsub.f32 0.0, %v2392_v58  ;;  %v6716_v59 = vmov 0.0   ;;  %v2171_v27 = vadd.f32 %v2170_v51, %v7381_v45 }
 0x39a   : > { %v2613_v48 = vmul.f32 %v6031_v35, %v2597_v46  ;;  %v2374_v46 = vmax.f32 %v7394_v21, 0.0  ;;  %v7423_v21 = vsel %vm1082_vm1, 1.0, %v6716_v59  ;;  %v2298_v26 = vsub.f32 0.0, %v2119_v56 }
 0x39b   : > { %v6033_v15 = vpop.eup %6032  ;;  %v2427_v57 = vmul.f32 1.442695, %v2408_v10 }
 0x39c   : > { %v6035_v22 = vpop.eup %6034  ;;  %v2471_v42 = vadd.f32 1.0, %v6033_v15  ;;  %v2263_v41 = vpop.f32.mrf.mxu2  ;;  %v2474_v24 = vmul.f32 -0.5, %v6033_v15  ;;  %v2477_v53 = vand.u32 2147483647, %v6033_v15 }
 0x39d   : > { %v2464_v61 = vmul.f32 0.6931472, %v6035_v22  ;;  %6040 = vpow2.f32 %v2427_v57  ;;  %v7412_v38 = vadd.f32 %v2263_v41, %v2215_v3  ;;  %v2216_v7 = vpop.f32.mrf.mxu1  ;;  %v6037_v52 = vpop.eup %6036  ;;  %v2168_v3 = vadd.f32 %v7398_v62, %v7381_v45 }
 0x39e   : > { %6042 = vlog2.f32 %v2471_v42  ;;  %v2475_v58 = vadd.f32 1.0, %v2474_v24  ;;  %v6039_v35 = vpop.eup %6038  ;;  %vm2478_vm3 = vcmp.lt.f32.partialorder %v2477_v53, 0.0004427343 }
 0x39f   : > { %v2470_v44 = vsel %vm2469_vm2, %v2467_v40, %v2464_v61  ;;  %v2393_v1 = vand.u32 2147483647, %v7412_v38  ;;  %6044 = vrcp.f32 %v2343_v63  ;;  %v2217_v22 = vadd.f32 %v2216_v7, %v2168_v3 }
 0x3a0   : > { %v2598_v12 = vadd.f32 %v2470_v44, %v2374_v46  ;;  %6046 = vpow2.f32 %v2317_v33  ;;  %v7427_v61 = vmul.f32 %v7423_v21, %v2613_v48  ;;  %v2476_v24 = vmul.f32 %v6033_v15, %v2475_v58  ;;  %v7435_v44 = vpop.f32.mrf.mxu3 }
 0x3a1   : > { %v2409_v14 = vsub.f32 0.0, %v2393_v1  ;;  %v2375_v33 = vmax.f32 %v7400_v36, 0.0  ;;  %v2344_v56 = vadd.f32 1.0, %v6039_v35  ;;  %v2319_v15 = vmul.f32 1.442695, %v2298_v26 }
 0x3a2   : > { %v2614_v10 = vmul.f32 %v6037_v52, %v2598_v12  ;;  %v2299_v35 = vsub.f32 0.0, %v7339_v6  ;;  %v2124_v6 = vadd.f32 %v7341_v19, %v7344_v60 }
 0x3a3   : > { %v6041_v43 = vpop.eup %6040  ;;  %v2429_v57 = vmul.f32 1.442695, %v2409_v14  ;;  %v2175_v14 = vpop.f32.mrf.mxu0 }
 0x3a4   : > { %v6043_v40 = vpop.eup %6042  ;;  %v2480_v42 = vadd.f32 1.0, %v6041_v43  ;;  %v2483_v41 = vmul.f32 -0.5, %v6041_v43  ;;  %v2265_v62 = vpop.f32.mrf.mxu2  ;;  %v7430_v39 = vmul.f32 %v7423_v21, %v2614_v10  ;;  %v2486_v53 = vand.u32 2147483647, %v6041_v43 }
 0x3a5   : > { %v2473_v63 = vmul.f32 0.6931472, %v6043_v40  ;;  %6048 = vpow2.f32 %v2429_v57  ;;  %v7432_v46 = vadd.f32 %v2265_v62, %v2217_v22  ;;  %v2219_v51 = vpop.f32.mrf.mxu1  ;;  %v6045_v52 = vpop.eup %6044  ;;  %v2300_v60 = vsub.f32 0.0, %v2124_v6 }
 0x3a6   : > { %6050 = vlog2.f32 %v2480_v42  ;;  %v2220_v7 = vadd.f32 %v2219_v51, %v2171_v27  ;;  %v2484_v3 = vadd.f32 1.0, %v2483_v41  ;;  %v6047_v59 = vpop.eup %6046  ;;  %vm2487_vm4 = vcmp.lt.f32.partialorder %v2486_v53, 0.0004427343 }
 0x3a7   : > { %v2479_v1 = vsel %vm2478_vm3, %v2476_v24, %v2473_v63  ;;  %v2394_v48 = vand.u32 2147483647, %v7432_v46  ;;  %6052 = vrcp.f32 %v2344_v56  ;;  %v2345_v51 = vadd.f32 1.0, %v6047_v59 }
 0x3a8   : > { %v2599_v58 = vadd.f32 %v2479_v1, %v2375_v33  ;;  %6054 = vpow2.f32 %v2319_v15  ;;  %v2485_v40 = vmul.f32 %v6041_v43, %v2484_v3  ;;  %v2376_v33 = vmax.f32 %v7407_v0, 0.0  ;;  %v7447_v15 = vpop.f32.mrf.mxu3 }
 0x3a9   : > { %v2410_v10 = vsub.f32 0.0, %v2394_v48  ;;  %v2321_v56 = vmul.f32 1.442695, %v2299_v35  ;;  %v2176_v53 = vadd.f32 %v2175_v14, %v7381_v45 }
 0x3aa   : > { %v2615_v36 = vmul.f32 %v6045_v52, %v2599_v58 }
 0x3ab   : > { %v6049_v57 = vpop.eup %6048  ;;  %v2431_v27 = vmul.f32 1.442695, %v2410_v10  ;;  %v7452_v35 = vpop.f32.mrf.mxu0 }
 0x3ac   : > { %v6051_v22 = vpop.eup %6050  ;;  %v2489_v42 = vadd.f32 1.0, %v6049_v57  ;;  %v2268_v62 = vpop.f32.mrf.mxu2  ;;  %v2492_v24 = vmul.f32 -0.5, %v6049_v57  ;;  %v2495_v10 = vand.u32 2147483647, %v6049_v57 }
 0x3ad   : > { %v2482_v63 = vmul.f32 0.6931472, %v6051_v22  ;;  %6056 = vpow2.f32 %v2431_v27  ;;  %v7441_v26 = vadd.f32 %v2268_v62, %v2220_v7  ;;  %v2221_v41 = vpop.f32.mrf.mxu1  ;;  %v6053_v52 = vpop.eup %6052  ;;  %v2173_v7 = vadd.f32 %v7415_v31, %v7381_v45 }
 0x3ae   : > { %6058 = vlog2.f32 %v2489_v42  ;;  %v2493_v58 = vadd.f32 1.0, %v2492_v24  ;;  %v6055_v59 = vpop.eup %6054  ;;  %v7455_v31 = vmul.f32 %v7423_v21, %v2615_v36  ;;  %vm2496_vm5 = vcmp.lt.f32.partialorder %v2495_v10, 0.0004427343 }
 0x3af   : > { %v2488_v1 = vsel %vm2487_vm4, %v2485_v40, %v2482_v63  ;;  %v2395_v43 = vand.u32 2147483647, %v7441_v26  ;;  %6060 = vrcp.f32 %v2345_v51  ;;  %v2222_v22 = vadd.f32 %v2221_v41, %v2173_v7 }
 0x3b0   : > { %v2600_v48 = vadd.f32 %v2488_v1, %v2376_v33  ;;  %6062 = vpow2.f32 %v2321_v56  ;;  %v2494_v33 = vmul.f32 %v6049_v57, %v2493_v58  ;;  %v2377_v56 = vmax.f32 %v7412_v38, 0.0  ;;  %v7466_v38 = vpop.f32.mrf.mxu3 }
 0x3b1   : > { %v2411_v3 = vsub.f32 0.0, %v2395_v43  ;;  %v2346_v6 = vadd.f32 1.0, %v6055_v59  ;;  %v2323_v7 = vmul.f32 1.442695, %v2300_v60 }
 0x3b2   : > { %v2616_v0 = vmul.f32 %v6053_v52, %v2600_v48 }
 0x3b3   : > { %v6057_v19 = vpop.eup %6056  ;;  %v2433_v27 = vmul.f32 1.442695, %v2411_v3 }
 0x3b4   : > { %v6059_v40 = vpop.eup %6058  ;;  %v2498_v42 = vadd.f32 1.0, %v6057_v19  ;;  %v2501_v62 = vmul.f32 -0.5, %v6057_v19  ;;  %v2270_v63 = vpop.f32.mrf.mxu2  ;;  %v7458_v24 = vmul.f32 %v7423_v21, %v2616_v0 }
 0x3b5   : > { %v2491_v51 = vmul.f32 0.6931472, %v6059_v40  ;;  %6064 = vpow2.f32 %v2433_v27  ;;  %v7460_v14 = vadd.f32 %v2270_v63, %v2222_v22  ;;  %v2224_v1 = vpop.f32.mrf.mxu1  ;;  %v6061_v52 = vpop.eup %6060  ;;  %v2504_v22 = vand.u32 2147483647, %v6057_v19 }
 0x3b6   : > { %6066 = vlog2.f32 %v2498_v42  ;;  %v2225_v41 = vadd.f32 %v2224_v1, %v2176_v53  ;;  %v2502_v57 = vadd.f32 1.0, %v2501_v62  ;;  %v6063_v58 = vpop.eup %6062  ;;  %v2301_v53 = vsub.f32 0.0, %v7351_v50 }
 0x3b7   : > { %v2497_v43 = vsel %vm2496_vm5, %v2494_v33, %v2491_v51  ;;  %v2396_v48 = vand.u32 2147483647, %v7460_v14  ;;  %6068 = vrcp.f32 %v2346_v6  ;;  %v7469_v33 = vpop.f32.mrf.mxu0  ;;  %v2378_v6 = vmax.f32 %v7432_v46, 0.0 }
 0x3b8   : > { %v2601_v3 = vadd.f32 %v2497_v43, %v2377_v56  ;;  %6070 = vpow2.f32 %v2323_v7  ;;  %v2503_v42 = vmul.f32 %v6057_v19, %v2502_v57  ;;  %vm2505_vm6 = vcmp.lt.f32.partialorder %v2504_v22, 0.0004427343 }
 0x3b9   : > { %v2412_v0 = vsub.f32 0.0, %v2396_v48  ;;  %v2347_v43 = vadd.f32 1.0, %v6063_v58  ;;  %v2325_v19 = vmul.f32 1.442695, %v2301_v53 }
 0x3ba   : > { %v2617_v27 = vmul.f32 %v6061_v52, %v2601_v3 }
 0x3bb   : > { %v6065_v40 = vpop.eup %6064  ;;  %v2435_v10 = vmul.f32 1.442695, %v2412_v0 }
 0x3bc   : > { %v6067_v59 = vpop.eup %6066  ;;  %v2507_v63 = vadd.f32 1.0, %v6065_v40  ;;  %v2273_v51 = vpop.f32.mrf.mxu2  ;;  %v2510_v62 = vmul.f32 -0.5, %v6065_v40  ;;  %v7480_v58 = vmul.f32 %v7423_v21, %v2617_v27 }
 0x3bd   : > { %v2500_v60 = vmul.f32 0.6931472, %v6067_v59  ;;  %6072 = vpow2.f32 %v2435_v10  ;;  %v7471_v1 = vadd.f32 %v2273_v51, %v2225_v41  ;;  %v7473_v56 = vpop.f32.mrf.mxu1  ;;  %v6069_v7 = vpop.eup %6068  ;;  %v2513_v10 = vand.u32 2147483647, %v6065_v40 }
 0x3be   : > { %6074 = vlog2.f32 %v2507_v63  ;;  %v2511_v3 = vadd.f32 1.0, %v2510_v62  ;;  %v6071_v0 = vpop.eup %6070 }
 0x3bf   : > { %v2506_v48 = vsel %vm2505_vm6, %v2503_v42, %v2500_v60  ;;  %v2397_v50 = vand.u32 2147483647, %v7471_v1  ;;  %6076 = vrcp.f32 %v2347_v43  ;;  %v7485_v42 = vpop.f32.mrf.mxu3  ;;  %v2379_v43 = vmax.f32 %v7441_v26, 0.0 }
 0x3c0   : > { %v2602_v52 = vadd.f32 %v2506_v48, %v2378_v6  ;;  %6078 = vpow2.f32 %v2325_v19  ;;  %v2512_v60 = vmul.f32 %v6065_v40, %v2511_v3  ;;  %vm2514_vm7 = vcmp.lt.f32.partialorder %v2513_v10, 0.0004427343  ;;  %v2182_v48 = vpop.f32.mrf.mxu0 }
 0x3c1   : > { %v2413_v57 = vsub.f32 0.0, %v2397_v50  ;;  %v2348_v50 = vadd.f32 1.0, %v6071_v0 }
 0x3c2   : > { %v2618_v59 = vmul.f32 %v6069_v7, %v2602_v52 }
 0x3c3   : > { %v6073_v41 = vpop.eup %6072  ;;  %v2437_v51 = vmul.f32 1.442695, %v2413_v57 }
 0x3c4   : > { %v6075_v12 = vpop.eup %6074  ;;  %v2516_v46 = vadd.f32 1.0, %v6073_v41  ;;  %v7477_v22 = vpop.f32.mrf.mxu2  ;;  %v7483_v53 = vmul.f32 %v7423_v21, %v2618_v59  ;;  %v2519_v62 = vmul.f32 -0.5, %v6073_v41  ;;  %v2522_v40 = vand.u32 2147483647, %v6073_v41 }
 0x3c5   : > { %v2509_v63 = vmul.f32 0.6931472, %v6075_v12  ;;  %6080 = vpow2.f32 %v2437_v51  ;;  %v7487_v6 = vpop.f32.mrf.mxu1  ;;  %v6077_v7 = vpop.eup %6076 }
 0x3c6   : > { %6082 = vlog2.f32 %v2516_v46  ;;  %v2520_v57 = vadd.f32 1.0, %v2519_v62  ;;  %v6079_v59 = vpop.eup %6078  ;;  %vm2523_vm8 = vcmp.lt.f32.partialorder %v2522_v40, 0.0004427343 }
 0x3c7   : > { %v2515_v19 = vsel %vm2514_vm7, %v2512_v60, %v2509_v63  ;;  %6084 = vrcp.f32 %v2348_v50  ;;  %v2380_v63 = vmax.f32 %v7460_v14, 0.0  ;;  %v2349_v60 = vadd.f32 1.0, %v6079_v59 }
 0x3c8   : > { %v2603_v52 = vadd.f32 %v2515_v19, %v2379_v43  ;;  %v2521_v10 = vmul.f32 %v6073_v41, %v2520_v57  ;;  %v2138_v43 = vpop.f32.mrf.mxu3  ;;  %v2381_v59 = vmax.f32 %v7471_v1, 0.0 }
 0x3ca   : > { %v2619_v12 = vmul.f32 %v6077_v7, %v2603_v52  ;;  %v2185_v52 = vpop.f32.mrf.mxu0 }
 0x3cb   : > { %v6081_v3 = vpop.eup %6080 }
 0x3cc   : > { %v6083_v51 = vpop.eup %6082  ;;  %v2525_v36 = vadd.f32 1.0, %v6081_v3  ;;  %v7492_v37 = vpop.f32.mrf.mxu2  ;;  %v2528_v46 = vmul.f32 -0.5, %v6081_v3  ;;  %v2531_v32 = vand.u32 2147483647, %v6081_v3 }
 0x3cd   : > { %v2518_v26 = vmul.f32 0.6931472, %v6083_v51  ;;  %v2231_v0 = vpop.f32.mrf.mxu1  ;;  %v6085_v7 = vpop.eup %6084 }
 0x3ce   : > { %6086 = vlog2.f32 %v2525_v36  ;;  %v2529_v27 = vadd.f32 1.0, %v2528_v46  ;;  %v7499_v36 = vmul.f32 %v7423_v21, %v2619_v12  ;;  %vm2532_vm9 = vcmp.lt.f32.partialorder %v2531_v32, 0.0004427343 }
 0x3cf   : > { %v2524_v62 = vsel %vm2523_vm8, %v2521_v10, %v2518_v26  ;;  %6088 = vrcp.f32 %v2349_v60  ;;  %v2036_v60 = vadd.f32 %v7360_v17, %v7304_v8  ;;  %v2041_v32 = vadd.f32 %v7369_v34, %v7304_v8 }
 0x3d0   : > { %v2604_v19 = vadd.f32 %v2524_v62, %v2380_v63  ;;  %v2530_v51 = vmul.f32 %v6081_v3, %v2529_v27  ;;  %v2141_v63 = vpop.f32.mrf.mxu3  ;;  %v2186_v27 = vadd.f32 %v2185_v52, %v7381_v45  ;;  %v2031_v3 = vadd.f32 %v7349_v47, %v7304_v8 }
 0x3d1   : > { %v2085_v12 = vadd.f32 %v7362_v55, %v2036_v60  ;;  %v2181_v17 = vadd.f32 %v7469_v33, %v7381_v45  ;;  %v2137_v55 = vadd.f32 %v7485_v42, %v7367_v54  ;;  %v2046_v34 = vadd.f32 %v7378_v28, %v7304_v8 }
 0x3d2   : > { %v2620_v50 = vmul.f32 %v6085_v7, %v2604_v19  ;;  %v2090_v7 = vadd.f32 %v7371_v13, %v2041_v32 }
 0x3d3   : > { %v2134_v52 = vadd.f32 %v7466_v38, %v2085_v12  ;;  %v2095_v13 = vadd.f32 %v7384_v49, %v2046_v34  ;;  %v2230_v33 = vadd.f32 %v7487_v6, %v2181_v17  ;;  %v2178_v38 = vadd.f32 %v7452_v35, %v7381_v45 }
 0x3d4   : > { %v6087_v30 = vpop.eup %6086  ;;  %v2280_v25 = vpop.f32.mrf.mxu2  ;;  %v7496_v41 = vmul.f32 %v7423_v21, %v2620_v50  ;;  %v2080_v50 = vadd.f32 %v7353_v20, %v2031_v3  ;;  %v2305_v8 = vsub.f32 0.0, %v2137_v55  ;;  %v2142_v49 = vadd.f32 %v2141_v63, %v7376_v5 }
 0x3d5   : > { %v2527_v57 = vmul.f32 0.6931472, %v6087_v30  ;;  %v2234_v14 = vpop.f32.mrf.mxu1  ;;  %v6089_v46 = vpop.eup %6088  ;;  %v2304_v28 = vsub.f32 0.0, %v2134_v52  ;;  %v2227_v6 = vadd.f32 %v7473_v56, %v2178_v38  ;;  %v2132_v55 = vadd.f32 %v7447_v15, %v7358_v29 }
 0x3d6   : > { %v2187_v30 = vpop.f32.mrf.mxu0  ;;  %v2129_v42 = vadd.f32 %v7435_v44, %v2080_v50  ;;  %v2333_v32 = vmul.f32 1.442695, %v2305_v8 }
 0x3d7   : > { %v2533_v40 = vsel %vm2532_vm9, %v2530_v51, %v2527_v57  ;;  %v2235_v57 = vadd.f32 %v2234_v14, %v2186_v27  ;;  %v2183_v51 = vadd.f32 %v2182_v48, %v7381_v45  ;;  %v2188_v47 = vadd.f32 %v2187_v30, %v7381_v45 }
 0x3d8   : > { %v2605_v10 = vadd.f32 %v2533_v40, %v2381_v59  ;;  %v2139_v59 = vadd.f32 %v2138_v43, %v2090_v7  ;;  %v2143_v20 = vpop.f32.mrf.mxu3  ;;  %v7540_v30 = vadd.f32 %v7492_v37, %v2230_v33  ;;  %v7543_v27 = vadd.f32 %v7477_v22, %v2227_v6 }
 0x3d9   : > { %v2232_v40 = vadd.f32 %v2231_v0, %v2183_v51  ;;  %v2144_v60 = vadd.f32 %v2143_v20, %v2095_v13  ;;  %v2302_v5 = vsub.f32 0.0, %v2129_v42  ;;  %v2331_v63 = vmul.f32 1.442695, %v2304_v28 }
 0x3da   : > { %v7506_v62 = vmul.f32 %v6089_v46, %v2605_v10  ;;  %v2306_v35 = vsub.f32 0.0, %v2139_v59  ;;  %v2399_v37 = vand.u32 2147483647, %v7540_v30  ;;  %v2398_v50 = vand.u32 2147483647, %v7543_v27 }
 0x3db   : > { %v7532_v48 = vadd.f32 %v2280_v25, %v2232_v40  ;;  %v2308_v17 = vsub.f32 0.0, %v2144_v60  ;;  %v2327_v52 = vmul.f32 1.442695, %v2302_v5  ;;  %6090 = vpow2.f32 %v2331_v63 }
 0x3dc   : > { %v2283_v1 = vpop.f32.mrf.mxu2  ;;  %v2335_v7 = vmul.f32 1.442695, %v2306_v35  ;;  %6092 = vpow2.f32 %v2333_v32  ;;  %v2415_v33 = vsub.f32 0.0, %v2399_v37  ;;  %v2414_v20 = vsub.f32 0.0, %v2398_v50 }
 0x3dd   : > { %v2236_v19 = vpop.f32.mrf.mxu1  ;;  %v7529_v14 = vadd.f32 %v2283_v1, %v2235_v57  ;;  %v2400_v56 = vand.u32 2147483647, %v7532_v48  ;;  %v2307_v1 = vsub.f32 0.0, %v2142_v49  ;;  %v2339_v13 = vmul.f32 1.442695, %v2308_v17 }
 0x3de   : > { %v2237_v54 = vadd.f32 %v2236_v19, %v2188_v47  ;;  %v2190_v10 = vpop.f32.mrf.mxu0  ;;  %6094 = vpow2.f32 %v2335_v7  ;;  %v2303_v42 = vsub.f32 0.0, %v2132_v55  ;;  %v2439_v6 = vmul.f32 1.442695, %v2414_v20 }
 0x3df   : > { %v2191_v0 = vadd.f32 %v2190_v10, %v7381_v45  ;;  %v2401_v25 = vand.u32 2147483647, %v7529_v14  ;;  %v2416_v34 = vsub.f32 0.0, %v2400_v56  ;;  %v2337_v47 = vmul.f32 1.442695, %v2307_v1 }
 0x3e0   : > { %v2385_v23 = vmax.f32 %v7529_v14, 0.0 }
 0x3e1   : > { %v2417_v22 = vsub.f32 0.0, %v2401_v25  ;;  %v2443_v28 = vmul.f32 1.442695, %v2416_v34  ;;  %v6091_v10 = vpop.eup %6090 }
 0x3e2   : > { %v6093_v49 = vpop.eup %6092  ;;  %v2352_v5 = vadd.f32 1.0, %v6091_v10 }
 0x3e3   : > { %v2445_v38 = vmul.f32 1.442695, %v2417_v22  ;;  %v2353_v56 = vadd.f32 1.0, %v6093_v49 }
 0x3e4   : > { %v2285_v43 = vpop.f32.mrf.mxu2  ;;  %v6095_v60 = vpop.eup %6094 }
 0x3e5   : > { %v7537_v46 = vadd.f32 %v2285_v43, %v2237_v54  ;;  %v2239_v44 = vpop.f32.mrf.mxu1  ;;  %v2441_v43 = vmul.f32 1.442695, %v2415_v33  ;;  %v2354_v1 = vadd.f32 1.0, %v6095_v60 }
 0x3e6   : > { %v2240_v19 = vadd.f32 %v2239_v44, %v2191_v0  ;;  %v2192_v40 = vpop.f32.mrf.mxu0  ;;  %v2329_v44 = vmul.f32 1.442695, %v2303_v42 }
 0x3e7   : > { %v2402_v12 = vand.u32 2147483647, %v7537_v46  ;;  %v2193_v15 = vadd.f32 %v2192_v40, %v7381_v45 }
 0x3e9   : > { %v2418_v3 = vsub.f32 0.0, %v2402_v12 }
 0x3eb   : > { %v2447_v57 = vmul.f32 1.442695, %v2418_v3 }
 0x3ec   : > { %v2288_v51 = vpop.f32.mrf.mxu2 }
 0x3ed   : > { %v7552_v59 = vadd.f32 %v2288_v51, %v2240_v19  ;;  %6096 = vpow2.f32 %v2447_v57  ;;  %v2241_v29 = vpop.f32.mrf.mxu1 }
 0x3ee   : > { %6098 = vpow2.f32 %v2327_v52  ;;  %v2242_v35 = vadd.f32 %v2241_v29, %v2193_v15 }
 0x3ef   : > { %v2403_v54 = vand.u32 2147483647, %v7552_v59  ;;  %6100 = vpow2.f32 %v2337_v47 }
 0x3f0   : > { %6102 = vpow2.f32 %v2339_v13 }
 0x3f1   : > { %v2419_v8 = vsub.f32 0.0, %v2403_v54  ;;  %6104 = vpow2.f32 %v2445_v38 }
 0x3f2   : > { %6106 = vpow2.f32 %v2443_v28 }
 0x3f3   : > { %v2449_v0 = vmul.f32 1.442695, %v2419_v8  ;;  %v7556_v12 = vpop.eup %6096 }
 0x3f4   : > { %v2290_v25 = vpop.f32.mrf.mxu2  ;;  %v6099_v45 = vpop.eup %6098  ;;  %v2570_v7 = vadd.f32 1.0, %v7556_v12  ;;  %v2573_v8 = vmul.f32 -0.5, %v7556_v12 }
 0x3f5   : > { %6108 = vpow2.f32 %v2449_v0  ;;  %v7558_v63 = vadd.f32 %v2290_v25, %v2242_v35  ;;  %v6101_v32 = vpop.eup %6100 }
 0x3f6   : > { %6110 = vpow2.f32 %v2441_v43  ;;  %v6103_v19 = vpop.eup %6102  ;;  %v2355_v57 = vadd.f32 1.0, %v6101_v32  ;;  %v7582_v43 = vadd.f32 1.0, %v6099_v45  ;;  %v2574_v45 = vadd.f32 1.0, %v2573_v8 }
 0x3f7   : > { %6112 = vpow2.f32 %v2439_v6  ;;  %v2404_v3 = vand.u32 2147483647, %v7558_v63  ;;  %v7562_v17 = vpop.eup %6104  ;;  %v2356_v13 = vadd.f32 1.0, %v6103_v19 }
 0x3f8   : > { %6114 = vpow2.f32 %v2329_v44  ;;  %v7564_v50 = vpop.eup %6106  ;;  %v2561_v34 = vadd.f32 1.0, %v7562_v17  ;;  %v2564_v35 = vmul.f32 -0.5, %v7562_v17 }
 0x3f9   : > { %6116 = vrcp.f32 %v2352_v5  ;;  %v2420_v37 = vsub.f32 0.0, %v2404_v3  ;;  %v2552_v40 = vadd.f32 1.0, %v7564_v50  ;;  %v2555_v25 = vmul.f32 -0.5, %v7564_v50 }
 0x3fa   : > { %6118 = vrcp.f32 %v2353_v56 }
 0x3fb   : > { %v6109_v22 = vpop.eup %6108  ;;  %6120 = vrcp.f32 %v2354_v1  ;;  %v2451_v52 = vmul.f32 1.442695, %v2420_v37 }
 0x3fc   : > { %v7566_v55 = vpop.eup %6110  ;;  %6122 = vlog2.f32 %v2570_v7  ;;  %v2579_v51 = vadd.f32 1.0, %v6109_v22  ;;  %v2582_v54 = vmul.f32 -0.5, %v6109_v22  ;;  %v2585_v5 = vand.u32 2147483647, %v6109_v22 }
 0x3fd   : > { %v7569_v47 = vpop.eup %6112  ;;  %6124 = vpow2.f32 %v2451_v52  ;;  %v2543_v38 = vadd.f32 1.0, %v7566_v55  ;;  %v2546_v37 = vmul.f32 -0.5, %v7566_v55  ;;  %v2576_v52 = vand.u32 2147483647, %v7556_v12 }
 0x3fe   : > { %v6115_v33 = vpop.eup %6114  ;;  %6126 = vlog2.f32 %v2579_v51  ;;  %v2534_v28 = vadd.f32 1.0, %v7569_v47  ;;  %v2537_v15 = vmul.f32 -0.5, %v7569_v47  ;;  %v2583_v60 = vadd.f32 1.0, %v2582_v54 }
 0x3ff   : > { %v7572_v20 = vpop.eup %6116  ;;  %6128 = vrcp.f32 %v2355_v57  ;;  %v7584_v49 = vadd.f32 1.0, %v6115_v33  ;;  %v2549_v57 = vand.u32 2147483647, %v7566_v55  ;;  %v2558_v51 = vand.u32 2147483647, %v7564_v50 }
 0x400   : > { %v7575_v42 = vpop.eup %6118  ;;  %6130 = vlog2.f32 %v2561_v34  ;;  %v2538_v1 = vadd.f32 1.0, %v2537_v15  ;;  %v2384_v54 = vmax.f32 %v7532_v48, 0.0  ;;  %v2567_v15 = vand.u32 2147483647, %v7562_v17 }
 0x401   : > { %v7578_v29 = vpop.eup %6120  ;;  %6132 = vrcp.f32 %v2356_v13  ;;  %v2565_v13 = vadd.f32 1.0, %v2564_v35  ;;  %vm7595_vm10 = vcmp.lt.f32.partialorder %v2585_v5, 0.0004427343  ;;  %vm7602_vm11 = vcmp.lt.f32.partialorder %v2576_v52, 0.0004427343 }
 0x402   : > { %v6123_v10 = vpop.eup %6122  ;;  %6134 = vlog2.f32 %v2552_v40  ;;  %v2584_v40 = vmul.f32 %v6109_v22, %v2583_v60  ;;  %v2547_v22 = vadd.f32 1.0, %v2546_v37  ;;  %v2387_v48 = vmax.f32 %v7552_v59, 0.0 }
 0x403   : > { %v6125_v6 = vpop.eup %6124  ;;  %6136 = vlog2.f32 %v2543_v38  ;;  %v2572_v33 = vmul.f32 0.6931472, %v6123_v10  ;;  %vm7611_vm12 = vcmp.lt.f32.partialorder %v2567_v15, 0.0004427343  ;;  %v2386_v37 = vmax.f32 %v7537_v46, 0.0 }
 0x404   : > { %v6127_v44 = vpop.eup %6126  ;;  %6138 = vlog2.f32 %v2534_v28  ;;  %v2588_v56 = vadd.f32 1.0, %v6125_v6  ;;  %v2591_v19 = vmul.f32 -0.5, %v6125_v6  ;;  %v2556_v28 = vadd.f32 1.0, %v2555_v25 }
 0x405   : > { %v6129_v32 = vpop.eup %6128  ;;  %v2581_v3 = vmul.f32 0.6931472, %v6127_v44  ;;  %v2594_v25 = vand.u32 2147483647, %v6125_v6  ;;  %vm7619_vm13 = vcmp.lt.f32.partialorder %v2558_v51, 0.0004427343  ;;  %v2548_v8 = vmul.f32 %v7566_v55, %v2547_v22 }
 0x406   : > { %v6131_v7 = vpop.eup %6130  ;;  %6140 = vlog2.f32 %v2588_v56  ;;  %v2575_v56 = vmul.f32 %v7556_v12, %v2574_v45  ;;  %v2592_v35 = vadd.f32 1.0, %v2591_v19  ;;  %v2557_v59 = vmul.f32 %v7564_v50, %v2556_v28 }
 0x407   : > { %v6133_v34 = vpop.eup %6132  ;;  %v2563_v26 = vmul.f32 0.6931472, %v6131_v7  ;;  %v2587_v0 = vsel %vm7595_vm10, %v2584_v40, %v2581_v3  ;;  %v2566_v7 = vmul.f32 %v7562_v17, %v2565_v13  ;;  %vm2595_vm14 = vcmp.lt.f32.partialorder %v2594_v25, 0.0004427343  ;;  %v5799_v17 = vld [vmem:[#allocation15 + $0xf4] sm:$0xf0] }
 0x408   : > { %v6135_v38 = vpop.eup %6134  ;;  %v2578_v12 = vsel %vm7602_vm11, %v2575_v56, %v2572_v33  ;;  %v2611_v52 = vadd.f32 %v2587_v0, %v2387_v48  ;;  %v2388_v33 = vmax.f32 %v7558_v63, 0.0  ;;  %vm2550_vm15 = vcmp.lt.f32.partialorder %v2549_v57, 0.0004427343 }
 0x409   : > { %v6137_v44 = vpop.eup %6136  ;;  %v2554_v5 = vmul.f32 0.6931472, %v6135_v38  ;;  %v2569_v40 = vsel %vm7611_vm12, %v2566_v7, %v2563_v26  ;;  %v2593_v38 = vmul.f32 %v6125_v6, %v2592_v35  ;;  %v2610_v13 = vadd.f32 %v2578_v12, %v2386_v37  ;;  %v5680_v37 = vld [vmem:[%s7038_s16] sm:$0xff] }
 0x40a   : > { %v6139_v10 = vpop.eup %6138  ;;  %v2545_v3 = vmul.f32 0.6931472, %v6137_v44  ;;  %v2609_v0 = vadd.f32 %v2569_v40, %v2385_v23  ;;  %v2627_v26 = vmul.f32 %v6129_v32, %v2611_v52  ;;  %6142 = vrcp.f32 %v7584_v49  ;;  %v5798_v40 = vld [vmem:[#allocation15 + $0xec] sm:$0xf0] }
 0x40b   : > { %v2536_v15 = vmul.f32 0.6931472, %v6139_v10  ;;  %v2560_v46 = vsel %vm7619_vm13, %v2557_v59, %v2554_v5  ;;  %v2539_v6 = vmul.f32 %v7569_v47, %v2538_v1  ;;  %v2383_v51 = vmax.f32 %v7540_v30, 0.0  ;;  %v5682_v59 = vld [vmem:[%s7038_s16 + $0x10] sm:$0xff] }
 0x40c   : > { %v6141_v45 = vpop.eup %6140  ;;  %v2551_v44 = vsel %vm2550_vm15, %v2548_v8, %v2545_v3  ;;  %v8473_v63 = vand.u32 2147483647, %v7569_v47  ;;  %v2608_v56 = vadd.f32 %v2560_v46, %v2384_v54  ;;  %v2626_v55 = vmul.f32 %v7578_v29, %v2610_v13  ;;  %v5797_v13 = vld [vmem:[#allocation15 + $0xec] sm:$0xf]  ;;  %v5794_v46 = vld [vmem:[#allocation15 + $0xcc] sm:$0xf0] }
 0x40d   : > { %v2590_v14 = vmul.f32 0.6931472, %v6141_v45  ;;  %6144 = vrcp.f32 %v7582_v43  ;;  %v2382_v23 = vmax.f32 %v7543_v27, 0.0  ;;  %v2607_v57 = vadd.f32 %v2551_v44, %v2383_v51  ;;  %v5795_v51 = vld [vmem:[#allocation15 + $0xd4] sm:$0xf0] }
 0x40e   : > { %vm2541_vm0 = vcmp.lt.f32.partialorder %v8473_v63, 0.0004427343  ;;  %v2625_v49 = vmul.f32 %v7575_v42, %v2609_v0  ;;  %v2643_v1 = vmul.f32 %v7423_v21, %v2627_v26  ;;  %v2624_v47 = vmul.f32 %v7572_v20, %v2608_v56  ;;  %v5358_v0 = vld [vmem:[#allocation15 + $0xd0] sm:$0xf0]  ;;  %v5793_v44 = vld [vmem:[#allocation15 + $0xcc] sm:$0xf] }
 0x40f   : > { %v2596_v50 = vsel %vm2595_vm14, %v2593_v38, %v2590_v14  ;;  %v2542_v32 = vsel %vm2541_vm0, %v2539_v6, %v2536_v15  ;;  %v2642_v54 = vmul.f32 %v7423_v21, %v2626_v55  ;;  %v2637_v7 = vmul.f32 %v7423_v21, %v7506_v62  ;;  %v5681_v62 = vld [vmem:[%s7038_s16 + $0x8] sm:$0xff]  ;;  %v5374_v14 = vld [vmem:[#allocation15 + $0xf0] sm:$0xf0]  ;;  %v5356_v15 = vld [vmem:[#allocation15 + $0xc0] sm:$0xf] }
 0x410   : > { %v2612_v28 = vadd.f32 %v2596_v50, %v2388_v33  ;;  %v2606_v10 = vadd.f32 %v2542_v32, %v2382_v23  ;;  %v6143_v29 = vpop.eup %6142  ;;  %v2641_v43 = vmul.f32 %v7423_v21, %v2625_v49  ;;  %v2640_v42 = vmul.f32 %v7423_v21, %v2624_v47  ;;  %v5380_v38 = vld [vmem:[#allocation15 + $0xe8] sm:$0xf]  ;;  %v5382_v33 = vld [vmem:[#allocation15 + $0xf8] sm:$0xf0]  ;;  %v5792_v50 = vld [vmem:[#allocation15 + $0xc4] sm:$0xf] }
 0x411   : > { %v8474_v45 = vpack.c.bf16 %v7496_v41, %v7499_v36  ;;  %v8475_v3 = vpack.c.bf16 %v7483_v53, %v7480_v58  ;;  %v8476_v19 = vpack.c.bf16 %v7458_v24, %v7455_v31  ;;  %v8477_v52 = vpack.c.bf16 %v7430_v39, %v7427_v61  ;;  %v5683_v41 = vld [vmem:[%s7038_s16 + $0x18] sm:$0xff]  ;;  %v5684_v36 = vld [vmem:[%s7038_s16 + $0x20] sm:$0xff]  ;;  %v5685_v58 = vld [vmem:[%s7038_s16 + $0x28] sm:$0xff] }
 0x412   : > { %v2628_v35 = vmul.f32 %v6133_v34, %v2612_v28  ;;  %v2623_v34 = vmul.f32 %v6143_v29, %v2607_v57  ;;  %v2651_v48 = vpack.c.bf16 %v2642_v54, %v2641_v43  ;;  %v5372_v53 = vld [vmem:[#allocation15 + $0xe0] sm:$0xf]  ;;  %v5796_v31 = vld [vmem:[#allocation15 + $0xe4] sm:$0xf]  ;;  %v5381_v39 = vor.u32 %v5799_v17, %v5380_v38  ;;  %v5364_v6 = vld [vmem:[#allocation15 + $0xc8] sm:$0xf] }
 0x413   : > { %v6145_v27 = vpop.eup %6144  ;;  %v5373_v24 = vor.u32 %v5798_v40, %v5372_v53  ;;  %v5377_v61 = vor.u32 %v5796_v31, %v5374_v14  ;;  %v5385_v8 = vor.u32 %v5797_v13, %v5382_v33  ;;  %v5357_v26 = vor.u32 %v5794_v46, %v5356_v15  ;;  %v5366_v56 = vld [vmem:[#allocation15 + $0xd8] sm:$0xf0]  ;;  %v5340_v55 = vld [vmem:[#allocation15 + $0xa0] sm:$0xf]  ;;  %v5788_v32 = vld [vmem:[#allocation15 + $0xa4] sm:$0xf] }
 0x414   : > { %v2644_v30 = vmul.f32 %v7423_v21, %v2628_v35  ;;  %v2622_v60 = vmul.f32 %v6145_v27, %v2606_v10  ;;  %v2639_v25 = vmul.f32 %v7423_v21, %v2623_v34  ;;  %3104 = vmatpush.bf16.msrb.mxu2 %v5381_v39  ;;  %v5361_v28 = vor.u32 %v5792_v50, %v5358_v0  ;;  %v5790_v35 = vld [vmem:[#allocation15 + $0xac] sm:$0xf0]  ;;  %v5342_v57 = vld [vmem:[#allocation15 + $0xb0] sm:$0xf0]  ;;  %v5348_v49 = vld [vmem:[#allocation15 + $0xa8] sm:$0xf] }
 0x415   : > { %3006 = vmatpush.bf16.msrb.mxu0 %v5373_v24  ;;  %3055 = vmatpush.bf16.msrb.mxu1 %v5377_v61  ;;  %v5365_v63 = vor.u32 %v5795_v51, %v5364_v6  ;;  %v5369_v23 = vor.u32 %v5793_v44, %v5366_v56  ;;  %v5789_v10 = vld [vmem:[#allocation15 + $0xac] sm:$0xf]  ;;  %v5350_v47 = vld [vmem:[#allocation15 + $0xb8] sm:$0xf0]  ;;  %v5324_v43 = vld [vmem:[#allocation15 + $0x80] sm:$0xf] }
 0x416   : > { %v2652_v22 = vpack.c.bf16 %v2644_v30, %v2643_v1  ;;  %v2650_v20 = vpack.c.bf16 %v2640_v42, %v2639_v25  ;;  %v2638_v5 = vmul.f32 %v7423_v21, %v2622_v60  ;;  %v5341_v1 = vor.u32 %v5790_v35, %v5340_v55  ;;  %v5791_v30 = vld [vmem:[#allocation15 + $0xb4] sm:$0xf0]  ;;  %v5686_v34 = vld [vmem:[%s7038_s16 + $0x30] sm:$0xff]  ;;  %v5784_v60 = vld [vmem:[#allocation15 + $0x84] sm:$0xf] }
 0x417   : > { %v5349_v54 = vor.u32 %v5791_v30, %v5348_v49  ;;  %v5353_v29 = vor.u32 %v5789_v10, %v5350_v47  ;;  %v5786_v27 = vld [vmem:[#allocation15 + $0x8c] sm:$0xf0]  ;;  %v5326_v42 = vld [vmem:[#allocation15 + $0x90] sm:$0xf0]  ;;  %v5332_v25 = vld [vmem:[#allocation15 + $0x88] sm:$0xf] }
 0x418   : > { %2701 = vmatpush.bf16.msra.mxu3 %v2652_v22  ;;  %v2649_v12 = vpack.c.bf16 %v2638_v5, %v2637_v7  ;;  %3105 = vmatpush.bf16.msrb.mxu2 %v5365_v63  ;;  %v5345_v22 = vor.u32 %v5788_v32, %v5342_v57  ;;  %v5329_v5 = vor.u32 %v5784_v60, %v5326_v42  ;;  %v5781_v53 = vld [vmem:[#allocation15 + $0x6c] sm:$0xf]  ;;  %v5318_v40 = vld [vmem:[#allocation15 + $0x78] sm:$0xf0]  ;;  %v5292_v14 = vld [vmem:[#allocation15 + $0x40] sm:$0xf] }
 0x419   : > { %3007 = vmatpush.bf16.msrb.mxu0 %v5357_v26  ;;  %3056 = vmatpush.bf16.msrb.mxu1 %v5361_v28  ;;  %v5321_v24 = vor.u32 %v5781_v53, %v5318_v40  ;;  %v5778_v38 = vld [vmem:[#allocation15 + $0x4c] sm:$0xf0]  ;;  %v5776_v17 = vld [vmem:[#allocation15 + $0x44] sm:$0xf]  ;;  %v5294_v39 = vld [vmem:[#allocation15 + $0x50] sm:$0xf0] }
 0x41a   : > { %v5293_v61 = vor.u32 %v5778_v38, %v5292_v14  ;;  %v5300_v13 = vld [vmem:[#allocation15 + $0x48] sm:$0xf]  ;;  %v5779_v33 = vld [vmem:[#allocation15 + $0x54] sm:$0xf0]  ;;  %v5297_v15 = vor.u32 %v5776_v17, %v5294_v39  ;;  %v5777_v46 = vld [vmem:[#allocation15 + $0x4c] sm:$0xf] }
 0x41b   : > { %v5302_v50 = vld [vmem:[#allocation15 + $0x58] sm:$0xf0]  ;;  %v5276_v28 = vld [vmem:[#allocation15 + $0x20] sm:$0xf]  ;;  %v5774_v6 = vld [vmem:[#allocation15 + $0x2c] sm:$0xf0] }
 0x41c   : > { %2702 = vmatpush.bf16.msra.mxu3 %v2651_v48  ;;  %3106 = vmatpush.bf16.msrb.mxu2 %v5349_v54  ;;  %v5325_v48 = vor.u32 %v5786_v27, %v5324_v43  ;;  %v5687_v0 = vld [vmem:[%s7038_s16 + $0x38] sm:$0xff]  ;;  %v5305_v26 = vor.u32 %v5777_v46, %v5302_v50  ;;  %v5772_v51 = vld [vmem:[#allocation15 + $0x24] sm:$0xf]  ;;  %v5277_v44 = vor.u32 %v5774_v6, %v5276_v28  ;;  %v5284_v56 = vld [vmem:[#allocation15 + $0x28] sm:$0xf]  ;;  %v8484_v46 = vmax.f32 %v7102_v18, 0.0 }
 0x41d   : > { %3008 = vmatpush.bf16.msrb.mxu0 %v5341_v1  ;;  %3057 = vmatpush.bf16.msrb.mxu1 %v5345_v22  ;;  %v5278_v63 = vld [vmem:[#allocation15 + $0x30] sm:$0xf0]  ;;  %v5775_v55 = vld [vmem:[#allocation15 + $0x34] sm:$0xf0]  ;;  %v5773_v32 = vld [vmem:[#allocation15 + $0x2c] sm:$0xf] }
 0x41e   : > { %v5281_v35 = vor.u32 %v5772_v51, %v5278_v63  ;;  %v5286_v57 = vld [vmem:[#allocation15 + $0x38] sm:$0xf0]  ;;  %v5260_v1 = vld [vmem:[#allocation15] sm:$0xf]  ;;  %v5770_v30 = vld [vmem:[#allocation15 + $0xc] sm:$0xf0] }
 0x41f   : > { %v5289_v49 = vor.u32 %v5773_v32, %v5286_v57  ;;  %v5768_v10 = vld [vmem:[#allocation15 + $0x4] sm:$0xf]  ;;  %v5261_v47 = vor.u32 %v5770_v30, %v5260_v1  ;;  %v5262_v22 = vld [vmem:[#allocation15 + $0x10] sm:$0xf0]  ;;  %v5268_v54 = vld [vmem:[#allocation15 + $0x8] sm:$0xf] }
 0x420   : > { %2703 = vmatpush.bf16.msra.mxu3 %v2650_v20  ;;  %v5787_v20 = vld [vmem:[#allocation15 + $0x94] sm:$0xf0]  ;;  %v5769_v27 = vld [vmem:[#allocation15 + $0xc] sm:$0xf]  ;;  %v5270_v60 = vld [vmem:[#allocation15 + $0x18] sm:$0xf0] }
 0x421   : > { %v5333_v7 = vor.u32 %v5787_v20, %v5332_v25  ;;  %3009 = vmatpush.bf16.msrb.mxu0 %v5325_v48  ;;  %3058 = vmatpush.bf16.msrb.mxu1 %v5329_v5  ;;  %v5273_v48 = vor.u32 %v5769_v27, %v5270_v60  ;;  %v8478_v25 = vmax.f32 %v7075_v2, 0.0  ;;  %v7671_v5 = vld [vmem:[%s8262_s9] ss:$0 sm:$0xff]  ;;  %v8485_v18 = vld [vmem:[#allocation35_spill] sm:$0xff] }
 0x422   : > { %v8486_v63 = vmax.f32 %v8485_v18, 0.0 }
 0x423   : > { %3107 = vmatpush.bf16.msrb.mxu2 %v5333_v7 }
 0x424   : > { %2704 = vmatpush.bf16.msra.mxu3 %v2649_v12  ;;  %v5785_v12 = vld [vmem:[#allocation15 + $0x8c] sm:$0xf] }
 0x428   : > { %2705 = vmatpush.bf16.msra.mxu3 %v8474_v45  ;;  %v5334_v45 = vld [vmem:[#allocation15 + $0x98] sm:$0xf0] }
 0x42c   : > { %2706 = vmatpush.bf16.msra.mxu3 %v8475_v3  ;;  %v5337_v3 = vor.u32 %v5785_v12, %v5334_v45  ;;  %v7677_v12 = vld [vmem:[%s8479_s29] ss:$0 sm:$0xff] }
 0x430   : > { %2707 = vmatpush.bf16.msra.mxu3 %v8476_v19  ;;  %v5308_v19 = vld [vmem:[#allocation15 + $0x60] sm:$0xf] }
 0x434   : > { %2708 = vmatpush.bf16.msra.mxu3 %v8477_v52  ;;  %v5780_v52 = vld [vmem:[#allocation15 + $0x64] sm:$0xf] }
 0x437   : > { %2709 = vmatmul.bf16.vlgmr.msra.gmra.mxu3 %v5680_v37  ;;  %v5782_v37 = vld [vmem:[#allocation15 + $0x6c] sm:$0xf0] }
 0x438   : > { %3153 = vmatpush.bf16.msrb.mxu3 %v5385_v8  ;;  %v5301_v8 = vor.u32 %v5779_v33, %v5300_v13 }
 0x43c   : > { %3154 = vmatpush.bf16.msrb.mxu3 %v5369_v23  ;;  %v5285_v23 = vor.u32 %v5775_v55, %v5284_v56 }
 0x440   : > { %3155 = vmatpush.bf16.msrb.mxu3 %v5353_v29  ;;  %v5771_v29 = vld [vmem:[#allocation15 + $0x14] sm:$0xf0] }
 0x441   : > { %v5269_v43 = vor.u32 %v5771_v29, %v5268_v54  ;;  %v8489_v29 = vld [vmem:[#allocation37_spill] sm:$0xff] }
 0x444   : > { %3156 = vmatpush.bf16.msrb.mxu3 %v5337_v3  ;;  %v8480_v3 = vmax.f32 %v7078_v4, 0.0  ;;  %v8481_v4 = vmax.f32 %v7087_v9, 0.0 }
 0x447   : > { %2714 = vmatmul.bf16.gmra.mxu3 %v5681_v62  ;;  %v5309_v62 = vor.u32 %v5782_v37, %v5308_v19 }
 0x448   : > { %3157 = vmatpush.bf16.msrb.mxu3 %v5321_v24 }
 0x449   : > { %3010 = vmatpush.bf16.msrb.mxu0 %v5309_v62 }
 0x44c   : > { %3158 = vmatpush.bf16.msrb.mxu3 %v5305_v26 }
 0x44d   : > { %3011 = vmatpush.bf16.msrb.mxu0 %v5293_v61 }
 0x450   : > { %3159 = vmatpush.bf16.msrb.mxu3 %v5289_v49 }
 0x451   : > { %3012 = vmatpush.bf16.msrb.mxu0 %v5277_v44 }
 0x454   : > { %3160 = vmatpush.bf16.msrb.mxu3 %v5273_v48  ;;  %v8491_v48 = vld [vmem:[#allocation38_spill] sm:$0xff] }
 0x455   : > { %3013 = vmatpush.bf16.msrb.mxu0 %v5261_v47 }
 0x457   : > { %2719 = vmatmul.bf16.gmra.mxu3 %v5682_v59  ;;  %v5310_v59 = vld [vmem:[#allocation15 + $0x70] sm:$0xf0] }
 0x467   : > { %2724 = vmatmul.bf16.gmra.mxu3 %v5683_v41  ;;  %v5316_v41 = vld [vmem:[#allocation15 + $0x68] sm:$0xf] }
 0x477   : > { %2729 = vmatmul.bf16.gmra.mxu3 %v5684_v36  ;;  %v5313_v36 = vor.u32 %v5780_v52, %v5310_v59 }
 0x479   : > { %3059 = vmatpush.bf16.msrb.mxu1 %v5313_v36 }
 0x47d   : > { %3060 = vmatpush.bf16.msrb.mxu1 %v5297_v15 }
 0x481   : > { %3061 = vmatpush.bf16.msrb.mxu1 %v5281_v35 }
 0x487   : > { %2734 = vmatmul.bf16.gmra.mxu3 %v5685_v58  ;;  %v5783_v58 = vld [vmem:[#allocation15 + $0x74] sm:$0xf0] }
 0x488   : > { %v5317_v31 = vor.u32 %v5783_v58, %v5316_v41 }
 0x48a   : > { %3108 = vmatpush.bf16.msrb.mxu2 %v5317_v31  ;;  %v8482_v31 = vmax.f32 %v7090_v11, 0.0  ;;  %v8483_v11 = vmax.f32 %v7099_v16, 0.0 }
 0x48e   : > { %3109 = vmatpush.bf16.msrb.mxu2 %v5301_v8 }
 0x492   : > { %3110 = vmatpush.bf16.msrb.mxu2 %v5285_v23  ;;  %v8487_v23 = vld [vmem:[#allocation36_spill] sm:$0xff] }
 0x493   : > { %v8488_v32 = vmax.f32 %v8487_v23, 0.0 }
 0x496   : > { %3111 = vmatpush.bf16.msrb.mxu2 %v5269_v43 }
 0x497   : > { %2739 = vmatmul.bf16.gmra.mxu3 %v5686_v34  ;;  %v5265_v34 = vor.u32 %v5768_v10, %v5262_v22 }
 0x499   : > { %3062 = vmatpush.bf16.msrb.mxu1 %v5265_v34  ;;  %v8490_v34 = vmax.f32 %v8489_v29, 0.0  ;;  %v8501_v29 = vld [vmem:[#allocation43_spill] sm:$0xff] }
 0x4a7   : > { %2744 = vmatmul.bf16.gmra.mxu3 %v5687_v0 }
 0x4ba   : > { %v2710_v42 = vpop.f32.mrf.mxu3 }
 0x4bb   : > { %v2711_v20 = vadd.f32 %v2710_v42, %v8478_v25  ;;  %v8492_v42 = vmax.f32 %v8491_v48, 0.0  ;;  %v8503_v48 = vld [vmem:[#allocation44_spill] sm:$0xff] }
 0x4bd   : > { %v2754_v7 = vmul.f32 %v7671_v5, %v2711_v20 }
 0x4bf   : > { %v7682_v37 = vadd.f32 %v7677_v12, %v2754_v7 }
 0x4c1   : > { %v8366_v62 = vmax.f32 %v7682_v37, 0.0 }
 0x4c2   : > { %v2712_v45 = vpop.f32.mrf.mxu3 }
 0x4c3   : > { %v2713_v19 = vadd.f32 %v2712_v45, %v8480_v3 }
 0x4c5   : > { %v2755_v2 = vmul.f32 %v7671_v5, %v2713_v19 }
 0x4c7   : > { %v7686_v52 = vadd.f32 %v7677_v12, %v2755_v2 }
 0x4c9   : > { %v8367_v59 = vmax.f32 %v7686_v52, 0.0 }
 0x4ca   : > { %v2715_v41 = vpop.f32.mrf.mxu3 }
 0x4cb   : > { %v2806_v36 = vpack.c.bf16 %v8367_v59, %v8366_v62  ;;  %v2716_v58 = vadd.f32 %v2715_v41, %v8481_v4 }
 0x4cd   : > { %3014 = vmatmul.bf16.vlgmr.msrb.gmra.mxu0 %v2806_v36  ;;  %3063 = vmatmul.bf16.vlgmr.msrb.gmra.mxu1 %v2806_v36  ;;  %v2756_v53 = vmul.f32 %v7671_v5, %v2716_v58 }
 0x4ce   : > { %3112 = vmatmul.bf16.vlgmr.msrb.gmra.mxu2 %v2806_v36  ;;  %3161 = vmatmul.bf16.vlgmr.msrb.gmra.mxu3 %v2806_v36  ;;  %v8493_v36 = vld [vmem:[#allocation39_spill] sm:$0xff] }
 0x4cf   : > { %v7700_v14 = vadd.f32 %v7677_v12, %v2756_v53  ;;  %v8494_v4 = vmax.f32 %v8493_v36, 0.0 }
 0x4d1   : > { %v8368_v9 = vmax.f32 %v7700_v14, 0.0 }
 0x4d2   : > { %v2717_v40 = vpop.f32.mrf.mxu3 }
 0x4d3   : > { %v2718_v24 = vadd.f32 %v2717_v40, %v8482_v31  ;;  %v8495_v31 = vld [vmem:[#allocation40_spill] sm:$0xff] }
 0x4d5   : > { %v2757_v38 = vmul.f32 %v7671_v5, %v2718_v24  ;;  %v8496_v24 = vmax.f32 %v8495_v31, 0.0 }
 0x4d7   : > { %v7704_v17 = vadd.f32 %v7677_v12, %v2757_v38 }
 0x4d9   : > { %v8369_v61 = vmax.f32 %v7704_v17, 0.0 }
 0x4da   : > { %v2720_v39 = vpop.f32.mrf.mxu3 }
 0x4db   : > { %v2807_v13 = vpack.c.bf16 %v8369_v61, %v8368_v9  ;;  %v2721_v33 = vadd.f32 %v2720_v39, %v8483_v11 }
 0x4dd   : > { %3019 = vmatmul.bf16.gmra.mxu0 %v2807_v13  ;;  %3068 = vmatmul.bf16.gmra.mxu1 %v2807_v13  ;;  %v2758_v15 = vmul.f32 %v7671_v5, %v2721_v33 }
 0x4de   : > { %3117 = vmatmul.bf16.gmra.mxu2 %v2807_v13  ;;  %3166 = vmatmul.bf16.gmra.mxu3 %v2807_v13 }
 0x4df   : > { %v7718_v0 = vadd.f32 %v7677_v12, %v2758_v15 }
 0x4e1   : > { %v8370_v16 = vmax.f32 %v7718_v0, 0.0 }
 0x4e2   : > { %v2722_v8 = vpop.f32.mrf.mxu3 }
 0x4e3   : > { %v2723_v50 = vadd.f32 %v2722_v8, %v8484_v46 }
 0x4e5   : > { %v2759_v26 = vmul.f32 %v7671_v5, %v2723_v50  ;;  %v8497_v50 = vld [vmem:[#allocation41_spill] sm:$0xff] }
 0x4e7   : > { %v7722_v28 = vadd.f32 %v7677_v12, %v2759_v26  ;;  %v8498_v26 = vmax.f32 %v8497_v50, 0.0 }
 0x4e9   : > { %v8371_v6 = vmax.f32 %v7722_v28, 0.0 }
 0x4ea   : > { %v2725_v51 = vpop.f32.mrf.mxu3 }
 0x4eb   : > { %v2808_v44 = vpack.c.bf16 %v8371_v6, %v8370_v16  ;;  %v2726_v56 = vadd.f32 %v2725_v51, %v8486_v63  ;;  %v8499_v63 = vld [vmem:[#allocation42_spill] sm:$0xff] }
 0x4ed   : > { %3024 = vmatmul.bf16.gmra.mxu0 %v2808_v44  ;;  %3073 = vmatmul.bf16.gmra.mxu1 %v2808_v44  ;;  %v2760_v55 = vmul.f32 %v7671_v5, %v2726_v56  ;;  %v8500_v56 = vmax.f32 %v8499_v63, 0.0 }
 0x4ee   : > { %3122 = vmatmul.bf16.gmra.mxu2 %v2808_v44  ;;  %3171 = vmatmul.bf16.gmra.mxu3 %v2808_v44 }
 0x4ef   : > { %v7736_v49 = vadd.f32 %v7677_v12, %v2760_v55 }
 0x4f1   : > { %v8372_v10 = vmax.f32 %v7736_v49, 0.0 }
 0x4f2   : > { %v2727_v35 = vpop.f32.mrf.mxu3 }
 0x4f3   : > { %v2728_v57 = vadd.f32 %v2727_v35, %v8488_v32 }
 0x4f5   : > { %v2761_v1 = vmul.f32 %v7671_v5, %v2728_v57 }
 0x4f7   : > { %v7740_v30 = vadd.f32 %v7677_v12, %v2761_v1 }
 0x4f9   : > { %v8373_v47 = vmax.f32 %v7740_v30, 0.0 }
 0x4fa   : > { %v2730_v22 = vpop.f32.mrf.mxu3 }
 0x4fb   : > { %v2809_v54 = vpack.c.bf16 %v8373_v47, %v8372_v10  ;;  %v2731_v43 = vadd.f32 %v2730_v22, %v8490_v34  ;;  %v8502_v34 = vmax.f32 %v8501_v29, 0.0 }
 0x4fd   : > { %3029 = vmatmul.bf16.gmra.mxu0 %v2809_v54  ;;  %3078 = vmatmul.bf16.gmra.mxu1 %v2809_v54  ;;  %v2762_v27 = vmul.f32 %v7671_v5, %v2731_v43 }
 0x4fe   : > { %3127 = vmatmul.bf16.gmra.mxu2 %v2809_v54  ;;  %3176 = vmatmul.bf16.gmra.mxu3 %v2809_v54 }
 0x4ff   : > { %v7754_v20 = vadd.f32 %v7677_v12, %v2762_v27 }
 0x501   : > { %v8374_v3 = vmax.f32 %v7754_v20, 0.0 }
 0x502   : > { %v2732_v60 = vpop.f32.mrf.mxu3 }
 0x503   : > { %v2733_v25 = vadd.f32 %v2732_v60, %v8492_v42  ;;  %v8504_v42 = vmax.f32 %v8503_v48, 0.0 }
 0x505   : > { %v2763_v7 = vmul.f32 %v7671_v5, %v2733_v25 }
 0x507   : > { %v7758_v45 = vadd.f32 %v7677_v12, %v2763_v7 }
 0x509   : > { %v8375_v19 = vmax.f32 %v7758_v45, 0.0 }
 0x50a   : > { %v2735_v2 = vpop.f32.mrf.mxu3 }
 0x50b   : > { %v2810_v41 = vpack.c.bf16 %v8375_v19, %v8374_v3  ;;  %v2736_v58 = vadd.f32 %v2735_v2, %v8494_v4 }
 0x50d   : > { %3034 = vmatmul.bf16.gmra.mxu0 %v2810_v41  ;;  %3083 = vmatmul.bf16.gmra.mxu1 %v2810_v41  ;;  %v2764_v53 = vmul.f32 %v7671_v5, %v2736_v58 }
 0x50e   : > { %3132 = vmatmul.bf16.gmra.mxu2 %v2810_v41  ;;  %3181 = vmatmul.bf16.gmra.mxu3 %v2810_v41 }
 0x50f   : > { %v7772_v39 = vadd.f32 %v7677_v12, %v2764_v53 }
 0x511   : > { %v8376_v33 = vmax.f32 %v7772_v39, 0.0 }
 0x512   : > { %v2737_v40 = vpop.f32.mrf.mxu3 }
 0x513   : > { %v2738_v38 = vadd.f32 %v2737_v40, %v8496_v24 }
 0x515   : > { %v2765_v13 = vmul.f32 %v7671_v5, %v2738_v38 }
 0x517   : > { %v7776_v11 = vadd.f32 %v7677_v12, %v2765_v13 }
 0x519   : > { %v8377_v15 = vmax.f32 %v7776_v11, 0.0 }
 0x51a   : > { %v2740_v8 = vpop.f32.mrf.mxu3 }
 0x51b   : > { %v2811_v46 = vpack.c.bf16 %v8377_v15, %v8376_v33  ;;  %v2741_v51 = vadd.f32 %v2740_v8, %v8498_v26 }
 0x51d   : > { %3039 = vmatmul.bf16.gmra.mxu0 %v2811_v46  ;;  %3088 = vmatmul.bf16.gmra.mxu1 %v2811_v46  ;;  %v2766_v44 = vmul.f32 %v7671_v5, %v2741_v51 }
 0x51e   : > { %3137 = vmatmul.bf16.gmra.mxu2 %v2811_v46  ;;  %3186 = vmatmul.bf16.gmra.mxu3 %v2811_v46 }
 0x51f   : > { %v7790_v35 = vadd.f32 %v7677_v12, %v2766_v44 }
 0x521   : > { %v8379_v57 = vmax.f32 %v7790_v35, 0.0 }
 0x522   : > { %v2742_v18 = vpop.f32.mrf.mxu3 }
 0x523   : > { %v2743_v55 = vadd.f32 %v2742_v18, %v8500_v56 }
 0x525   : > { %v2767_v23 = vmul.f32 %v7671_v5, %v2743_v55 }
 0x527   : > { %v7794_v32 = vadd.f32 %v7677_v12, %v2767_v23 }
 0x529   : > { %v8380_v1 = vmax.f32 %v7794_v32, 0.0 }
 0x52a   : > { %v2745_v22 = vpop.f32.mrf.mxu3 }
 0x52b   : > { %v2812_v54 = vpack.c.bf16 %v8380_v1, %v8379_v57  ;;  %v2746_v43 = vadd.f32 %v2745_v22, %v8502_v34 }
 0x52d   : > { %3044 = vmatmul.bf16.gmra.mxu0 %v2812_v54  ;;  %3093 = vmatmul.bf16.gmra.mxu1 %v2812_v54  ;;  %v2768_v27 = vmul.f32 %v7671_v5, %v2746_v43 }
 0x52e   : > { %3142 = vmatmul.bf16.gmra.mxu2 %v2812_v54  ;;  %3191 = vmatmul.bf16.gmra.mxu3 %v2812_v54 }
 0x52f   : > { %v7808_v7 = vadd.f32 %v7677_v12, %v2768_v27 }
 0x531   : > { %v8381_v36 = vmax.f32 %v7808_v7, 0.0 }
 0x532   : > { %v2747_v60 = vpop.f32.mrf.mxu3 }
 0x533   : > { %v2748_v25 = vadd.f32 %v2747_v60, %v8504_v42 }
 0x535   : > { %v2769_v2 = vmul.f32 %v7671_v5, %v2748_v25 }
 0x537   : > { %v7812_v41 = vadd.f32 %v7677_v12, %v2769_v2 }
 0x539   : > { %v8378_v4 = vmax.f32 %v7812_v41, 0.0 }
 0x53b   : > { %v2813_v58 = vpack.c.bf16 %v8378_v4, %v8381_v36 }
 0x53d   : > { %3049 = vmatmul.bf16.gmra.mxu0 %v2813_v58  ;;  %3098 = vmatmul.bf16.gmra.mxu1 %v2813_v58 }
 0x53e   : > { %3147 = vmatmul.bf16.gmra.mxu2 %v2813_v58  ;;  %3196 = vmatmul.bf16.gmra.mxu3 %v2813_v58 }
 0x54a   : > { %v3015_v53 = vpop.f32.mrf.mxu0  ;;  %v3064_v40 = vpop.f32.mrf.mxu1 }
 0x54b   : > { %v3202_v31 = vpack.c.bf16 %v3064_v40, %v3015_v53 }
 0x54d   : > { %3218 = vst [vmem:[#allocation2] sm:$0xff] %v3202_v31 }
 0x551   : > { %v3113_v5 = vpop.f32.mrf.mxu2  ;;  %v3162_v12 = vpop.f32.mrf.mxu3 }
 0x552   : > { %v3234_v24 = vpack.c.bf16 %v3162_v12, %v3113_v5  ;;  %v3017_v38 = vpop.f32.mrf.mxu0  ;;  %v3066_v13 = vpop.f32.mrf.mxu1 }
 0x553   : > { %v3203_v8 = vpack.c.bf16 %v3066_v13, %v3017_v38 }
 0x554   : > { %3250 = vst [vmem:[#allocation2 + $0x80] sm:$0xff] %v3234_v24 }
 0x555   : > { %3219 = vst [vmem:[#allocation2 + $0x8] sm:$0xff] %v3203_v8 }
 0x559   : > { %v3115_v46 = vpop.f32.mrf.mxu2  ;;  %v3164_v50 = vpop.f32.mrf.mxu3 }
 0x55a   : > { %v3235_v26 = vpack.c.bf16 %v3164_v50, %v3115_v46  ;;  %v3020_v51 = vpop.f32.mrf.mxu0  ;;  %v3069_v44 = vpop.f32.mrf.mxu1 }
 0x55b   : > { %v3204_v18 = vpack.c.bf16 %v3069_v44, %v3020_v51 }
 0x55c   : > { %3251 = vst [vmem:[#allocation2 + $0x88] sm:$0xff] %v3235_v26 }
 0x55d   : > { %3220 = vst [vmem:[#allocation2 + $0x10] sm:$0xff] %v3204_v18 }
 0x561   : > { %v3118_v63 = vpop.f32.mrf.mxu2  ;;  %v3167_v56 = vpop.f32.mrf.mxu3 }
 0x562   : > { %v3236_v55 = vpack.c.bf16 %v3167_v56, %v3118_v63  ;;  %v3022_v23 = vpop.f32.mrf.mxu0  ;;  %v3071_v22 = vpop.f32.mrf.mxu1 }
 0x563   : > { %v3205_v54 = vpack.c.bf16 %v3071_v22, %v3022_v23 }
 0x564   : > { %3252 = vst [vmem:[#allocation2 + $0x90] sm:$0xff] %v3236_v55 }
 0x565   : > { %3221 = vst [vmem:[#allocation2 + $0x18] sm:$0xff] %v3205_v54 }
 0x569   : > { %v3120_v29 = vpop.f32.mrf.mxu2  ;;  %v3169_v34 = vpop.f32.mrf.mxu3 }
 0x56a   : > { %v3237_v43 = vpack.c.bf16 %v3169_v34, %v3120_v29  ;;  %v3025_v27 = vpop.f32.mrf.mxu0  ;;  %v3074_v60 = vpop.f32.mrf.mxu1 }
 0x56b   : > { %v3206_v48 = vpack.c.bf16 %v3074_v60, %v3025_v27 }
 0x56c   : > { %3253 = vst [vmem:[#allocation2 + $0x98] sm:$0xff] %v3237_v43 }
 0x56d   : > { %3222 = vst [vmem:[#allocation2 + $0x20] sm:$0xff] %v3206_v48 }
 0x571   : > { %v3123_v42 = vpop.f32.mrf.mxu2  ;;  %v3172_v25 = vpop.f32.mrf.mxu3 }
 0x572   : > { %v3238_v2 = vpack.c.bf16 %v3172_v25, %v3123_v42  ;;  %v3027_v58 = vpop.f32.mrf.mxu0  ;;  %v3076_v53 = vpop.f32.mrf.mxu1 }
 0x573   : > { %v3207_v40 = vpack.c.bf16 %v3076_v53, %v3027_v58 }
 0x574   : > { %3254 = vst [vmem:[#allocation2 + $0xa0] sm:$0xff] %v3238_v2 }
 0x575   : > { %3223 = vst [vmem:[#allocation2 + $0x28] sm:$0xff] %v3207_v40 }
 0x579   : > { %v3125_v31 = vpop.f32.mrf.mxu2  ;;  %v3174_v5 = vpop.f32.mrf.mxu3 }
 0x57a   : > { %v3239_v12 = vpack.c.bf16 %v3174_v5, %v3125_v31  ;;  %v3030_v24 = vpop.f32.mrf.mxu0  ;;  %v3079_v38 = vpop.f32.mrf.mxu1 }
 0x57b   : > { %v3208_v13 = vpack.c.bf16 %v3079_v38, %v3030_v24 }
 0x57c   : > { %3255 = vst [vmem:[#allocation2 + $0xa8] sm:$0xff] %v3239_v12 }
 0x57d   : > { %3224 = vst [vmem:[#allocation2 + $0x30] sm:$0xff] %v3208_v13 }
 0x581   : > { %v3128_v8 = vpop.f32.mrf.mxu2  ;;  %v3177_v46 = vpop.f32.mrf.mxu3 }
 0x582   : > { %v3240_v50 = vpack.c.bf16 %v3177_v46, %v3128_v8  ;;  %v3032_v26 = vpop.f32.mrf.mxu0  ;;  %v3081_v51 = vpop.f32.mrf.mxu1 }
 0x583   : > { %v3209_v44 = vpack.c.bf16 %v3081_v51, %v3032_v26 }
 0x584   : > { %3256 = vst [vmem:[#allocation2 + $0xb0] sm:$0xff] %v3240_v50 }
 0x585   : > { %3225 = vst [vmem:[#allocation2 + $0x38] sm:$0xff] %v3209_v44  ;;  %v5572_v44 = vld [vmem:[#allocation2 + $0x170] sm:$0xf] }
 0x589   : > { %v3130_v18 = vpop.f32.mrf.mxu2  ;;  %v3179_v63 = vpop.f32.mrf.mxu3 }
 0x58a   : > { %v3241_v56 = vpack.c.bf16 %v3179_v63, %v3130_v18  ;;  %v3035_v55 = vpop.f32.mrf.mxu0  ;;  %v3084_v23 = vpop.f32.mrf.mxu1  ;;  %v5847_v18 = vld [vmem:[#allocation2 + $0x174] sm:$0xf0] }
 0x58b   : > { %v3210_v22 = vpack.c.bf16 %v3084_v23, %v3035_v55  ;;  %v5573_v63 = vor.u32 %v5847_v18, %v5572_v44 }
 0x58c   : > { %3257 = vst [vmem:[#allocation2 + $0xb8] sm:$0xff] %v3241_v56 }
 0x58d   : > { %3226 = vst [vmem:[#allocation2 + $0x40] sm:$0xff] %v3210_v22  ;;  %3690 = vmatpush.bf16.msra.mxu2 %v5573_v63  ;;  %v5532_v63 = vld [vmem:[#allocation2 + $0x120] sm:$0xf] }
 0x591   : > { %v3133_v54 = vpop.f32.mrf.mxu2  ;;  %v3182_v29 = vpop.f32.mrf.mxu3 }
 0x592   : > { %v3242_v34 = vpack.c.bf16 %v3182_v29, %v3133_v54  ;;  %v3037_v43 = vpop.f32.mrf.mxu0  ;;  %v3086_v27 = vpop.f32.mrf.mxu1 }
 0x593   : > { %v3211_v60 = vpack.c.bf16 %v3086_v27, %v3037_v43  ;;  %v5845_v43 = vld [vmem:[#allocation2 + $0x164] sm:$0xf0] }
 0x594   : > { %3258 = vst [vmem:[#allocation2 + $0xc0] sm:$0xff] %v3242_v34  ;;  %v5564_v34 = vld [vmem:[#allocation2 + $0x160] sm:$0xf] }
 0x595   : > { %3227 = vst [vmem:[#allocation2 + $0x48] sm:$0xff] %v3211_v60  ;;  %v5565_v27 = vor.u32 %v5845_v43, %v5564_v34  ;;  %v5556_v60 = vld [vmem:[#allocation2 + $0x150] sm:$0xf] }
 0x597   : > { %3691 = vmatpush.bf16.msra.mxu2 %v5565_v27 }
 0x599   : > { %v3135_v48 = vpop.f32.mrf.mxu2  ;;  %v3184_v42 = vpop.f32.mrf.mxu3 }
 0x59a   : > { %v3243_v25 = vpack.c.bf16 %v3184_v42, %v3135_v48  ;;  %v3040_v2 = vpop.f32.mrf.mxu0  ;;  %v3089_v58 = vpop.f32.mrf.mxu1  ;;  %v5843_v48 = vld [vmem:[#allocation2 + $0x154] sm:$0xf0] }
 0x59b   : > { %v3212_v53 = vpack.c.bf16 %v3089_v58, %v3040_v2  ;;  %v5557_v42 = vor.u32 %v5843_v48, %v5556_v60  ;;  %v5516_v48 = vld [vmem:[#allocation2 + $0x100] sm:$0xf] }
 0x59c   : > { %3259 = vst [vmem:[#allocation2 + $0xc8] sm:$0xff] %v3243_v25 }
 0x59d   : > { %3228 = vst [vmem:[#allocation2 + $0x50] sm:$0xff] %v3212_v53  ;;  %3692 = vmatpush.bf16.msra.mxu2 %v5557_v42 }
 0x5a1   : > { %v3138_v40 = vpop.f32.mrf.mxu2  ;;  %v3187_v31 = vpop.f32.mrf.mxu3 }
 0x5a2   : > { %v3244_v5 = vpack.c.bf16 %v3187_v31, %v3138_v40  ;;  %v3042_v12 = vpop.f32.mrf.mxu0  ;;  %v3091_v24 = vpop.f32.mrf.mxu1 }
 0x5a3   : > { %v3213_v38 = vpack.c.bf16 %v3091_v24, %v3042_v12  ;;  %v5841_v12 = vld [vmem:[#allocation2 + $0x144] sm:$0xf0] }
 0x5a4   : > { %3260 = vst [vmem:[#allocation2 + $0xd0] sm:$0xff] %v3244_v5  ;;  %v5548_v5 = vld [vmem:[#allocation2 + $0x140] sm:$0xf] }
 0x5a5   : > { %3229 = vst [vmem:[#allocation2 + $0x58] sm:$0xff] %v3213_v38  ;;  %v5549_v24 = vor.u32 %v5841_v12, %v5548_v5  ;;  %v5540_v38 = vld [vmem:[#allocation2 + $0x130] sm:$0xf] }
 0x5a7   : > { %3693 = vmatpush.bf16.msra.mxu2 %v5549_v24 }
 0x5a9   : > { %v3140_v13 = vpop.f32.mrf.mxu2  ;;  %v3189_v8 = vpop.f32.mrf.mxu3 }
 0x5aa   : > { %v3245_v46 = vpack.c.bf16 %v3189_v8, %v3140_v13  ;;  %v3045_v50 = vpop.f32.mrf.mxu0  ;;  %v3094_v26 = vpop.f32.mrf.mxu1  ;;  %v5839_v13 = vld [vmem:[#allocation2 + $0x134] sm:$0xf0] }
 0x5ab   : > { %v3214_v51 = vpack.c.bf16 %v3094_v26, %v3045_v50  ;;  %v5541_v8 = vor.u32 %v5839_v13, %v5540_v38 }
 0x5ac   : > { %3261 = vst [vmem:[#allocation2 + $0xd8] sm:$0xff] %v3245_v46 }
 0x5ad   : > { %3230 = vst [vmem:[#allocation2 + $0x60] sm:$0xff] %v3214_v51  ;;  %3694 = vmatpush.bf16.msra.mxu2 %v5541_v8  ;;  %v5811_v8 = vld [vmem:[#allocation2 + $0x54] sm:$0xf0] }
 0x5b1   : > { %v3143_v56 = vpop.f32.mrf.mxu2  ;;  %v3192_v55 = vpop.f32.mrf.mxu3 }
 0x5b2   : > { %v3246_v23 = vpack.c.bf16 %v3192_v55, %v3143_v56  ;;  %v3047_v22 = vpop.f32.mrf.mxu0  ;;  %v3096_v54 = vpop.f32.mrf.mxu1  ;;  %v5837_v56 = vld [vmem:[#allocation2 + $0x124] sm:$0xf0] }
 0x5b3   : > { %v3215_v29 = vpack.c.bf16 %v3096_v54, %v3047_v22  ;;  %v5533_v55 = vor.u32 %v5837_v56, %v5532_v63  ;;  %v5835_v22 = vld [vmem:[#allocation2 + $0x114] sm:$0xf0]  ;;  %v8505_v63 = vld [vmem:[#allocation45_spill] sm:$0xff] }
 0x5b4   : > { %3262 = vst [vmem:[#allocation2 + $0xe0] sm:$0xff] %v3246_v23  ;;  %v5524_v23 = vld [vmem:[#allocation2 + $0x110] sm:$0xf]  ;;  %v5436_v12 = vld [vmem:[#allocation2 + $0x60] sm:$0xf] }
 0x5b5   : > { %3231 = vst [vmem:[#allocation2 + $0x68] sm:$0xff] %v3215_v29  ;;  %3695 = vmatpush.bf16.msra.mxu2 %v5533_v55  ;;  %v5525_v54 = vor.u32 %v5835_v22, %v5524_v23  ;;  %v5812_v24 = vld [vmem:[#allocation2 + $0x64] sm:$0xf]  ;;  %v5809_v22 = vld [vmem:[#allocation2 + $0x44] sm:$0xf0] }
 0x5b9   : > { %v3145_v25 = vpop.f32.mrf.mxu2  ;;  %v3194_v2 = vpop.f32.mrf.mxu3  ;;  %3696 = vmatpush.bf16.msra.mxu2 %v5525_v54  ;;  %v5422_v54 = vld [vmem:[#allocation2 + $0x48] sm:$0xf0] }
 0x5ba   : > { %v3247_v58 = vpack.c.bf16 %v3194_v2, %v3145_v25  ;;  %v3050_v53 = vpop.f32.mrf.mxu0  ;;  %v3099_v40 = vpop.f32.mrf.mxu1 }
 0x5bb   : > { %v3216_v31 = vpack.c.bf16 %v3099_v40, %v3050_v53  ;;  %v5833_v53 = vld [vmem:[#allocation2 + $0x104] sm:$0xf0] }
 0x5bc   : > { %3263 = vst [vmem:[#allocation2 + $0xe8] sm:$0xff] %v3247_v58  ;;  %v5813_v40 = vld [vmem:[#allocation2 + $0x64] sm:$0xf0]  ;;  %v5517_v5 = vor.u32 %v5833_v53, %v5516_v48 }
 0x5bd   : > { %3232 = vst [vmem:[#allocation2 + $0x70] sm:$0xff] %v3216_v31  ;;  %v5438_v31 = vld [vmem:[#allocation2 + $0x68] sm:$0xf0]  ;;  %v5437_v38 = vor.u32 %v5813_v40, %v5436_v12  ;;  %v5412_v40 = vld [vmem:[#allocation2 + $0x30] sm:$0xf] }
 0x5be   : > { %3697 = vmatpush.bf16.msra.mxu2 %v5517_v5  ;;  %v5441_v13 = vor.u32 %v5812_v24, %v5438_v31  ;;  %v5806_v31 = vld [vmem:[#allocation2 + $0x34] sm:$0xf]  ;;  %v5825_v24 = vld [vmem:[#allocation2 + $0xc4] sm:$0xf0] }
 0x5c1   : > { %v3148_v46 = vpop.f32.mrf.mxu2  ;;  %v3197_v50 = vpop.f32.mrf.mxu3  ;;  %3698 = vmatmul.bf16.vlgmr.msra.gmra.mxu2 %v8505_v63 }
 0x5c2   : > { %v3248_v26 = vpack.c.bf16 %v3197_v50, %v3148_v46  ;;  %v3052_v51 = vpop.f32.mrf.mxu0  ;;  %v3101_v44 = vpop.f32.mrf.mxu1  ;;  %v5430_v46 = vld [vmem:[#allocation2 + $0x58] sm:$0xf0] }
 0x5c3   : > { %v3217_v18 = vpack.c.bf16 %v3101_v44, %v3052_v51  ;;  %v5428_v44 = vld [vmem:[#allocation2 + $0x50] sm:$0xf]  ;;  %v5829_v23 = vld [vmem:[#allocation2 + $0xe4] sm:$0xf0] }
 0x5c4   : > { %3264 = vst [vmem:[#allocation2 + $0xf0] sm:$0xff] %v3248_v26  ;;  %v5444_v27 = vld [vmem:[#allocation2 + $0x70] sm:$0xf]  ;;  %v5814_v60 = vld [vmem:[#allocation2 + $0x74] sm:$0xf]  ;;  %v5429_v56 = vor.u32 %v5811_v8, %v5428_v44 }
 0x5c5   : > { %3233 = vst [vmem:[#allocation2 + $0x78] sm:$0xff] %v3217_v18  ;;  %v5810_v18 = vld [vmem:[#allocation2 + $0x54] sm:$0xf]  ;;  %v5484_v8 = vld [vmem:[#allocation2 + $0xc0] sm:$0xf] }
 0x5c6   : > { %v5433_v55 = vor.u32 %v5810_v18, %v5430_v46  ;;  %v5485_v46 = vor.u32 %v5825_v24, %v5484_v8  ;;  %v5823_v18 = vld [vmem:[#allocation2 + $0xb4] sm:$0xf0]  ;;  %v5502_v8 = vld [vmem:[#allocation2 + $0xe8] sm:$0xf0] }
 0x5c7   : > { %v5819_v24 = vld [vmem:[#allocation2 + $0x94] sm:$0xf0] }
 0x5c9   : > { %v3150_v29 = vpop.f32.mrf.mxu2  ;;  %v3199_v34 = vpop.f32.mrf.mxu3 }
 0x5ca   : > { %v3249_v43 = vpack.c.bf16 %v3199_v34, %v3150_v29  ;;  %v5500_v29 = vld [vmem:[#allocation2 + $0xe0] sm:$0xf] }
 0x5cb   : > { %v5508_v50 = vld [vmem:[#allocation2 + $0xf0] sm:$0xf]  ;;  %v5501_v34 = vor.u32 %v5829_v23, %v5500_v29  ;;  %v5802_v29 = vld [vmem:[#allocation2 + $0x14] sm:$0xf] }
 0x5cc   : > { %3265 = vst [vmem:[#allocation2 + $0xf8] sm:$0xff] %v3249_v43  ;;  %v5815_v42 = vld [vmem:[#allocation2 + $0x74] sm:$0xf0]  ;;  %v5446_v25 = vld [vmem:[#allocation2 + $0x78] sm:$0xf0] }
 0x5cd   : > { %v5445_v2 = vor.u32 %v5815_v42, %v5444_v27  ;;  %v5449_v58 = vor.u32 %v5814_v60, %v5446_v25  ;;  %v5420_v43 = vld [vmem:[#allocation2 + $0x40] sm:$0xf]  ;;  %v5808_v27 = vld [vmem:[#allocation2 + $0x44] sm:$0xf]  ;;  %v5827_v42 = vld [vmem:[#allocation2 + $0xd4] sm:$0xf0] }
 0x5ce   : > { %v5421_v60 = vor.u32 %v5809_v22, %v5420_v43  ;;  %v5425_v48 = vor.u32 %v5808_v27, %v5422_v54  ;;  %v5807_v25 = vld [vmem:[#allocation2 + $0x34] sm:$0xf0]  ;;  %v5476_v23 = vld [vmem:[#allocation2 + $0xb0] sm:$0xf] }
 0x5cf   : > { %3592 = vmatpush.bf16.msra.mxu0 %v5445_v2  ;;  %3739 = vmatpush.bf16.msra.mxu3 %v5449_v58  ;;  %v5414_v2 = vld [vmem:[#allocation2 + $0x38] sm:$0xf0]  ;;  %v5492_v58 = vld [vmem:[#allocation2 + $0xd0] sm:$0xf]  ;;  %v5413_v5 = vor.u32 %v5807_v25, %v5412_v40  ;;  %v5477_v22 = vor.u32 %v5823_v18, %v5476_v23  ;;  %v5468_v25 = vld [vmem:[#allocation2 + $0xa0] sm:$0xf] }
 0x5d0   : > { %v5493_v53 = vor.u32 %v5827_v42, %v5492_v58  ;;  %v5417_v12 = vor.u32 %v5806_v31, %v5414_v2  ;;  %v5396_v54 = vld [vmem:[#allocation2 + $0x10] sm:$0xf]  ;;  %v5390_v42 = vld [vmem:[#allocation2 + $0x8] sm:$0xf0]  ;;  %v5800_v40 = vld [vmem:[#allocation2 + $0x4] sm:$0xf] }
 0x5d1   : > { %v5452_v18 = vld [vmem:[#allocation2 + $0x80] sm:$0xf]  ;;  %v5826_v23 = vld [vmem:[#allocation2 + $0xd4] sm:$0xf] }
 0x5d3   : > { %3593 = vmatpush.bf16.msra.mxu0 %v5437_v38  ;;  %3740 = vmatpush.bf16.msra.mxu3 %v5441_v13  ;;  %v5831_v26 = vld [vmem:[#allocation2 + $0xf4] sm:$0xf0]  ;;  %v5805_v38 = vld [vmem:[#allocation2 + $0x24] sm:$0xf0]  ;;  %v5406_v13 = vld [vmem:[#allocation2 + $0x28] sm:$0xf0] }
 0x5d4   : > { %v5509_v51 = vor.u32 %v5831_v26, %v5508_v50  ;;  %v5404_v50 = vld [vmem:[#allocation2 + $0x20] sm:$0xf]  ;;  %v5804_v26 = vld [vmem:[#allocation2 + $0x24] sm:$0xf]  ;;  %v5510_v2 = vld [vmem:[#allocation2 + $0xf8] sm:$0xf0] }
 0x5d5   : > { %v5409_v44 = vor.u32 %v5804_v26, %v5406_v13  ;;  %v5460_v13 = vld [vmem:[#allocation2 + $0x90] sm:$0xf]  ;;  %v5817_v26 = vld [vmem:[#allocation2 + $0x84] sm:$0xf0] }
 0x5d6   : > { %3641 = vmatpush.bf16.msra.mxu1 %v5509_v51  ;;  %v5405_v51 = vor.u32 %v5805_v38, %v5404_v50  ;;  %v5828_v50 = vld [vmem:[#allocation2 + $0xe4] sm:$0xf] }
 0x5d7   : > { %3594 = vmatpush.bf16.msra.mxu0 %v5429_v56  ;;  %3741 = vmatpush.bf16.msra.mxu3 %v5433_v55  ;;  %v5803_v56 = vld [vmem:[#allocation2 + $0x14] sm:$0xf0]  ;;  %v5398_v55 = vld [vmem:[#allocation2 + $0x18] sm:$0xf0] }
 0x5d8   : > { %v5397_v43 = vor.u32 %v5803_v56, %v5396_v54  ;;  %v5401_v27 = vor.u32 %v5802_v29, %v5398_v55  ;;  %v5494_v56 = vld [vmem:[#allocation2 + $0xd8] sm:$0xf0]  ;;  %v5453_v55 = vor.u32 %v5817_v26, %v5452_v18  ;;  %v5486_v54 = vld [vmem:[#allocation2 + $0xc8] sm:$0xf0]  ;;  %v8508_v29 = vld [vmem:[#allocation49_spill] sm:$0xff] }
 0x5d9   : > { %v8514_v26 = vld [vmem:[#allocation55_spill] sm:$0xff]  ;;  %v8517_v18 = vld [vmem:[#allocation58_spill] sm:$0xff] }
 0x5da   : > { %3642 = vmatpush.bf16.msra.mxu1 %v5501_v34  ;;  %v8506_v34 = vld [vmem:[#allocation46_spill] sm:$0xff] }
 0x5db   : > { %3595 = vmatpush.bf16.msra.mxu0 %v5421_v60  ;;  %3742 = vmatpush.bf16.msra.mxu3 %v5425_v48  ;;  %v5821_v60 = vld [vmem:[#allocation2 + $0xa4] sm:$0xf0] }
 0x5dc   : > { %3703 = vmatmul.bf16.gmra.mxu2 %v8506_v34  ;;  %v5801_v48 = vld [vmem:[#allocation2 + $0x4] sm:$0xf0]  ;;  %v5469_v58 = vor.u32 %v5821_v60, %v5468_v25 }
 0x5de   : > { %3643 = vmatpush.bf16.msra.mxu1 %v5493_v53  ;;  %v5388_v53 = vld [vmem:[#allocation2] sm:$0xf] }
 0x5df   : > { %3596 = vmatpush.bf16.msra.mxu0 %v5413_v5  ;;  %3743 = vmatpush.bf16.msra.mxu3 %v5417_v12  ;;  %v5389_v31 = vor.u32 %v5801_v48, %v5388_v53  ;;  %v5393_v5 = vor.u32 %v5800_v40, %v5390_v42  ;;  %v5830_v12 = vld [vmem:[#allocation2 + $0xf4] sm:$0xf]  ;;  %v5478_v48 = vld [vmem:[#allocation2 + $0xb8] sm:$0xf0]  ;;  %v8510_v53 = vld [vmem:[#allocation50_spill] sm:$0xff] }
 0x5e0   : > { %v5513_v38 = vor.u32 %v5830_v12, %v5510_v2  ;;  %v5822_v42 = vld [vmem:[#allocation2 + $0xb4] sm:$0xf]  ;;  %v5470_v2 = vld [vmem:[#allocation2 + $0xa8] sm:$0xf0] }
 0x5e1   : > { %v5481_v25 = vor.u32 %v5822_v42, %v5478_v48  ;;  %v5566_v42 = vld [vmem:[#allocation2 + $0x168] sm:$0xf0] }
 0x5e2   : > { %3644 = vmatpush.bf16.msra.mxu1 %v5485_v46  ;;  %v5461_v46 = vor.u32 %v5819_v24, %v5460_v13  ;;  %v5454_v24 = vld [vmem:[#allocation2 + $0x88] sm:$0xf0]  ;;  %v8512_v13 = vld [vmem:[#allocation51_spill] sm:$0xff] }
 0x5e3   : > { %3597 = vmatpush.bf16.msra.mxu0 %v5405_v51  ;;  %3744 = vmatpush.bf16.msra.mxu3 %v5409_v44  ;;  %v8507_v51 = vld [vmem:[#allocation47_spill] sm:$0xff]  ;;  %v5505_v44 = vor.u32 %v5828_v50, %v5502_v8  ;;  %v5816_v8 = vld [vmem:[#allocation2 + $0x84] sm:$0xf] }
 0x5e4   : > { %v8513_v50 = vld [vmem:[#allocation53_spill] sm:$0xff] }
 0x5e6   : > { %3645 = vmatpush.bf16.msra.mxu1 %v5477_v22  ;;  %v5497_v22 = vor.u32 %v5826_v23, %v5494_v56  ;;  %v8518_v56 = vld [vmem:[#allocation57_spill] sm:$0xff] }
 0x5e7   : > { %3598 = vmatpush.bf16.msra.mxu0 %v5397_v43  ;;  %3745 = vmatpush.bf16.msra.mxu3 %v5401_v27  ;;  %v8509_v43 = vld [vmem:[#allocation48_spill] sm:$0xff]  ;;  %v5824_v27 = vld [vmem:[#allocation2 + $0xc4] sm:$0xf] }
 0x5e8   : > { %v5489_v60 = vor.u32 %v5824_v27, %v5486_v54  ;;  %v8520_v23 = vld [vmem:[#allocation61_spill] sm:$0xff]  ;;  %v5846_v54 = vld [vmem:[#allocation2 + $0x174] sm:$0xf]  ;;  %v5574_v27 = vld [vmem:[#allocation2 + $0x178] sm:$0xf0] }
 0x5e9   : > { %v5577_v48 = vor.u32 %v5846_v54, %v5574_v27  ;;  %v5534_v54 = vld [vmem:[#allocation2 + $0x128] sm:$0xf0] }
 0x5ea   : > { %3646 = vmatpush.bf16.msra.mxu1 %v5469_v58  ;;  %v5820_v58 = vld [vmem:[#allocation2 + $0xa4] sm:$0xf] }
 0x5eb   : > { %3599 = vmatpush.bf16.msra.mxu0 %v5389_v31  ;;  %3746 = vmatpush.bf16.msra.mxu3 %v5393_v5  ;;  %v5473_v40 = vor.u32 %v5820_v58, %v5470_v2  ;;  %v5462_v31 = vld [vmem:[#allocation2 + $0x98] sm:$0xf0]  ;;  %v5818_v5 = vld [vmem:[#allocation2 + $0x94] sm:$0xf] }
 0x5ec   : > { %3708 = vmatmul.bf16.gmra.mxu2 %v8508_v29  ;;  %v5465_v12 = vor.u32 %v5818_v5, %v5462_v31  ;;  %v5842_v2 = vld [vmem:[#allocation2 + $0x154] sm:$0xf]  ;;  %v5558_v58 = vld [vmem:[#allocation2 + $0x158] sm:$0xf0]  ;;  %v5840_v31 = vld [vmem:[#allocation2 + $0x144] sm:$0xf] }
 0x5ed   : > { %v5550_v5 = vld [vmem:[#allocation2 + $0x148] sm:$0xf0] }
 0x5ee   : > { %3647 = vmatpush.bf16.msra.mxu1 %v5461_v46  ;;  %3600 = vmatmul.bf16.vlgmr.msra.gmra.mxu0 %v8507_v51  ;;  %v5457_v46 = vor.u32 %v5816_v8, %v5454_v24  ;;  %v8523_v24 = vld [vmem:[#allocation64_spill] sm:$0xff]  ;;  %v8524_v8 = vld [vmem:[#allocation63_spill] sm:$0xff] }
 0x5ef   : > { %3788 = vmatpush.bf16.msrb.mxu0 %v5513_v38  ;;  %3747 = vmatmul.bf16.vlgmr.msra.gmra.mxu3 %v8507_v51  ;;  %v8511_v38 = vld [vmem:[#allocation52_spill] sm:$0xff]  ;;  %v8515_v51 = vld [vmem:[#allocation54_spill] sm:$0xff] }
 0x5f2   : > { %3648 = vmatpush.bf16.msra.mxu1 %v5453_v55  ;;  %v8519_v55 = vld [vmem:[#allocation59_spill] sm:$0xff] }
 0x5f3   : > { %3789 = vmatpush.bf16.msrb.mxu0 %v5505_v44  ;;  %v8516_v44 = vld [vmem:[#allocation56_spill] sm:$0xff] }
 0x5f5   : > { %3649 = vmatmul.bf16.vlgmr.msra.gmra.mxu1 %v8509_v43 }
 0x5f6   : > { %3837 = vmatpush.bf16.msrb.mxu1 %v5577_v48  ;;  %v5526_v48 = vld [vmem:[#allocation2 + $0x118] sm:$0xf0] }
 0x5f7   : > { %3790 = vmatpush.bf16.msrb.mxu0 %v5497_v22  ;;  %v8521_v22 = vld [vmem:[#allocation60_spill] sm:$0xff] }
 0x5fb   : > { %3791 = vmatpush.bf16.msrb.mxu0 %v5489_v60  ;;  %v5844_v60 = vld [vmem:[#allocation2 + $0x164] sm:$0xf] }
 0x5fc   : > { %3713 = vmatmul.bf16.gmra.mxu2 %v8511_v38 }
 0x5fe   : > { %3605 = vmatmul.bf16.gmra.mxu0 %v8510_v53 }
 0x5ff   : > { %3792 = vmatpush.bf16.msrb.mxu0 %v5481_v25  ;;  %3752 = vmatmul.bf16.gmra.mxu3 %v8510_v53  ;;  %v5569_v25 = vor.u32 %v5844_v60, %v5566_v42  ;;  %v5561_v53 = vor.u32 %v5842_v2, %v5558_v58  ;;  %v5834_v60 = vld [vmem:[#allocation2 + $0x114] sm:$0xf]  ;;  %v5832_v2 = vld [vmem:[#allocation2 + $0x104] sm:$0xf]  ;;  %v5518_v58 = vld [vmem:[#allocation2 + $0x108] sm:$0xf0] }
 0x600   : > { %v5529_v42 = vor.u32 %v5834_v60, %v5526_v48 }
 0x601   : > { %3838 = vmatpush.bf16.msrb.mxu1 %v5569_v25  ;;  %v8525_v25 = vld [vmem:[#allocation65_spill] sm:$0xff] }
 0x603   : > { %3793 = vmatpush.bf16.msrb.mxu0 %v5473_v40  ;;  %v8522_v40 = vld [vmem:[#allocation62_spill] sm:$0xff] }
 0x605   : > { %3654 = vmatmul.bf16.gmra.mxu1 %v8512_v13 }
 0x606   : > { %3839 = vmatpush.bf16.msrb.mxu1 %v5561_v53  ;;  %v5521_v53 = vor.u32 %v5832_v2, %v5518_v58 }
 0x607   : > { %3794 = vmatpush.bf16.msrb.mxu0 %v5465_v12  ;;  %v5553_v12 = vor.u32 %v5840_v31, %v5550_v5  ;;  %v8527_v31 = vld [vmem:[#allocation67_spill] sm:$0xff] }
 0x60a   : > { %3840 = vmatpush.bf16.msrb.mxu1 %v5553_v12  ;;  %v8528_v12 = vld [vmem:[#allocation68_spill] sm:$0xff] }
 0x60b   : > { %3795 = vmatpush.bf16.msrb.mxu0 %v5457_v46  ;;  %v5838_v46 = vld [vmem:[#allocation2 + $0x134] sm:$0xf] }
 0x60c   : > { %3718 = vmatmul.bf16.gmra.mxu2 %v8514_v26 }
 0x60e   : > { %3610 = vmatmul.bf16.gmra.mxu0 %v8513_v50 }
 0x60f   : > { %3757 = vmatmul.bf16.gmra.mxu3 %v8513_v50  ;;  %v5542_v50 = vld [vmem:[#allocation2 + $0x138] sm:$0xf0] }
 0x615   : > { %3659 = vmatmul.bf16.gmra.mxu1 %v8515_v51 }
 0x61c   : > { %3723 = vmatmul.bf16.gmra.mxu2 %v8517_v18 }
 0x61e   : > { %3615 = vmatmul.bf16.gmra.mxu0 %v8516_v44 }
 0x61f   : > { %3762 = vmatmul.bf16.gmra.mxu3 %v8516_v44  ;;  %v5836_v44 = vld [vmem:[#allocation2 + $0x124] sm:$0xf] }
 0x620   : > { %v5537_v27 = vor.u32 %v5836_v44, %v5534_v54 }
 0x625   : > { %3664 = vmatmul.bf16.gmra.mxu1 %v8518_v56 }
 0x62c   : > { %3728 = vmatmul.bf16.gmra.mxu2 %v8520_v23 }
 0x62e   : > { %3620 = vmatmul.bf16.gmra.mxu0 %v8519_v55 }
 0x62f   : > { %3767 = vmatmul.bf16.gmra.mxu3 %v8519_v55  ;;  %v5545_v55 = vor.u32 %v5838_v46, %v5542_v50  ;;  %v7855_v46 = vld [vmem:[%s8529_s7] sm:$0x3] }
 0x630   : > { %v7858_v50 = vperm.slane %v7855_v46, 0 }
 0x631   : > { %3841 = vmatpush.bf16.msrb.mxu1 %v5545_v55 }
 0x635   : > { %3669 = vmatmul.bf16.gmra.mxu1 %v8521_v22 }
 0x636   : > { %3842 = vmatpush.bf16.msrb.mxu1 %v5537_v27 }
 0x63a   : > { %3843 = vmatpush.bf16.msrb.mxu1 %v5529_v42 }
 0x63c   : > { %3733 = vmatmul.bf16.gmra.mxu2 %v8523_v24 }
 0x63e   : > { %3625 = vmatmul.bf16.gmra.mxu0 %v8522_v40  ;;  %3844 = vmatpush.bf16.msrb.mxu1 %v5521_v53 }
 0x63f   : > { %3772 = vmatmul.bf16.gmra.mxu3 %v8522_v40  ;;  %v8526_v40 = vld [vmem:[#allocation66_spill] sm:$0xff] }
 0x644   : > { %v3699_v5 = vpop.f32.mrf.mxu2 }
 0x645   : > { %3674 = vmatmul.bf16.gmra.mxu1 %v8524_v8 }
 0x64c   : > { %v7860_v55 = vpop.f32.mrf.mxu2 }
 0x64e   : > { %3630 = vmatmul.bf16.gmra.mxu0 %v8525_v25 }
 0x64f   : > { %3777 = vmatmul.bf16.gmra.mxu3 %v8525_v25 }
 0x655   : > { %3679 = vmatmul.bf16.gmra.mxu1 %v8526_v40 }
 0x65e   : > { %3635 = vmatmul.bf16.gmra.mxu0 %v8527_v31 }
 0x65f   : > { %3782 = vmatmul.bf16.gmra.mxu3 %v8527_v31  ;;  %v3704_v25 = vpop.f32.mrf.mxu2 }
 0x665   : > { %3684 = vmatmul.bf16.gmra.mxu1 %v8528_v12 }
 0x667   : > { %v7872_v62 = vpop.f32.mrf.mxu2 }
 0x66b   : > { %v3601_v44 = vpop.f32.mrf.mxu0 }
 0x66c   : > { %v3602_v54 = vadd.f32 %v3601_v44, %v7858_v50 }
 0x66e   : > { %3796 = vmatmul.bf16.vlgmr.msrb.gmra.mxu0 %v8509_v43 }
 0x672   : > { %v3650_v27 = vpop.f32.mrf.mxu1 }
 0x673   : > { %v3651_v60 = vadd.f32 %v3650_v27, %v3602_v54  ;;  %v3603_v48 = vpop.f32.mrf.mxu0 }
 0x674   : > { %v3604_v2 = vadd.f32 %v3603_v48, %v7858_v50  ;;  %v3709_v48 = vpop.f32.mrf.mxu2 }
 0x675   : > { %v7864_v42 = vadd.f32 %v3699_v5, %v3651_v60  ;;  %3845 = vmatmul.bf16.vlgmr.msrb.gmra.mxu1 %v8505_v63 }
 0x67a   : > { %v3652_v58 = vpop.f32.mrf.mxu1 }
 0x67b   : > { %v7868_v53 = vadd.f32 %v3652_v58, %v3604_v2  ;;  %v3606_v31 = vpop.f32.mrf.mxu0 }
 0x67c   : > { %v3607_v43 = vadd.f32 %v3606_v31, %v7858_v50 }
 0x67e   : > { %3801 = vmatmul.bf16.gmra.mxu0 %v8512_v13 }
 0x682   : > { %v3655_v44 = vpop.f32.mrf.mxu1 }
 0x683   : > { %v3656_v54 = vadd.f32 %v3655_v44, %v3607_v43  ;;  %v3608_v27 = vpop.f32.mrf.mxu0  ;;  %v7882_v43 = vpop.f32.mrf.mxu2 }
 0x684   : > { %v3609_v63 = vadd.f32 %v3608_v27, %v7858_v50 }
 0x685   : > { %v7874_v5 = vadd.f32 %v3704_v25, %v3656_v54  ;;  %3850 = vmatmul.bf16.gmra.mxu1 %v8506_v34 }
 0x68a   : > { %v3657_v60 = vpop.f32.mrf.mxu1 }
 0x68b   : > { %v7878_v2 = vadd.f32 %v3657_v60, %v3609_v63  ;;  %v3611_v58 = vpop.f32.mrf.mxu0 }
 0x68c   : > { %v3612_v13 = vadd.f32 %v3611_v58, %v7858_v50 }
 0x68e   : > { %3806 = vmatmul.bf16.gmra.mxu0 %v8515_v51  ;;  %v3714_v51 = vpop.f32.mrf.mxu2 }
 0x692   : > { %v3660_v31 = vpop.f32.mrf.mxu1 }
 0x693   : > { %v3661_v59 = vadd.f32 %v3660_v31, %v3612_v13  ;;  %v3613_v9 = vpop.f32.mrf.mxu0 }
 0x694   : > { %v3614_v34 = vadd.f32 %v3613_v9, %v7858_v50 }
 0x695   : > { %v7884_v25 = vadd.f32 %v3709_v48, %v3661_v59  ;;  %3855 = vmatmul.bf16.gmra.mxu1 %v8508_v29 }
 0x696   : > { %v7895_v59 = vpop.f32.mrf.mxu2 }
 0x69a   : > { %v3662_v44 = vpop.f32.mrf.mxu1 }
 0x69b   : > { %v7888_v54 = vadd.f32 %v3662_v44, %v3614_v34  ;;  %v3616_v27 = vpop.f32.mrf.mxu0 }
 0x69c   : > { %v3617_v63 = vadd.f32 %v3616_v27, %v7858_v50 }
 0x69e   : > { %3811 = vmatmul.bf16.gmra.mxu0 %v8518_v56  ;;  %v3719_v27 = vpop.f32.mrf.mxu2 }
 0x6a2   : > { %v3665_v60 = vpop.f32.mrf.mxu1 }
 0x6a3   : > { %v3666_v58 = vadd.f32 %v3665_v60, %v3617_v63  ;;  %v3618_v13 = vpop.f32.mrf.mxu0 }
 0x6a4   : > { %v3619_v9 = vadd.f32 %v3618_v13, %v7858_v50 }
 0x6a5   : > { %v7892_v31 = vadd.f32 %v3714_v51, %v3666_v58  ;;  %3860 = vmatmul.bf16.gmra.mxu1 %v8511_v38 }
 0x6aa   : > { %v3667_v29 = vpop.f32.mrf.mxu1 }
 0x6ab   : > { %v7898_v48 = vadd.f32 %v3667_v29, %v3619_v9  ;;  %v3621_v34 = vpop.f32.mrf.mxu0 }
 0x6ac   : > { %v3622_v56 = vadd.f32 %v3621_v34, %v7858_v50 }
 0x6ae   : > { %3816 = vmatmul.bf16.gmra.mxu0 %v8521_v22 }
 0x6b2   : > { %v3670_v44 = vpop.f32.mrf.mxu1 }
 0x6b3   : > { %v3671_v63 = vadd.f32 %v3670_v44, %v3622_v56  ;;  %v3623_v60 = vpop.f32.mrf.mxu0 }
 0x6b4   : > { %v3624_v38 = vadd.f32 %v3623_v60, %v7858_v50 }
 0x6b5   : > { %v7902_v51 = vadd.f32 %v3719_v27, %v3671_v63  ;;  %3865 = vmatmul.bf16.gmra.mxu1 %v8514_v26  ;;  %v3748_v63 = vpop.f32.mrf.mxu3 }
 0x6ba   : > { %v3672_v58 = vpop.f32.mrf.mxu1 }
 0x6bb   : > { %v7906_v13 = vadd.f32 %v3672_v58, %v3624_v38  ;;  %v3626_v9 = vpop.f32.mrf.mxu0 }
 0x6bc   : > { %v3627_v22 = vadd.f32 %v3626_v9, %v7858_v50 }
 0x6bd   : > { %v3750_v9 = vpop.f32.mrf.mxu3 }
 0x6be   : > { %3821 = vmatmul.bf16.gmra.mxu0 %v8524_v8 }
 0x6c2   : > { %v3675_v29 = vpop.f32.mrf.mxu1 }
 0x6c3   : > { %v7910_v34 = vadd.f32 %v3675_v29, %v3627_v22  ;;  %v3628_v61 = vpop.f32.mrf.mxu0 }
 0x6c4   : > { %v3629_v56 = vadd.f32 %v3628_v61, %v7858_v50 }
 0x6c5   : > { %3870 = vmatmul.bf16.gmra.mxu1 %v8517_v18 }
 0x6ca   : > { %v3677_v44 = vpop.f32.mrf.mxu1 }
 0x6cb   : > { %v7914_v26 = vadd.f32 %v3677_v44, %v3629_v56  ;;  %v3631_v27 = vpop.f32.mrf.mxu0 }
 0x6cc   : > { %v3632_v60 = vadd.f32 %v3631_v27, %v7858_v50 }
 0x6ce   : > { %3826 = vmatmul.bf16.gmra.mxu0 %v8526_v40  ;;  %v3753_v40 = vpop.f32.mrf.mxu3 }
 0x6d2   : > { %v3680_v8 = vpop.f32.mrf.mxu1 }
 0x6d3   : > { %v7918_v38 = vadd.f32 %v3680_v8, %v3632_v60  ;;  %v3633_v58 = vpop.f32.mrf.mxu0  ;;  %v7929_v8 = vperm.slane %v7855_v46, 1  ;;  %v3886_v46 = vsub.f32 0.0, %v7864_v42 }
 0x6d4   : > { %v3634_v18 = vadd.f32 %v3633_v58, %v7858_v50 }
 0x6d5   : > { %3875 = vmatmul.bf16.gmra.mxu1 %v8520_v23  ;;  %v3749_v23 = vadd.f32 %v3748_v63, %v7929_v8  ;;  %v3751_v6 = vadd.f32 %v3750_v9, %v7929_v8  ;;  %v3702_v63 = vadd.f32 %v7860_v55, %v7868_v53 }
 0x6da   : > { %v3682_v22 = vpop.f32.mrf.mxu1 }
 0x6db   : > { %v7922_v61 = vadd.f32 %v3682_v22, %v3634_v18  ;;  %v3636_v29 = vpop.f32.mrf.mxu0  ;;  %v3755_v22 = vpop.f32.mrf.mxu3 }
 0x6dc   : > { %v3637_v56 = vadd.f32 %v3636_v29, %v7858_v50 }
 0x6de   : > { %3831 = vmatmul.bf16.gmra.mxu0 %v8528_v12 }
 0x6e2   : > { %v3685_v44 = vpop.f32.mrf.mxu1 }
 0x6e3   : > { %v7926_v27 = vadd.f32 %v3685_v44, %v3637_v56  ;;  %v3638_v60 = vpop.f32.mrf.mxu0 }
 0x6e4   : > { %v3639_v58 = vadd.f32 %v3638_v60, %v7858_v50 }
 0x6e5   : > { %3880 = vmatmul.bf16.gmra.mxu1 %v8523_v24  ;;  %v3758_v24 = vpop.f32.mrf.mxu3 }
 0x6ea   : > { %v3687_v18 = vpop.f32.mrf.mxu1 }
 0x6eb   : > { %v7934_v16 = vadd.f32 %v3687_v18, %v3639_v58  ;;  %v3797_v12 = vpop.f32.mrf.mxu0  ;;  %v3902_v58 = vmul.f32 1.442695, %v3886_v46  ;;  %v3754_v18 = vadd.f32 %v3753_v40, %v7929_v8  ;;  %v3888_v40 = vsub.f32 0.0, %v7874_v5 }
 0x6ec   : > { %v3798_v29 = vadd.f32 %v3797_v12, %v3749_v23  ;;  %v3887_v23 = vsub.f32 0.0, %v3702_v63 }
 0x6ed   : > { %v7947_v3 = vpop.f32.mrf.mxu3 }
 0x6f2   : > { %v3846_v56 = vpop.f32.mrf.mxu1 }
 0x6f3   : > { %v7937_v44 = vadd.f32 %v3846_v56, %v3798_v29  ;;  %v3799_v10 = vpop.f32.mrf.mxu0 }
 0x6f4   : > { %v3800_v47 = vadd.f32 %v3799_v10, %v3751_v6  ;;  %v3904_v6 = vmul.f32 1.442695, %v3887_v23 }
 0x6f5   : > { %v3982_v50 = vand.u32 2147483647, %v7937_v44  ;;  %v7957_v15 = vpop.f32.mrf.mxu3 }
 0x6f7   : > { %v3998_v60 = vsub.f32 0.0, %v3982_v50 }
 0x6f9   : > { %v4014_v12 = vmul.f32 1.442695, %v3998_v60 }
 0x6fa   : > { %v3848_v9 = vpop.f32.mrf.mxu1 }
 0x6fb   : > { %6146 = vpow2.f32 %v4014_v12  ;;  %v7944_v29 = vadd.f32 %v3848_v9, %v3800_v47  ;;  %v3802_v56 = vpop.f32.mrf.mxu0  ;;  %v3756_v47 = vadd.f32 %v3755_v22, %v7929_v8  ;;  %v3759_v22 = vadd.f32 %v3758_v24, %v7929_v8 }
 0x6fc   : > { %6148 = vpow2.f32 %v3902_v58  ;;  %v3803_v42 = vadd.f32 %v3802_v56, %v3754_v18  ;;  %v3707_v56 = vadd.f32 %v7872_v62, %v7878_v2  ;;  %v3966_v24 = vmax.f32 %v7937_v44, 0.0 }
 0x6fd   : > { %v3983_v10 = vand.u32 2147483647, %v7944_v29  ;;  %6150 = vpow2.f32 %v3904_v6 }
 0x6ff   : > { %v3999_v55 = vsub.f32 0.0, %v3983_v10  ;;  %v3906_v10 = vmul.f32 1.442695, %v3888_v40 }
 0x701   : > { %v6147_v53 = vpop.eup %6146  ;;  %v4016_v46 = vmul.f32 1.442695, %v3999_v55 }
 0x702   : > { %v6149_v50 = vpop.eup %6148  ;;  %v4046_v63 = vadd.f32 1.0, %v6147_v53  ;;  %v4049_v60 = vmul.f32 -0.5, %v6147_v53  ;;  %v3851_v12 = vpop.f32.mrf.mxu1  ;;  %v4052_v33 = vand.u32 2147483647, %v6147_v53 }
 0x703   : > { %6152 = vpow2.f32 %v4016_v46  ;;  %v7951_v58 = vadd.f32 %v3851_v12, %v3803_v42  ;;  %v3804_v18 = vpop.f32.mrf.mxu0  ;;  %v3934_v9 = vadd.f32 1.0, %v6149_v50  ;;  %v6151_v5 = vpop.eup %6150  ;;  %v3889_v46 = vsub.f32 0.0, %v3707_v56 }
 0x704   : > { %6154 = vlog2.f32 %v4046_v63  ;;  %v3805_v23 = vadd.f32 %v3804_v18, %v3756_v47  ;;  %v4050_v55 = vadd.f32 1.0, %v4049_v60  ;;  %v3935_v50 = vadd.f32 1.0, %v6151_v5 }
 0x705   : > { %v3984_v6 = vand.u32 2147483647, %v7951_v58  ;;  %6156 = vrcp.f32 %v3934_v9  ;;  %vm4053_vm1 = vcmp.lt.f32.partialorder %v4052_v33, 0.0004427343  ;;  %v3908_v9 = vmul.f32 1.442695, %v3889_v46 }
 0x706   : > { %6158 = vpow2.f32 %v3906_v10  ;;  %v4051_v12 = vmul.f32 %v6147_v53, %v4050_v55  ;;  %v3890_v10 = vsub.f32 0.0, %v7884_v25  ;;  %v7966_v25 = vpop.f32.mrf.mxu3 }
 0x707   : > { %v4000_v19 = vsub.f32 0.0, %v3984_v6 }
 0x709   : > { %v6153_v42 = vpop.eup %6152  ;;  %v4018_v63 = vmul.f32 1.442695, %v4000_v19 }
 0x70a   : > { %v6155_v47 = vpop.eup %6154  ;;  %v4055_v62 = vadd.f32 1.0, %v6153_v42  ;;  %v3853_v2 = vpop.f32.mrf.mxu1  ;;  %v4058_v40 = vmul.f32 -0.5, %v6153_v42 }
 0x70b   : > { %v4048_v18 = vmul.f32 0.6931472, %v6155_v47  ;;  %6160 = vpow2.f32 %v4018_v63  ;;  %v7959_v60 = vadd.f32 %v3853_v2, %v3805_v23  ;;  %v3807_v6 = vpop.f32.mrf.mxu0  ;;  %v6157_v55 = vpop.eup %6156  ;;  %v4061_v63 = vand.u32 2147483647, %v6153_v42 }
 0x70c   : > { %6162 = vlog2.f32 %v4055_v62  ;;  %v3808_v4 = vadd.f32 %v3807_v6, %v3759_v22  ;;  %v4059_v5 = vadd.f32 1.0, %v4058_v40  ;;  %v6159_v57 = vpop.eup %6158  ;;  %v3910_v62 = vmul.f32 1.442695, %v3890_v10 }
 0x70d   : > { %v4054_v56 = vsel %vm4053_vm1, %v4051_v12, %v4048_v18  ;;  %v3985_v19 = vand.u32 2147483647, %v7959_v60  ;;  %6164 = vrcp.f32 %v3935_v50  ;;  %v3761_v12 = vadd.f32 %v7947_v3, %v7929_v8 }
 0x70e   : > { %v4190_v53 = vadd.f32 %v4054_v56, %v3966_v24  ;;  %6166 = vpow2.f32 %v3908_v9  ;;  %v4060_v40 = vmul.f32 %v6153_v42, %v4059_v5  ;;  %v3967_v56 = vmax.f32 %v7944_v29, 0.0 }
 0x70f   : > { %v4001_v47 = vsub.f32 0.0, %v3985_v19  ;;  %vm4062_vm2 = vcmp.lt.f32.partialorder %v4061_v63, 0.0004427343  ;;  %v3936_v19 = vadd.f32 1.0, %v6159_v57  ;;  %v3712_v10 = vadd.f32 %v7882_v43, %v7888_v54 }
 0x710   : > { %v4206_v23 = vmul.f32 %v6157_v55, %v4190_v53  ;;  %v3764_v29 = vadd.f32 %v7957_v15, %v7929_v8 }
 0x711   : > { %v6161_v2 = vpop.eup %6160  ;;  %v4020_v44 = vmul.f32 1.442695, %v4001_v47  ;;  %v3891_v57 = vsub.f32 0.0, %v3712_v10 }
 0x712   : > { %v6163_v33 = vpop.eup %6162  ;;  %v4064_v22 = vadd.f32 1.0, %v6161_v2  ;;  %v4067_v46 = vmul.f32 -0.5, %v6161_v2  ;;  %v3856_v18 = vpop.f32.mrf.mxu1 }
 0x713   : > { %v4057_v6 = vmul.f32 0.6931472, %v6163_v33  ;;  %6168 = vpow2.f32 %v4020_v44  ;;  %v7968_v24 = vadd.f32 %v3856_v18, %v3808_v4  ;;  %v3809_v50 = vpop.f32.mrf.mxu0  ;;  %v6165_v55 = vpop.eup %6164  ;;  %v4070_v44 = vand.u32 2147483647, %v6161_v2 }
 0x714   : > { %6170 = vlog2.f32 %v4064_v22  ;;  %v3810_v9 = vadd.f32 %v3809_v50, %v3761_v12  ;;  %v4068_v33 = vadd.f32 1.0, %v4067_v46  ;;  %v6167_v42 = vpop.eup %6166 }
 0x715   : > { %v4063_v53 = vsel %vm4062_vm2, %v4060_v40, %v4057_v6  ;;  %v3986_v3 = vand.u32 2147483647, %v7968_v24  ;;  %6172 = vpow2.f32 %v3910_v62  ;;  %v7977_v6 = vmul.f32 %v7423_v21, %v4206_v23 }
 0x716   : > { %v4191_v47 = vadd.f32 %v4063_v53, %v3967_v56  ;;  %6174 = vrcp.f32 %v3936_v19  ;;  %v4069_v43 = vmul.f32 %v6161_v2, %v4068_v33  ;;  %v3968_v56 = vmax.f32 %v7951_v58, 0.0  ;;  %v3768_v2 = vpop.f32.mrf.mxu3 }
 0x717   : > { %v4002_v5 = vsub.f32 0.0, %v3986_v3  ;;  %vm4071_vm3 = vcmp.lt.f32.partialorder %v4070_v44, 0.0004427343  ;;  %v3937_v10 = vadd.f32 1.0, %v6167_v42 }
 0x718   : > { %v4207_v4 = vmul.f32 %v6165_v55, %v4191_v47  ;;  %v3912_v47 = vmul.f32 1.442695, %v3891_v57 }
 0x719   : > { %v6169_v63 = vpop.eup %6168  ;;  %v4022_v22 = vmul.f32 1.442695, %v4002_v5 }
 0x71a   : > { %v6171_v12 = vpop.eup %6170  ;;  %v4073_v54 = vadd.f32 1.0, %v6169_v63  ;;  %v3858_v18 = vpop.f32.mrf.mxu1  ;;  %v7980_v46 = vmul.f32 %v7423_v21, %v4207_v4  ;;  %v4076_v40 = vmul.f32 -0.5, %v6169_v63 }
 0x71b   : > { %v4066_v62 = vmul.f32 0.6931472, %v6171_v12  ;;  %6176 = vpow2.f32 %v4022_v22  ;;  %v7982_v50 = vadd.f32 %v3858_v18, %v3810_v9  ;;  %v3812_v15 = vpop.f32.mrf.mxu0  ;;  %v6173_v55 = vpop.eup %6172  ;;  %v4079_v12 = vand.u32 2147483647, %v6169_v63 }
 0x71c   : > { %6178 = vlog2.f32 %v4073_v54  ;;  %v3813_v19 = vadd.f32 %v3812_v15, %v3764_v29  ;;  %v6175_v5 = vpop.eup %6174  ;;  %v4077_v9 = vadd.f32 1.0, %v4076_v40  ;;  %v3938_v44 = vadd.f32 1.0, %v6173_v55 }
 0x71d   : > { %v4072_v53 = vsel %vm4071_vm3, %v4069_v43, %v4066_v62  ;;  %v3987_v23 = vand.u32 2147483647, %v7982_v50  ;;  %6180 = vrcp.f32 %v3937_v10  ;;  %v3892_v29 = vsub.f32 0.0, %v7892_v31 }
 0x71e   : > { %v4192_v33 = vadd.f32 %v4072_v53, %v3968_v56  ;;  %6182 = vpow2.f32 %v3912_v47  ;;  %v3766_v62 = vadd.f32 %v7966_v25, %v7929_v8  ;;  %v4078_v56 = vmul.f32 %v6169_v63, %v4077_v9  ;;  %v7996_v47 = vpop.f32.mrf.mxu2  ;;  %v7999_v9 = vpop.f32.mrf.mxu3 }
 0x71f   : > { %v4003_v4 = vsub.f32 0.0, %v3987_v23  ;;  %v3969_v10 = vmax.f32 %v7959_v60, 0.0  ;;  %vm4080_vm4 = vcmp.lt.f32.partialorder %v4079_v12, 0.0004427343  ;;  %v3914_v23 = vmul.f32 1.442695, %v3892_v29 }
 0x720   : > { %v4208_v22 = vmul.f32 %v6175_v5, %v4192_v33  ;;  %v3717_v55 = vadd.f32 %v7895_v59, %v7898_v48  ;;  %v3769_v29 = vadd.f32 %v3768_v2, %v7929_v8 }
 0x721   : > { %v6177_v58 = vpop.eup %6176  ;;  %v4024_v42 = vmul.f32 1.442695, %v4003_v4 }
 0x722   : > { %v6179_v43 = vpop.eup %6178  ;;  %v4082_v54 = vadd.f32 1.0, %v6177_v58  ;;  %v4085_v18 = vmul.f32 -0.5, %v6177_v58  ;;  %v3861_v57 = vpop.f32.mrf.mxu1  ;;  %v4088_v12 = vand.u32 2147483647, %v6177_v58  ;;  %v3893_v59 = vsub.f32 0.0, %v3717_v55 }
 0x723   : > { %v4075_v15 = vmul.f32 0.6931472, %v6179_v43  ;;  %6184 = vpow2.f32 %v4024_v42  ;;  %v7991_v40 = vadd.f32 %v3861_v57, %v3813_v19  ;;  %v3814_v53 = vpop.f32.mrf.mxu0  ;;  %v6181_v19 = vpop.eup %6180 }
 0x724   : > { %6186 = vlog2.f32 %v4082_v54  ;;  %v3815_v31 = vadd.f32 %v3814_v53, %v3766_v62  ;;  %v4086_v63 = vadd.f32 1.0, %v4085_v18  ;;  %v6183_v42 = vpop.eup %6182  ;;  %v8003_v18 = vmul.f32 %v7423_v21, %v4208_v22 }
 0x725   : > { %v4081_v33 = vsel %vm4080_vm4, %v4078_v56, %v4075_v15  ;;  %v3988_v25 = vand.u32 2147483647, %v7991_v40  ;;  %6188 = vrcp.f32 %v3938_v44  ;;  %vm4089_vm5 = vcmp.lt.f32.partialorder %v4088_v12, 0.0004427343 }
 0x726   : > { %v4193_v5 = vadd.f32 %v4081_v33, %v3969_v10  ;;  %6190 = vpow2.f32 %v3914_v23  ;;  %v4087_v62 = vmul.f32 %v6177_v58, %v4086_v63  ;;  %v3970_v23 = vmax.f32 %v7968_v24, 0.0 }
 0x727   : > { %v4004_v4 = vsub.f32 0.0, %v3988_v25  ;;  %v3939_v58 = vadd.f32 1.0, %v6183_v42  ;;  %v3916_v63 = vmul.f32 1.442695, %v3893_v59 }
 0x728   : > { %v4209_v60 = vmul.f32 %v6181_v19, %v4193_v5 }
 0x729   : > { %v6185_v43 = vpop.eup %6184  ;;  %v4026_v48 = vmul.f32 1.442695, %v4004_v4 }
 0x72a   : > { %v6187_v54 = vpop.eup %6186  ;;  %v4091_v57 = vadd.f32 1.0, %v6185_v43  ;;  %v3863_v15 = vpop.f32.mrf.mxu1  ;;  %v8006_v56 = vmul.f32 %v7423_v21, %v4209_v60  ;;  %v4094_v44 = vmul.f32 -0.5, %v6185_v43  ;;  %v4097_v12 = vand.u32 2147483647, %v6185_v43 }
 0x72b   : > { %v4084_v53 = vmul.f32 0.6931472, %v6187_v54  ;;  %6192 = vpow2.f32 %v4026_v48  ;;  %v8008_v10 = vadd.f32 %v3863_v15, %v3815_v31  ;;  %v3817_v2 = vpop.f32.mrf.mxu0  ;;  %v6189_v5 = vpop.eup %6188  ;;  %v3894_v54 = vsub.f32 0.0, %v7902_v51 }
 0x72c   : > { %6194 = vlog2.f32 %v4091_v57  ;;  %v3818_v55 = vadd.f32 %v3817_v2, %v3769_v29  ;;  %v6191_v4 = vpop.eup %6190  ;;  %v3724_v60 = vpop.f32.mrf.mxu2  ;;  %v4095_v31 = vadd.f32 1.0, %v4094_v44  ;;  %v3971_v51 = vmax.f32 %v7982_v50, 0.0 }
 0x72d   : > { %v4090_v33 = vsel %vm4089_vm5, %v4087_v62, %v4084_v53  ;;  %v3989_v25 = vand.u32 2147483647, %v8008_v10  ;;  %v3773_v57 = vpop.f32.mrf.mxu3  ;;  %6196 = vrcp.f32 %v3939_v58  ;;  %v3940_v15 = vadd.f32 1.0, %v6191_v4 }
 0x72e   : > { %v4194_v19 = vadd.f32 %v4090_v33, %v3970_v23  ;;  %6198 = vpow2.f32 %v3916_v63  ;;  %v4096_v23 = vmul.f32 %v6185_v43, %v4095_v31  ;;  %vm4098_vm6 = vcmp.lt.f32.partialorder %v4097_v12, 0.0004427343 }
 0x72f   : > { %v4005_v48 = vsub.f32 0.0, %v3989_v25  ;;  %v3918_v25 = vmul.f32 1.442695, %v3894_v54  ;;  %v3722_v58 = vadd.f32 %v7996_v47, %v7906_v13  ;;  %v3774_v47 = vadd.f32 %v3773_v57, %v7929_v8 }
 0x730   : > { %v4210_v24 = vmul.f32 %v6189_v5, %v4194_v19  ;;  %v3972_v57 = vmax.f32 %v7991_v40, 0.0 }
 0x731   : > { %v6193_v29 = vpop.eup %6192  ;;  %v4028_v42 = vmul.f32 1.442695, %v4005_v48  ;;  %v3895_v12 = vsub.f32 0.0, %v3722_v58 }
 0x732   : > { %v6195_v62 = vpop.eup %6194  ;;  %v4100_v53 = vadd.f32 1.0, %v6193_v29  ;;  %v4103_v2 = vmul.f32 -0.5, %v6193_v29  ;;  %v3866_v1 = vpop.f32.mrf.mxu1  ;;  %v4106_v50 = vand.u32 2147483647, %v6193_v29 }
 0x733   : > { %v4093_v59 = vmul.f32 0.6931472, %v6195_v62  ;;  %6200 = vpow2.f32 %v4028_v42  ;;  %v8015_v33 = vadd.f32 %v3866_v1, %v3818_v55  ;;  %v3819_v44 = vpop.f32.mrf.mxu0  ;;  %v6197_v48 = vpop.eup %6196  ;;  %v3771_v1 = vadd.f32 %v7999_v9, %v7929_v8 }
 0x734   : > { %6202 = vlog2.f32 %v4100_v53  ;;  %v4104_v4 = vadd.f32 1.0, %v4103_v2  ;;  %v6199_v55 = vpop.eup %6198  ;;  %v3726_v42 = vpop.f32.mrf.mxu2  ;;  %vm4107_vm7 = vcmp.lt.f32.partialorder %v4106_v50, 0.0004427343 }
 0x735   : > { %v4099_v5 = vsel %vm4098_vm6, %v4096_v23, %v4093_v59  ;;  %v3990_v63 = vand.u32 2147483647, %v8015_v33  ;;  %6204 = vrcp.f32 %v3940_v15  ;;  %v3820_v13 = vadd.f32 %v3819_v44, %v3771_v1  ;;  %v3775_v15 = vpop.f32.mrf.mxu3 }
 0x736   : > { %v4195_v19 = vadd.f32 %v4099_v5, %v3971_v51  ;;  %6206 = vpow2.f32 %v3918_v25  ;;  %v4105_v59 = vmul.f32 %v6193_v29, %v4104_v4  ;;  %v8025_v51 = vmul.f32 %v7423_v21, %v4210_v24 }
 0x737   : > { %v4006_v43 = vsub.f32 0.0, %v3990_v63  ;;  %v3725_v44 = vadd.f32 %v3724_v60, %v7910_v34 }
 0x738   : > { %v4211_v31 = vmul.f32 %v6197_v48, %v4195_v19  ;;  %v3941_v19 = vadd.f32 1.0, %v6199_v55 }
 0x739   : > { %v6201_v54 = vpop.eup %6200  ;;  %v4030_v62 = vmul.f32 1.442695, %v4006_v43  ;;  %v3920_v43 = vmul.f32 1.442695, %v3895_v12 }
 0x73a   : > { %v6203_v53 = vpop.eup %6202  ;;  %v4109_v2 = vadd.f32 1.0, %v6201_v54  ;;  %v3868_v23 = vpop.f32.mrf.mxu1  ;;  %v8028_v9 = vmul.f32 %v7423_v21, %v4211_v31  ;;  %v4112_v5 = vmul.f32 -0.5, %v6201_v54  ;;  %v4115_v60 = vand.u32 2147483647, %v6201_v54 }
 0x73b   : > { %v4102_v25 = vmul.f32 0.6931472, %v6203_v53  ;;  %6208 = vpow2.f32 %v4030_v62  ;;  %v8030_v58 = vadd.f32 %v3868_v23, %v3820_v13  ;;  %v3822_v63 = vpop.f32.mrf.mxu0  ;;  %v6205_v29 = vpop.eup %6204  ;;  %v3896_v23 = vsub.f32 0.0, %v3725_v44 }
 0x73c   : > { %6210 = vlog2.f32 %v4109_v2  ;;  %v6207_v1 = vpop.eup %6206  ;;  %v4113_v62 = vadd.f32 1.0, %v4112_v5  ;;  %v3823_v53 = vadd.f32 %v3822_v63, %v3774_v47  ;;  %v3729_v47 = vpop.f32.mrf.mxu2  ;;  %v3973_v63 = vmax.f32 %v8008_v10, 0.0 }
 0x73d   : > { %v4108_v4 = vsel %vm4107_vm7, %v4105_v59, %v4102_v25  ;;  %v3991_v24 = vand.u32 2147483647, %v8030_v58  ;;  %6212 = vrcp.f32 %v3941_v19  ;;  %v3942_v55 = vadd.f32 1.0, %v6207_v1  ;;  %v3778_v44 = vpop.f32.mrf.mxu3 }
 0x73e   : > { %v4196_v31 = vadd.f32 %v4108_v4, %v3972_v57  ;;  %6214 = vpow2.f32 %v3920_v43  ;;  %v4114_v22 = vmul.f32 %v6201_v54, %v4113_v62  ;;  %v3922_v57 = vmul.f32 1.442695, %v3896_v23 }
 0x73f   : > { %v4007_v13 = vsub.f32 0.0, %v3991_v24  ;;  %vm4116_vm8 = vcmp.lt.f32.partialorder %v4115_v60, 0.0004427343 }
 0x740   : > { %v4212_v34 = vmul.f32 %v6205_v29, %v4196_v31  ;;  %v3727_v29 = vadd.f32 %v3726_v42, %v7914_v26  ;;  %v3779_v26 = vadd.f32 %v3778_v44, %v7929_v8 }
 0x741   : > { %v6209_v40 = vpop.eup %6208  ;;  %v4032_v50 = vmul.f32 1.442695, %v4007_v13 }
 0x742   : > { %v6211_v2 = vpop.eup %6210  ;;  %v4118_v59 = vadd.f32 1.0, %v6209_v40  ;;  %v4121_v25 = vmul.f32 -0.5, %v6209_v40  ;;  %v3871_v36 = vpop.f32.mrf.mxu1  ;;  %v4124_v13 = vand.u32 2147483647, %v6209_v40 }
 0x743   : > { %v4111_v3 = vmul.f32 0.6931472, %v6211_v2  ;;  %6216 = vpow2.f32 %v4032_v50  ;;  %v8037_v12 = vadd.f32 %v3871_v36, %v3823_v53  ;;  %v3824_v5 = vpop.f32.mrf.mxu0  ;;  %v6213_v43 = vpop.eup %6212  ;;  %v3776_v36 = vadd.f32 %v3775_v15, %v7929_v8 }
 0x744   : > { %6218 = vlog2.f32 %v4118_v59  ;;  %v4122_v1 = vadd.f32 1.0, %v4121_v25  ;;  %v6215_v31 = vpop.eup %6214  ;;  %v3897_v53 = vsub.f32 0.0, %v3727_v29  ;;  %v8045_v2 = vmul.f32 %v7423_v21, %v4212_v34 }
 0x745   : > { %v4117_v19 = vsel %vm4116_vm8, %v4114_v22, %v4111_v3  ;;  %v3992_v4 = vand.u32 2147483647, %v8037_v12  ;;  %6220 = vrcp.f32 %v3942_v55  ;;  %v3825_v60 = vadd.f32 %v3824_v5, %v3776_v36  ;;  %v3780_v36 = vpop.f32.mrf.mxu3 }
 0x746   : > { %v4197_v24 = vadd.f32 %v4117_v19, %v3973_v63  ;;  %6222 = vpow2.f32 %v3922_v57  ;;  %v4123_v22 = vmul.f32 %v6209_v40, %v4122_v1  ;;  %v3974_v5 = vmax.f32 %v8015_v33, 0.0  ;;  %v3731_v1 = vpop.f32.mrf.mxu2 }
 0x747   : > { %v4008_v54 = vsub.f32 0.0, %v3992_v4  ;;  %vm4125_vm9 = vcmp.lt.f32.partialorder %v4124_v13, 0.0004427343  ;;  %v3943_v40 = vadd.f32 1.0, %v6215_v31  ;;  %v3924_v4 = vmul.f32 1.442695, %v3897_v53 }
 0x748   : > { %v4213_v62 = vmul.f32 %v6213_v43, %v4197_v24  ;;  %v3730_v24 = vadd.f32 %v3729_v47, %v7918_v38 }
 0x749   : > { %v6217_v10 = vpop.eup %6216  ;;  %v4034_v23 = vmul.f32 1.442695, %v4008_v54 }
 0x74a   : > { %v6219_v3 = vpop.eup %6218  ;;  %v4127_v42 = vadd.f32 1.0, %v6217_v10  ;;  %v3873_v50 = vpop.f32.mrf.mxu1  ;;  %v8048_v15 = vmul.f32 %v7423_v21, %v4213_v62  ;;  %v4130_v59 = vmul.f32 -0.5, %v6217_v10 }
 0x74b   : > { %v4120_v55 = vmul.f32 0.6931472, %v6219_v3  ;;  %6224 = vpow2.f32 %v4034_v23  ;;  %v8050_v25 = vadd.f32 %v3873_v50, %v3825_v60  ;;  %v3827_v57 = vpop.f32.mrf.mxu0  ;;  %v6221_v63 = vpop.eup %6220  ;;  %v4133_v23 = vand.u32 2147483647, %v6217_v10 }
 0x74c   : > { %6226 = vlog2.f32 %v4127_v42  ;;  %v4241_v34 = vpack.c.bf16 %v8048_v15, %v8045_v2  ;;  %v6223_v19 = vpop.eup %6222  ;;  %v4131_v54 = vadd.f32 1.0, %v4130_v59  ;;  %v3828_v33 = vadd.f32 %v3827_v57, %v3779_v26  ;;  %v6276_v2 = vld [vmem:[%s7038_s16 + $0x10] sm:$0xff]  ;;  %v6277_v15 = vld [vmem:[%s7038_s16 + $0x18] sm:$0xff] }
 0x74d   : > { %v4126_v44 = vsel %vm4125_vm9, %v4123_v22, %v4120_v55  ;;  %v3993_v29 = vand.u32 2147483647, %v8050_v25  ;;  %6228 = vrcp.f32 %v3943_v40  ;;  %v3944_v22 = vadd.f32 1.0, %v6223_v19 }
 0x74e   : > { %v4198_v43 = vadd.f32 %v4126_v44, %v3974_v5  ;;  %6230 = vpow2.f32 %v3924_v4  ;;  %v3898_v42 = vsub.f32 0.0, %v3730_v24  ;;  %v4132_v48 = vmul.f32 %v6217_v10, %v4131_v54 }
 0x74f   : > { %v4009_v62 = vsub.f32 0.0, %v3993_v29  ;;  %v3732_v59 = vadd.f32 %v3731_v1, %v7922_v61  ;;  %v3975_v26 = vmax.f32 %v8030_v58, 0.0  ;;  %vm4134_vm10 = vcmp.lt.f32.partialorder %v4133_v23, 0.0004427343  ;;  %v3783_v61 = vpop.f32.mrf.mxu3 }
 0x750   : > { %v4214_v13 = vmul.f32 %v6221_v63, %v4198_v43  ;;  %v3781_v29 = vadd.f32 %v3780_v36, %v7929_v8  ;;  %v3926_v4 = vmul.f32 1.442695, %v3898_v42  ;;  %v3734_v43 = vpop.f32.mrf.mxu2 }
 0x751   : > { %v6225_v60 = vpop.eup %6224  ;;  %v4036_v31 = vmul.f32 1.442695, %v4009_v62  ;;  %v3899_v24 = vsub.f32 0.0, %v3732_v59 }
 0x752   : > { %v6227_v3 = vpop.eup %6226  ;;  %v4136_v50 = vadd.f32 1.0, %v6225_v60  ;;  %v3876_v55 = vpop.f32.mrf.mxu1  ;;  %v4139_v5 = vmul.f32 -0.5, %v6225_v60  ;;  %v8065_v36 = vmul.f32 %v7423_v21, %v4214_v13 }
 0x753   : > { %v4129_v53 = vmul.f32 0.6931472, %v6227_v3  ;;  %6232 = vpow2.f32 %v4036_v31  ;;  %v8057_v38 = vadd.f32 %v3876_v55, %v3828_v33  ;;  %v3829_v47 = vpop.f32.mrf.mxu0  ;;  %v6229_v44 = vpop.eup %6228  ;;  %v4142_v31 = vand.u32 2147483647, %v6225_v60 }
 0x754   : > { %6234 = vlog2.f32 %v4136_v50  ;;  %v6231_v10 = vpop.eup %6230  ;;  %v4140_v58 = vadd.f32 1.0, %v4139_v5  ;;  %v3830_v33 = vadd.f32 %v3829_v47, %v3781_v29  ;;  %v3928_v13 = vmul.f32 1.442695, %v3899_v24 }
 0x755   : > { %v4135_v57 = vsel %vm4134_vm10, %v4132_v48, %v4129_v53  ;;  %v3994_v63 = vand.u32 2147483647, %v8057_v38  ;;  %6236 = vrcp.f32 %v3944_v22  ;;  %v3784_v48 = vadd.f32 %v3783_v61, %v7929_v8 }
 0x756   : > { %v4199_v40 = vadd.f32 %v4135_v57, %v3975_v26  ;;  %v3945_v47 = vadd.f32 1.0, %v6231_v10  ;;  %v4141_v26 = vmul.f32 %v6225_v60, %v4140_v58  ;;  %vm4143_vm11 = vcmp.lt.f32.partialorder %v4142_v31, 0.0004427343 }
 0x757   : > { %v4010_v19 = vsub.f32 0.0, %v3994_v63 }
 0x758   : > { %v4215_v54 = vmul.f32 %v6229_v44, %v4199_v40  ;;  %v3736_v58 = vpop.f32.mrf.mxu2 }
 0x759   : > { %v6233_v1 = vpop.eup %6232  ;;  %v4038_v62 = vmul.f32 1.442695, %v4010_v19 }
 0x75a   : > { %v6235_v23 = vpop.eup %6234  ;;  %v4145_v3 = vadd.f32 1.0, %v6233_v1  ;;  %v3878_v50 = vpop.f32.mrf.mxu1  ;;  %v8068_v22 = vmul.f32 %v7423_v21, %v4215_v54  ;;  %v4148_v55 = vmul.f32 -0.5, %v6233_v1  ;;  %v3976_v54 = vmax.f32 %v8037_v12, 0.0 }
 0x75b   : > { %v4138_v42 = vmul.f32 0.6931472, %v6235_v23  ;;  %6238 = vpow2.f32 %v4038_v62  ;;  %v8070_v53 = vadd.f32 %v3878_v50, %v3830_v33  ;;  %v3832_v59 = vpop.f32.mrf.mxu0  ;;  %v6237_v63 = vpop.eup %6236  ;;  %v4151_v61 = vand.u32 2147483647, %v6233_v1 }
 0x75c   : > { %6240 = vlog2.f32 %v4145_v3  ;;  %v4242_v5 = vpack.c.bf16 %v8068_v22, %v8065_v36  ;;  %v4149_v44 = vadd.f32 1.0, %v4148_v55  ;;  %v3833_v19 = vadd.f32 %v3832_v59, %v3784_v48  ;;  %v6274_v36 = vld [vmem:[%s7038_s16] sm:$0xff]  ;;  %v6275_v22 = vld [vmem:[%s7038_s16 + $0x8] sm:$0xff] }
 0x75d   : > { %v3995_v57 = vand.u32 2147483647, %v8070_v53  ;;  %6242 = vpow2.f32 %v3926_v4  ;;  %v4144_v40 = vsel %vm4143_vm11, %v4141_v26, %v4138_v42  ;;  %v3735_v48 = vadd.f32 %v3734_v43, %v7926_v27  ;;  %v3785_v42 = vpop.f32.mrf.mxu3 }
 0x75e   : > { %6244 = vrcp.f32 %v3945_v47  ;;  %v4200_v33 = vadd.f32 %v4144_v40, %v3976_v54  ;;  %v4150_v4 = vmul.f32 %v6233_v1, %v4149_v44  ;;  %v3977_v12 = vmax.f32 %v8050_v25, 0.0 }
 0x75f   : > { %v4011_v29 = vsub.f32 0.0, %v3995_v57  ;;  %6246 = vpow2.f32 %v3928_v13  ;;  %vm4152_vm12 = vcmp.lt.f32.partialorder %v4151_v61, 0.0004427343  ;;  %v3737_v55 = vadd.f32 %v3736_v58, %v7934_v16 }
 0x760   : > { %v4216_v57 = vmul.f32 %v6237_v63, %v4200_v33  ;;  %v3786_v44 = vadd.f32 %v3785_v42, %v7929_v8  ;;  %v3900_v43 = vsub.f32 0.0, %v3735_v48 }
 0x761   : > { %v6239_v62 = vpop.eup %6238  ;;  %v4040_v10 = vmul.f32 1.442695, %v4011_v29  ;;  %v3901_v61 = vsub.f32 0.0, %v3737_v55 }
 0x762   : > { %v6241_v60 = vpop.eup %6240  ;;  %v4154_v23 = vadd.f32 1.0, %v6239_v62  ;;  %v3881_v3 = vpop.f32.mrf.mxu1  ;;  %v4157_v47 = vmul.f32 -0.5, %v6239_v62  ;;  %v8084_v63 = vmul.f32 %v7423_v21, %v4216_v57  ;;  %v3930_v48 = vmul.f32 1.442695, %v3900_v43 }
 0x763   : > { %v4147_v50 = vmul.f32 0.6931472, %v6241_v60  ;;  %6248 = vpow2.f32 %v4040_v10  ;;  %v8076_v24 = vadd.f32 %v3881_v3, %v3833_v19  ;;  %v6243_v31 = vpop.eup %6242  ;;  %v3834_v1 = vpop.f32.mrf.mxu0 }
 0x764   : > { %6250 = vlog2.f32 %v4154_v23  ;;  %v6245_v40 = vpop.eup %6244  ;;  %v3946_v27 = vadd.f32 1.0, %v6243_v31  ;;  %v4158_v10 = vadd.f32 1.0, %v4157_v47  ;;  %v3835_v16 = vadd.f32 %v3834_v1, %v3786_v44 }
 0x765   : > { %v4153_v59 = vsel %vm4152_vm12, %v4150_v4, %v4147_v50  ;;  %v3996_v26 = vand.u32 2147483647, %v8076_v24  ;;  %v6247_v19 = vpop.eup %6246  ;;  %v4160_v23 = vand.u32 2147483647, %v6239_v62  ;;  %v3932_v47 = vmul.f32 1.442695, %v3901_v61 }
 0x766   : > { %v4201_v13 = vadd.f32 %v4153_v59, %v3977_v12  ;;  %v3947_v42 = vadd.f32 1.0, %v6247_v19  ;;  %v4159_v55 = vmul.f32 %v6239_v62, %v4158_v10  ;;  %v3978_v1 = vmax.f32 %v8057_v38, 0.0 }
 0x767   : > { %v4012_v29 = vsub.f32 0.0, %v3996_v26  ;;  %vm4161_vm13 = vcmp.lt.f32.partialorder %v4160_v23, 0.0004427343  ;;  %v3979_v61 = vmax.f32 %v8070_v53, 0.0 }
 0x768   : > { %v4217_v25 = vmul.f32 %v6245_v40, %v4201_v13 }
 0x769   : > { %v6249_v54 = vpop.eup %6248  ;;  %v4042_v60 = vmul.f32 1.442695, %v4012_v29 }
 0x76a   : > { %v6251_v58 = vpop.eup %6250  ;;  %v4163_v3 = vadd.f32 1.0, %v6249_v54  ;;  %v3883_v50 = vpop.f32.mrf.mxu1  ;;  %v8087_v33 = vmul.f32 %v7423_v21, %v4217_v25  ;;  %v4166_v4 = vmul.f32 -0.5, %v6249_v54  ;;  %v4169_v40 = vand.u32 2147483647, %v6249_v54 }
 0x76b   : > { %v4156_v8 = vmul.f32 0.6931472, %v6251_v58  ;;  %6252 = vpow2.f32 %v4042_v60  ;;  %v8089_v31 = vadd.f32 %v3883_v50, %v3835_v16 }
 0x76c   : > { %6254 = vlog2.f32 %v4163_v3  ;;  %v4243_v12 = vpack.c.bf16 %v8087_v33, %v8084_v63  ;;  %v4167_v57 = vadd.f32 1.0, %v4166_v4  ;;  %vm4170_vm14 = vcmp.lt.f32.partialorder %v4169_v40, 0.0004427343 }
 0x76d   : > { %v3997_v59 = vand.u32 2147483647, %v8089_v31  ;;  %6256 = vrcp.f32 %v3946_v27  ;;  %v4162_v26 = vsel %vm4161_vm13, %v4159_v55, %v4156_v8  ;;  %v8532_v63 = vpack.c.bf16 %v7980_v46, %v7977_v6 }
 0x76e   : > { %6258 = vpow2.f32 %v3930_v48  ;;  %v4202_v25 = vadd.f32 %v4162_v26, %v3978_v1  ;;  %v4168_v10 = vmul.f32 %v6249_v54, %v4167_v57 }
 0x76f   : > { %v4013_v13 = vsub.f32 0.0, %v3997_v59  ;;  %6260 = vrcp.f32 %v3947_v42 }
 0x770   : > { %6262 = vpow2.f32 %v3932_v47 }
 0x771   : > { %v6253_v44 = vpop.eup %6252  ;;  %v4044_v29 = vmul.f32 1.442695, %v4013_v13 }
 0x772   : > { %v6255_v43 = vpop.eup %6254  ;;  %v4172_v19 = vadd.f32 1.0, %v6253_v44  ;;  %v4175_v16 = vmul.f32 -0.5, %v6253_v44  ;;  %v4178_v55 = vand.u32 2147483647, %v6253_v44 }
 0x773   : > { %v4165_v62 = vmul.f32 0.6931472, %v6255_v43  ;;  %6264 = vpow2.f32 %v4044_v29  ;;  %v6257_v27 = vpop.eup %6256 }
 0x774   : > { %6266 = vlog2.f32 %v4172_v19  ;;  %v6259_v58 = vpop.eup %6258  ;;  %v4218_v38 = vmul.f32 %v6257_v27, %v4202_v25  ;;  %v4176_v48 = vadd.f32 1.0, %v4175_v16  ;;  %vm4179_vm15 = vcmp.lt.f32.partialorder %v4178_v55, 0.0004427343 }
 0x775   : > { %v4171_v60 = vsel %vm4170_vm14, %v4168_v10, %v4165_v62  ;;  %v6261_v3 = vpop.eup %6260  ;;  %v3948_v47 = vadd.f32 1.0, %v6259_v58  ;;  %v3980_v25 = vmax.f32 %v8076_v24, 0.0 }
 0x776   : > { %v4203_v23 = vadd.f32 %v4171_v60, %v3979_v61  ;;  %v6263_v50 = vpop.eup %6262  ;;  %v4234_v54 = vmul.f32 %v7423_v21, %v4218_v38  ;;  %v4177_v40 = vmul.f32 %v6253_v44, %v4176_v48  ;;  %v3981_v60 = vmax.f32 %v8089_v31, 0.0 }
 0x777   : > { %v3949_v1 = vadd.f32 1.0, %v6263_v50  ;;  %v8531_v31 = vpack.c.bf16 %v8006_v56, %v8003_v18  ;;  %v6281_v18 = vld [vmem:[%s7038_s16 + $0x38] sm:$0xff] }
 0x778   : > { %v4219_v8 = vmul.f32 %v6261_v3, %v4203_v23 }
 0x779   : > { %v6265_v4 = vpop.eup %6264 }
 0x77a   : > { %v6267_v42 = vpop.eup %6266  ;;  %v4181_v59 = vadd.f32 1.0, %v6265_v4  ;;  %v4235_v53 = vmul.f32 %v7423_v21, %v4219_v8  ;;  %v4184_v57 = vmul.f32 -0.5, %v6265_v4  ;;  %v4187_v19 = vand.u32 2147483647, %v6265_v4 }
 0x77b   : > { %v4174_v26 = vmul.f32 0.6931472, %v6267_v42 }
 0x77c   : > { %6268 = vlog2.f32 %v4181_v59  ;;  %v4244_v13 = vpack.c.bf16 %v4235_v53, %v4234_v54  ;;  %v4185_v43 = vadd.f32 1.0, %v4184_v57  ;;  %vm4188_vm0 = vcmp.lt.f32.partialorder %v4187_v19, 0.0004427343 }
 0x77d   : > { %6270 = vrcp.f32 %v3948_v47  ;;  %v4180_v29 = vsel %vm4179_vm15, %v4177_v40, %v4174_v26  ;;  %v8533_v57 = vmax.f32 %v7808_v7, 0.0  ;;  %v8535_v40 = vmax.f32 %v7794_v32, 0.0  ;;  %v8153_v32 = vld [vmem:[%s8539_s15] ss:$0 sm:$0xff]  ;;  %s4548_s15 = sshll.u32 %s4544_s5, 4  ;;  %s4549_s15 = int_to_ptr.hbm [resolvable:$true] %s4548_s15 }
 0x77e   : > { %6272 = vrcp.f32 %v3949_v1  ;;  %v4204_v10 = vadd.f32 %v4180_v29, %v3980_v25  ;;  %v4186_v27 = vmul.f32 %v6265_v4, %v4185_v43  ;;  %v8137_v1 = vld [vmem:[%s8534_s19] ss:$0 sm:$0xff]  ;;  %v8536_v25 = vmax.f32 %v7790_v35, 0.0  ;;  %s6626_s27 = sshra.s32 %s4549_s15, 4  ;;  %s6627_s27 = int_to_ptr.hbm [resolvable:$true] %s6626_s27 }
 0x77f   : > { %v8538_v7 = vmax.f32 %v7776_v11, 0.0  ;;  %v8540_v35 = vmax.f32 %v7772_v39, 0.0  ;;  %v8541_v11 = vmax.f32 %v7758_v45, 0.0  ;;  %s6628_s21 = scalar_lea.hbm %s6627_s27, 8  ;;  %p6633_p3 = scmp.lt.s32.totalorder %s6627_s27, %s8553_s3 }
 0x780   : > { %p6629_p10 = scmp.ne.s32.totalorder %s6627_s27, %s6628_s21 }
 0x782   : > { %v6269_v62 = vpop.eup %6268  ;;  %p6630_p11 = pnand %p6629_p10, %p6913_p4 }
 0x783   : > { %v4183_v61 = vmul.f32 0.6931472, %v6269_v62  ;;  %v6271_v16 = vpop.eup %6270 }
 0x784   : > { %v4220_v38 = vmul.f32 %v6271_v16, %v4204_v10  ;;  %v6273_v23 = vpop.eup %6272  ;;  %v8537_v10 = vmax.f32 %v7812_v41, 0.0  ;;  %p6631_p13 = pneg %p6630_p11 }
 0x785   : > { %v4189_v58 = vsel %vm4188_vm0, %v4186_v27, %v4183_v61 }
 0x786   : > { %v4205_v44 = vadd.f32 %v4189_v58, %v3981_v60  ;;  %v4236_v24 = vmul.f32 %v7423_v21, %v4220_v38 }
 0x788   : > { %v4221_v3 = vmul.f32 %v6273_v23, %v4205_v44 }
 0x78a   : > { %v4237_v50 = vmul.f32 %v7423_v21, %v4221_v3  ;;  %v8530_v21 = vpack.c.bf16 %v8028_v9, %v8025_v51  ;;  %v6278_v51 = vld [vmem:[%s7038_s16 + $0x20] sm:$0xff]  ;;  %v6279_v9 = vld [vmem:[%s7038_s16 + $0x28] sm:$0xff] }
 0x78c   : > { %v4245_v8 = vpack.c.bf16 %v4237_v50, %v4236_v24 }
 0x78e   : > { %4246 = vmatpush.bf16.msrb.mxu2 %v4245_v8  ;;  %v8542_v8 = vmax.f32 %v7754_v20, 0.0 }
 0x792   : > { %4247 = vmatpush.bf16.msrb.mxu2 %v4244_v13 }
 0x796   : > { %4248 = vmatpush.bf16.msrb.mxu2 %v4243_v12 }
 0x79a   : > { %4249 = vmatpush.bf16.msrb.mxu2 %v4242_v5 }
 0x79e   : > { %4250 = vmatpush.bf16.msrb.mxu2 %v4241_v34  ;;  %v6280_v34 = vld [vmem:[%s7038_s16 + $0x30] sm:$0xff]  ;;  %s874_s16 = scalar_lea.vmem %s8551_s6, %s873_s28  ;;  %s4534_s28 = scalar_lea.sflag [#allocation5], %s7019_s4 }
 0x7a2   : > { %4251 = vmatpush.bf16.msrb.mxu2 %v8530_v21 }
 0x7a6   : > { %4252 = vmatpush.bf16.msrb.mxu2 %v8531_v31 }
 0x7aa   : > { %4253 = vmatpush.bf16.msrb.mxu2 %v8532_v63 }
 0x7ad   : > { %4254 = vmatmul.bf16.vlgmr.msrb.gmra.mxu2 %v6274_v36  ;;  %v8543_v36 = vmax.f32 %v7740_v30, 0.0 }
 0x7bd   : > { %4259 = vmatmul.bf16.gmra.mxu2 %v6275_v22 }
 0x7cd   : > { %4264 = vmatmul.bf16.gmra.mxu2 %v6276_v2 }
 0x7dd   : > { %4269 = vmatmul.bf16.gmra.mxu2 %v6277_v15 }
 0x7ed   : > { %4274 = vmatmul.bf16.gmra.mxu2 %v6278_v51  ;;  %v8544_v51 = vmax.f32 %v7736_v49, 0.0 }
 0x7fd   : > { %4279 = vmatmul.bf16.gmra.mxu2 %v6279_v9 }
 0x80d   : > { %4284 = vmatmul.bf16.gmra.mxu2 %v6280_v34 }
 0x81d   : > { %4289 = vmatmul.bf16.gmra.mxu2 %v6281_v18 }
 0x830   : > { %v8128_v56 = vpop.f32.mrf.mxu2 }
 0x838   : > { %v8130_v6 = vpop.f32.mrf.mxu2 }
 0x840   : > { %v4260_v46 = vpop.f32.mrf.mxu2 }
 0x848   : > { %v4262_v5 = vpop.f32.mrf.mxu2 }
 0x850   : > { %v4265_v33 = vpop.f32.mrf.mxu2 }
 0x858   : > { %v4267_v12 = vpop.f32.mrf.mxu2 }
 0x860   : > { %v4270_v4 = vpop.f32.mrf.mxu2 }
 0x861   : > { %v4271_v9 = vadd.f32 %v4270_v4, %v8544_v51  ;;  %v5857_v51 = vld [vmem:[#allocation20 + $0x8] sm:$0xff] }
 0x863   : > { %v4305_v49 = vmul.f32 %v8137_v1, %v4271_v9  ;;  %v5856_v9 = vld [vmem:[#allocation20] sm:$0xff] }
 0x868   : > { %v4272_v48 = vpop.f32.mrf.mxu2 }
 0x869   : > { %v4273_v22 = vadd.f32 %v4272_v48, %v8543_v36  ;;  %v5860_v36 = vld [vmem:[#allocation20 + $0x20] sm:$0xff] }
 0x86b   : > { %v4306_v30 = vmul.f32 %v8137_v1, %v4273_v22  ;;  %v5859_v22 = vld [vmem:[#allocation20 + $0x18] sm:$0xff] }
 0x870   : > { %v4275_v42 = vpop.f32.mrf.mxu2 }
 0x871   : > { %v4276_v21 = vadd.f32 %v4275_v42, %v8542_v8  ;;  %v8545_v42 = vmax.f32 %v7722_v28, 0.0  ;;  %v5849_v8 = vld [vmem:[#allocation18 + $0x8] sm:$0xff] }
 0x873   : > { %v4307_v20 = vmul.f32 %v8137_v1, %v4276_v21  ;;  %v5848_v21 = vld [vmem:[#allocation18] sm:$0xff] }
 0x878   : > { %v4277_v55 = vpop.f32.mrf.mxu2 }
 0x879   : > { %v4278_v23 = vadd.f32 %v4277_v55, %v8541_v11  ;;  %v4268_v55 = vadd.f32 %v4267_v12, %v8545_v42  ;;  %v5855_v11 = vld [vmem:[#allocation18 + $0x38] sm:$0xff] }
 0x87b   : > { %v4308_v45 = vmul.f32 %v8137_v1, %v4278_v23  ;;  %v4304_v28 = vmul.f32 %v8137_v1, %v4268_v55  ;;  %v5854_v23 = vld [vmem:[#allocation18 + $0x30] sm:$0xff] }
 0x880   : > { %v4280_v59 = vpop.f32.mrf.mxu2 }
 0x881   : > { %v4281_v58 = vadd.f32 %v4280_v59, %v8540_v35  ;;  %v4328_v59 = vadd.f32 %v8153_v32, %v4308_v45  ;;  %v5858_v45 = vld [vmem:[#allocation20 + $0x10] sm:$0xff] }
 0x883   : > { %v4309_v39 = vmul.f32 %v8137_v1, %v4281_v58  ;;  %v4344_v12 = vmax.f32 %v4328_v59, 0.0 }
 0x885   : > { %v4329_v18 = vadd.f32 %v8153_v32, %v4309_v39  ;;  %v5863_v39 = vld [vmem:[#allocation20 + $0x38] sm:$0xff] }
 0x887   : > { %v4345_v4 = vmax.f32 %v4329_v18, 0.0 }
 0x888   : > { %v4282_v54 = vpop.f32.mrf.mxu2 }
 0x889   : > { %v4283_v27 = vadd.f32 %v4282_v54, %v8538_v7  ;;  %v8546_v54 = vmax.f32 %v7718_v0, 0.0 }
 0x88b   : > { %v4310_v3 = vmul.f32 %v8137_v1, %v4283_v27 }
 0x88d   : > { %v4330_v15 = vadd.f32 %v8153_v32, %v4310_v3  ;;  %v5853_v3 = vld [vmem:[#allocation18 + $0x28] sm:$0xff] }
 0x88f   : > { %v4346_v48 = vmax.f32 %v4330_v15, 0.0 }
 0x890   : > { %v4285_v53 = vpop.f32.mrf.mxu2 }
 0x891   : > { %v4286_v19 = vadd.f32 %v4285_v53, %v8536_v25  ;;  %v4266_v53 = vadd.f32 %v4265_v33, %v8546_v54  ;;  %v8549_v25 = vmax.f32 %v7686_v52, 0.0 }
 0x893   : > { %v4311_v38 = vmul.f32 %v8137_v1, %v4286_v19  ;;  %v4303_v33 = vmul.f32 %v8137_v1, %v4266_v53 }
 0x895   : > { %v4331_v63 = vadd.f32 %v8153_v32, %v4311_v38  ;;  %v4323_v7 = vadd.f32 %v8153_v32, %v4303_v33 }
 0x897   : > { %v4347_v34 = vmax.f32 %v4331_v63, 0.0  ;;  %v5861_v63 = vld [vmem:[#allocation20 + $0x28] sm:$0xff] }
 0x898   : > { %v4287_v47 = vpop.f32.mrf.mxu2 }
 0x899   : > { %v4288_v29 = vadd.f32 %v4287_v47, %v8535_v40  ;;  %v4327_v47 = vadd.f32 %v8153_v32, %v4307_v20  ;;  %v8548_v40 = vmax.f32 %v7700_v14, 0.0  ;;  %v8550_v14 = vmax.f32 %v7682_v37, 0.0  ;;  %v4389_v20 = vld [vmem:[%s8552_s14] sm:$0x1] }
 0x89b   : > { %v4312_v60 = vmul.f32 %v8137_v1, %v4288_v29  ;;  %v4261_v0 = vadd.f32 %v4260_v46, %v8548_v40  ;;  %v4343_v29 = vmax.f32 %v4327_v47, 0.0  ;;  %v4256_v46 = vadd.f32 %v8128_v56, %v8550_v14 }
 0x89d   : > { %v4332_v50 = vadd.f32 %v8153_v32, %v4312_v60  ;;  %v4299_v60 = vmul.f32 %v8137_v1, %v4256_v46 }
 0x89f   : > { %v4348_v2 = vmax.f32 %v4332_v50, 0.0  ;;  %v4319_v38 = vadd.f32 %v8153_v32, %v4299_v60  ;;  %v5850_v50 = vld [vmem:[#allocation18 + $0x10] sm:$0xff] }
 0x8a0   : > { %v4290_v26 = vpop.f32.mrf.mxu2 }
 0x8a1   : > { %v4291_v13 = vadd.f32 %v4290_v26, %v8533_v57  ;;  %v8547_v26 = vmax.f32 %v7704_v17, 0.0  ;;  %v4258_v17 = vadd.f32 %v8130_v6, %v8549_v25 }
 0x8a3   : > { %v4313_v62 = vmul.f32 %v8137_v1, %v4291_v13  ;;  %v4263_v57 = vadd.f32 %v4262_v5, %v8547_v26  ;;  %v4326_v13 = vadd.f32 %v8153_v32, %v4306_v30  ;;  %v4300_v52 = vmul.f32 %v8137_v1, %v4258_v17 }
 0x8a5   : > { %v4333_v44 = vadd.f32 %v8153_v32, %v4313_v62  ;;  %v4302_v5 = vmul.f32 %v8137_v1, %v4263_v57  ;;  %v4342_v19 = vmax.f32 %v4326_v13, 0.0  ;;  %v4324_v62 = vadd.f32 %v8153_v32, %v4304_v28 }
 0x8a6   : > { %v4320_v35 = vadd.f32 %v8153_v32, %v4300_v52 }
 0x8a7   : > { %v4349_v31 = vmax.f32 %v4333_v44, 0.0  ;;  %v4340_v6 = vmax.f32 %v4324_v62, 0.0  ;;  %v4322_v27 = vadd.f32 %v8153_v32, %v4302_v5  ;;  %v4351_v44 = vld [vmem:[%s874_s16] sm:$0x1]  ;;  %s6632_s16 = scalar_lea.hbm %s8553_s3, 16 }
 0x8a8   : > { %v4292_v43 = vpop.f32.mrf.mxu2  ;;  %p6634_p7 = scmp.lt.s32.totalorder %s6632_s16, %s6628_s21 }
 0x8a9   : > { %v4293_v61 = vadd.f32 %v4292_v43, %v8537_v10  ;;  %v4325_v43 = vadd.f32 %v8153_v32, %v4305_v49  ;;  %v4301_v10 = vmul.f32 %v8137_v1, %v4261_v0  ;;  %v4338_v56 = vmax.f32 %v4322_v27, 0.0 }
 0x8aa   : > { %p6635_p9 = por %p6634_p7, %p6633_p3 }
 0x8ab   : > { %v4314_v16 = vmul.f32 %v8137_v1, %v4293_v61  ;;  %v4341_v61 = vmax.f32 %v4325_v43, 0.0  ;;  %v4321_v37 = vadd.f32 %v8153_v32, %v4301_v10  ;;  %v4335_v1 = vmax.f32 %v4319_v38, 0.0 }
 0x8ac   : > { %p6636_p0 = pnand %p6635_p9, %p6631_p13 }
 0x8ad   : > { %v4334_v41 = vadd.f32 %v8153_v32, %v4314_v16  ;;  %v4339_v16 = vmax.f32 %v4323_v7, 0.0  ;;  %v4337_v58 = vmax.f32 %v4321_v37, 0.0  ;;  %v5851_v32 = vld [vmem:[#allocation18 + $0x18] sm:$0xff] }
 0x8af   : > { %v4350_v24 = vmax.f32 %v4334_v41, 0.0  ;;  %v4336_v41 = vmax.f32 %v4320_v35, 0.0 }
 0x8b1   : > { %4352 = vmatpush.msrb.mxu3 %v4350_v24  ;;  %v5852_v24 = vld [vmem:[#allocation18 + $0x20] sm:$0xff] }
 0x8b3   : > { %4353 = vmatpush.msrb.mxu3 %v4349_v31  ;;  %v5862_v31 = vld [vmem:[#allocation20 + $0x30] sm:$0xff] }
 0x8b5   : > { %4354 = vmatpush.msrb.mxu3 %v4348_v2 }
 0x8b7   : > { %4355 = vmatpush.msrb.mxu3 %v4347_v34 }
 0x8b9   : > { %4356 = vmatpush.msrb.mxu3 %v4346_v48  ;;  %v4469_v48 = vld [vmem:[%s8554_s13] sm:$0x1] }
 0x8bb   : > { %4357 = vmatpush.msrb.mxu3 %v4345_v4 }
 0x8bd   : > { %4358 = vmatpush.msrb.mxu3 %v4344_v12 }
 0x8bf   : > { %4359 = vmatpush.msrb.mxu3 %v4343_v29 }
 0x8c1   : > { %4360 = vmatpush.msrb.mxu3 %v4342_v19 }
 0x8c3   : > { %4361 = vmatpush.msrb.mxu3 %v4341_v61 }
 0x8c5   : > { %4362 = vmatpush.msrb.mxu3 %v4340_v6 }
 0x8c7   : > { %4363 = vmatpush.msrb.mxu3 %v4339_v16 }
 0x8c9   : > { %4364 = vmatpush.msrb.mxu3 %v4338_v56 }
 0x8cb   : > { %4365 = vmatpush.msrb.mxu3 %v4337_v58 }
 0x8cd   : > { %4366 = vmatpush.msrb.mxu3 %v4336_v41 }
 0x8cf   : > { %4367 = vmatpush.msrb.mxu3 %v4335_v1 }
 0x8d0   : > { %4368 = vmatmul.f32.vlgmr.msrb.gmra.mxu3 %v4351_v44 }
 0x8d1   : > { %4438 = vmatpush.bf16.msra.mxu3 %v5855_v11 }
 0x8d5   : > { %4439 = vmatpush.bf16.msra.mxu3 %v5854_v23 }
 0x8d9   : > { %4440 = vmatpush.bf16.msra.mxu3 %v5853_v3 }
 0x8dd   : > { %4441 = vmatpush.bf16.msra.mxu3 %v5852_v24 }
 0x8e1   : > { %4442 = vmatpush.bf16.msra.mxu3 %v5851_v32 }
 0x8e5   : > { %4443 = vmatpush.bf16.msra.mxu3 %v5850_v50 }
 0x8e9   : > { %4444 = vmatpush.bf16.msra.mxu3 %v5849_v8 }
 0x8ed   : > { %4445 = vmatpush.bf16.msra.mxu3 %v5848_v21 }
 0x8f1   : > { %4518 = vmatpush.bf16.msrb.mxu3 %v5863_v39 }
 0x8f5   : > { %4519 = vmatpush.bf16.msrb.mxu3 %v5862_v31 }
 0x8f9   : > { %4520 = vmatpush.bf16.msrb.mxu3 %v5861_v63 }
 0x8fd   : > { %4521 = vmatpush.bf16.msrb.mxu3 %v5860_v36 }
 0x901   : > { %4522 = vmatpush.bf16.msrb.mxu3 %v5859_v22 }
 0x905   : > { %4523 = vmatpush.bf16.msrb.mxu3 %v5858_v45 }
 0x909   : > { %4524 = vmatpush.bf16.msrb.mxu3 %v5857_v51 }
 0x90d   : > { %4525 = vmatpush.bf16.msrb.mxu3 %v5856_v9 }
 0x953   : > { %v4369_v2 = vpop.f32.mrf.mxu3 }
 0x954   : > { %v4372_v15 = vpack.c.bf16 %v4369_v2, %v4369_v2 }
 0x956   : > { %4446 = vmatmul.bf16.vlgmr.msra.gmra.mxu3 %v4372_v15 }
 0x9d9   : > { %v4447_v34 = vpop.f32.mrf.mxu3 }
 0x9da   : > { %v4448_v18 = vadd.f32 %v4447_v34, %v4389_v20 }
 0x9dc   : > { %v4451_v42 = vmax.f32 %v4448_v18, 0.0 }
 0x9de   : > { %v4452_v55 = vpack.c.bf16 %v4451_v42, %v4451_v42 }
 0x9e0   : > { %4526 = vmatmul.bf16.vlgmr.msrb.gmra.mxu3 %v4452_v55 }
 0x9e1   : > { %v4449_v30 = vpop.f32.mrf.mxu3 }
 0xa63   : > { %v4527_v59 = vpop.f32.mrf.mxu3 }
 0xa64   : > { %v4528_v54 = vadd.f32 %v4527_v59, %v4469_v48 }
 0xa66   : > { %v4531_v53 = vperm.slane %v4528_v54, 0 }
 0xa68   : > { %4532 = vst [vmem:[%s871_s26] sm:$0xff] %v4531_v53 }
 0xa69   : > { %6639 = shalt.err (!%p6636_p0)
}
 0xa6a   : > { %5905 = dma.vmem_to_hbm [thread:$0]  (%p6913_p4), %s4547_s20, 128, %s4549_s15, %s4534_s28  }
 0xa6b   : > { %v4529_v49 = vpop.f32.mrf.mxu3 }
 0xa6c PF: > { %s8556_s4 = sld [smem:[#allocation29_spill]]  ;;  %p8558_p2 = scmp.ge.s32.totalorder %s6698_s24, 2 }
 0xa6e   : > { %p5943_p12 = pnand %p8558_p2, %p6917_p5 }
 0xa70   : > { %p5944_p1 = pneg %p5943_p12 }
 0xa72   : > { %s4560_s23 = sand.u32 1, %s8556_s4  }
 0xa73   : > { %s4561_s0 = scalar_lea.sflag [#allocation5], %s4560_s23 }
 0xa74   : > { %6681 = dma.done.wait (%p5944_p1), %s4561_s0, 128  }
 0xa75   : > { %6683 = vsyncadd (%p5944_p1), %s4561_s0, 4294967168  ;;  %s8559_s24 = sld [smem:[#allocation31_spill]]  ;;  %s8562_s1 = smov %s6690_s22 }
 0xa76   : > { %s8560_s29 = sld [smem:[#allocation30_spill]] }
 0xa77   : > { %s8561_s23 = sld [smem:[#allocation32_spill]] }
 0xa7b   : > { %p40_p8 = scmp.ge.s32.totalorder %s8559_s24, 4  }
 0xa7c   : > { %s8563_s22 = smov %s8560_s29 }
 0xa7d   :  { %42 = sbr.rel (!%p40_p8) target bundleno = 29 (0x1d), region = 204 }
 0xa82   :  { %4567 = vsyncpa [#allocation4], 1 }
 0xa83   :  { %4569 = vsyncpa [#allocation4 + $0x1], 1 }
 0xa84   :  { %4570 = vsyncpa [#allocation7], 1 }
 0xa85   :  { %4572 = vsyncpa [#allocation7 + $0x1], 1 }
 0xa86   :  { %4573 = vsyncpa [#allocation10], 1 }
 0xa87   :  { %4574 = vsyncpa [#allocation13], 1 }
 0xa88   :  { %4575 = vsyncpa [#allocation16], 1 }
 0xa89   :  { %4576 = vsyncpa [#allocation19], 1 }
 0xa8a   :  { %4577 = vsyncpa [#allocation5], 1 }
 0xa8b   :  { %4579 = vsyncpa [#allocation5 + $0x1], 1 }

</bundles_post_ra>
